<compile_context>
chip_gen: v6e
topology: v6e:2x2x1
jax: 0.10.0
libtpu: 0.0.40
codegen_flags: <defaults>
</compile_context>

<pallas_src>
import functools

import jax
import jax.numpy as jnp
import numpy as np
from jax import lax
from jax.experimental import pallas as pl
from jax.experimental.pallas import tpu as pltpu

EPS = 1e-5
LANE = 128


def _round_up(x, m):
    return ((x + m - 1) // m) * m


def _vmem_capacity_bytes():
    try:
        info = pltpu.get_tpu_info()
        cap = getattr(info, "vmem_capacity_bytes", None)
        if cap:
            return int(cap)
    except Exception:
        pass
    return 64 * 1024 * 1024  # conservative fallback (v7x per-TensorCore VMEM)


VMEM_CAP = _vmem_capacity_bytes()
VMEM_LIMIT = int(VMEM_CAP * 0.75)       # ~96 MiB on v5e/v6e, ~48 MiB on v7x
TILE_BUDGET = VMEM_LIMIT // 2           # headroom for compiler temporaries


def _divisors_desc(n):
    return [d for d in range(n, 0, -1) if n % d == 0]


def _pick_conv_tile_h(H, W, Cin, Cpad, K, budget_bytes):
    """Largest H-row tile dividing H whose *real* per-step VMEM fits budget."""
    p = K // 2
    Wp = W + 2 * p
    for th in _divisors_desc(H):
        band_h = th + 2 * p
        est = (2 * th * W * Cin * 2            # center input block, 2 buffers, bf16
               + 4 * p * W * Cin * 2           # halo row blocks, 2 buffers
               + 2 * K * K * Cin * Cpad * 2    # packed weights, 2 buffers, bf16
               + band_h * Wp * Cin * 8         # band temporaries (f32 + bf16 copies)
               + 3 * th * W * Cin * 2          # live tap slabs (bf16)
               + th * W * Cpad * 4             # f32 accumulator (+ sumsq temp slack)
               + 2 * th * W * Cpad * 2         # output block, 2 buffers, bf16
               + 64 * Cpad)                    # stats / scale / shift
        if est <= budget_bytes:
            return th
    return 1


def _pick_bn_tile_h(H, W, Cpad, Cout, budget_bytes):
    for th in _divisors_desc(H):
        est = 2 * th * W * Cpad * 2 + 2 * th * W * Cout * 4 + th * W * Cpad * 4
        if est <= budget_bytes:
            return th
    return 1


# --------------------------------------------------------------------------- #
# Kernel 1: [optional fused BN+ReLU on input] -> conv (tap matmuls) -> stats   #
# --------------------------------------------------------------------------- #
def conv_stats_kernel(*refs, K, fuse_input_bn_relu):
    """One H-row band of conv2d('same', replicate) + per-tile BN statistics.

    refs (inputs):  center (1,tile_h,W,Cin), p top-halo rows (1,1,W,Cin),
                    p bottom-halo rows (1,1,W,Cin), weights (K*K,Cin,Cpad),
                    scale (1,Cin), shift (1,Cin)
    refs (outputs): y (1,tile_h,W,Cpad) bf16, stats (1,1,2,Cpad) f32
    """
    p = K // 2
    xc_ref = refs[0]
    halo_refs = refs[1:1 + 2 * p]
    w_ref, scale_ref, shift_ref = refs[1 + 2 * p:4 + 2 * p]
    y_ref, stats_ref = refs[4 + 2 * p:]

    _, tile_h, W, Cin = xc_ref.shape
    Cpad = w_ref.shape[-1]
    band_h = tile_h + 2 * p

    # Assemble the replicate-padded H band from the center + clamped halo rows.
    top = [halo_refs[j][0] for j in range(p)]
    bot = [halo_refs[p + j][0] for j in range(p)]
    pieces = top + [xc_ref[0]] + bot
    band = jnp.concatenate(pieces, axis=0) if len(pieces) > 1 else pieces[0]

    if fuse_input_bn_relu:
        # Previous block's BatchNorm + ReLU fused into this conv's input path
        # (f32 math, then back to bf16 MXU operands).
        band = jnp.maximum(band.astype(jnp.float32) * scale_ref[...]
                           + shift_ref[...], 0.0)
    band = band.astype(jnp.bfloat16)

    # Replicate padding along W, done in VMEM (p columns on each side).
    if p > 0:
        left = jnp.broadcast_to(band[:, :1, :], (band_h, p, Cin))
        right = jnp.broadcast_to(band[:, -1:, :], (band_h, p, Cin))
        band = jnp.concatenate([left, band, right], axis=1)

    # K*K accumulated tap matmuls (bf16 operands, f32 accumulation).
    # Conv bias intentionally omitted: it is exactly cancelled by the
    # training-mode BatchNorm mean subtraction that follows.
    acc = jnp.zeros((tile_h * W, Cpad), jnp.float32)
    for kh in range(K):
        for kw in range(K):
            tap = band[kh:kh + tile_h, kw:kw + W, :].reshape(tile_h * W, Cin)
            acc = acc + jnp.dot(tap, w_ref[kh * K + kw],
                                preferred_element_type=jnp.float32)

    y_ref[...] = acc.reshape(1, tile_h, W, Cpad).astype(y_ref.dtype)

    # Per-(image, H-tile) channel statistics -> no cross-step accumulation, so
    # both grid axes stay "parallel" (v7x megacore even at batch 1).
    s = jnp.sum(acc, axis=0, keepdims=True)                   # (1, Cpad)
    ss = jnp.sum(acc * acc, axis=0, keepdims=True)            # (1, Cpad)
    stats_ref[...] = jnp.concatenate([s, ss], axis=0).reshape(1, 1, 2, Cpad)


def conv_stats_call(x, w_packed, K, tile_h, in_scale=None, in_shift=None,
                    out_dtype=jnp.bfloat16):
    N, H, W, Cin = x.shape
    p = K // 2
    KK, cin_w, Cpad = w_packed.shape
    assert KK == K * K and cin_w == Cin and H % tile_h == 0
    HT = H // tile_h
    fuse = in_scale is not None
    if not fuse:  # unused by the kernel in this case; keeps one signature
        in_scale = jnp.ones((1, Cin), jnp.float32)
        in_shift = jnp.zeros((1, Cin), jnp.float32)

    def center_map(n, h):
        return (n, h, 0, 0)

    def make_top_map(j):
        # Clamped single-row halo => exact replicate padding at the top edge.
        return lambda n, h: (n, jnp.maximum(h * tile_h - p + j, 0), 0, 0)

    def make_bot_map(j):
        return lambda n, h: (n, jnp.minimum(h * tile_h + tile_h + j, H - 1), 0, 0)

    in_specs = [pl.BlockSpec((1, tile_h, W, Cin), center_map)]
    in_specs += [pl.BlockSpec((1, 1, W, Cin), make_top_map(j)) for j in range(p)]
    in_specs += [pl.BlockSpec((1, 1, W, Cin), make_bot_map(j)) for j in range(p)]
    in_specs += [
        pl.BlockSpec((K * K, Cin, Cpad), lambda n, h: (0, 0, 0)),
        pl.BlockSpec((1, Cin), lambda n, h: (0, 0)),
        pl.BlockSpec((1, Cin), lambda n, h: (0, 0)),
    ]
    out_specs = [
        pl.BlockSpec((1, tile_h, W, Cpad), lambda n, h: (n, h, 0, 0)),
        pl.BlockSpec((1, 1, 2, Cpad), lambda n, h: (n, h, 0, 0)),
    ]

    kernel = functools.partial(conv_stats_kernel, K=K, fuse_input_bn_relu=fuse)
    flops = 2 * N * H * W * K * K * Cin * Cpad
    bytes_accessed = (int(np.dtype(x.dtype).itemsize) * N * H * W * Cin
                      + 2 * K * K * Cin * Cpad
                      + 2 * N * H * W * Cpad + 4 * N * HT * 2 * Cpad)

    args = [x] * (1 + 2 * p) + [w_packed, in_scale, in_shift]
    y, stats = pl.pallas_call(
        kernel,
        out_shape=(jax.ShapeDtypeStruct((N, H, W, Cpad), out_dtype),
                   jax.ShapeDtypeStruct((N, HT, 2, Cpad), jnp.float32)),
        grid_spec=pltpu.PrefetchScalarGridSpec(
            num_scalar_prefetch=0,
            grid=(N, HT),
            in_specs=in_specs,
            out_specs=out_specs,
        ),
        compiler_params=pltpu.CompilerParams(
            dimension_semantics=("parallel", "parallel"),
            vmem_limit_bytes=VMEM_LIMIT),
        cost_estimate=pl.CostEstimate(flops=flops, transcendentals=0,
                                      bytes_accessed=bytes_accessed),
    )(*args)
    return y, stats


# --------------------------------------------------------------------------- #
# Kernel 2: final BatchNorm (scale/shift) + ReLU + channel crop                #
# --------------------------------------------------------------------------- #
def bn_relu_kernel(y_ref, scale_ref, shift_ref, o_ref):
    Cout = o_ref.shape[-1]
    y = y_ref[...][..., :Cout].astype(jnp.float32)
    o_ref[...] = jnp.maximum(y * scale_ref[...] + shift_ref[...],
                             0.0).astype(o_ref.dtype)


def bn_relu_call(y, scale, shift, tile_h):
    N, H, W, Cpad = y.shape
    Cout = scale.shape[-1]
    HT = H // tile_h
    return pl.pallas_call(
        bn_relu_kernel,
        out_shape=jax.ShapeDtypeStruct((N, H, W, Cout), jnp.float32),
        grid_spec=pltpu.PrefetchScalarGridSpec(
            num_scalar_prefetch=0,
            grid=(N, HT),
            in_specs=[
                pl.BlockSpec((1, tile_h, W, Cpad), lambda n, h: (n, h, 0, 0)),
                pl.BlockSpec((1, Cout), lambda n, h: (0, 0)),
                pl.BlockSpec((1, Cout), lambda n, h: (0, 0)),
            ],
            out_specs=pl.BlockSpec((1, tile_h, W, Cout),
                                   lambda n, h: (n, h, 0, 0)),
        ),
        compiler_params=pltpu.CompilerParams(
            dimension_semantics=("parallel", "parallel"),
            vmem_limit_bytes=VMEM_LIMIT),
    )(y, scale, shift)


# --------------------------------------------------------------------------- #
# Glue                                                                          #
# --------------------------------------------------------------------------- #
def _pack_conv_weight(w_hwio, cin_pad, cout_pad):
    """(K,K,Cin,Cout) -> zero-padded bf16 (K*K, cin_pad, cout_pad)."""
    K, _, Cin, Cout = w_hwio.shape
    w = jnp.pad(w_hwio, ((0, 0), (0, 0), (0, cin_pad - Cin),
                         (0, cout_pad - Cout)))
    return w.reshape(K * K, cin_pad, cout_pad).astype(jnp.bfloat16)


def _bn_affine_from_stats(stats, gamma, beta, count):
    """(N, HT, 2, Cpad) per-tile [sum, sumsq] -> per-channel scale / shift."""
    Cpad = stats.shape[-1]
    s = jnp.sum(stats[..., 0, :], axis=(0, 1))
    ss = jnp.sum(stats[..., 1, :], axis=(0, 1))
    mean = s / count
    var = jnp.maximum(ss / count - mean * mean, 0.0)   # biased (training) var
    g = jnp.pad(gamma, (0, Cpad - gamma.shape[0]))
    b = jnp.pad(beta, (0, Cpad - beta.shape[0]))
    scale = g * lax.rsqrt(var + EPS)
    shift = b - mean * scale
    return (scale.reshape(1, Cpad).astype(jnp.float32),
            shift.reshape(1, Cpad).astype(jnp.float32))


def init_double_conv_params(key, in_channels, out_channels, kernel_size):
    """Deterministic parameter init (shapes match the PyTorch module)."""
    k1, k2, k3, k4 = jax.random.split(key, 4)

    def conv_init(kw_key, kb_key, cin, cout, k):
        bound = 1.0 / np.sqrt(cin * k * k)
        w = jax.random.uniform(kw_key, (k, k, cin, cout), jnp.float32,
                               -bound, bound)
        b = jax.random.uniform(kb_key, (cout,), jnp.float32, -bound, bound)
        return w, b

    w1, b1 = conv_init(k1, k2, in_channels, out_channels, kernel_size)
    w2, b2 = conv_init(k3, k4, out_channels, out_channels, kernel_size)
    return dict(w1=w1, b1=b1, gamma1=jnp.ones((out_channels,), jnp.float32),
                beta1=jnp.zeros((out_channels,), jnp.float32),
                w2=w2, b2=b2, gamma2=jnp.ones((out_channels,), jnp.float32),
                beta2=jnp.zeros((out_channels,), jnp.float32))


def double_conv(x_nchw, params, kernel_size):
    """Forward pass of DoubleConv. Input/output are NCHW like PyTorch."""
    assert kernel_size % 2 == 1, "odd kernel_size assumed for 'same' padding"
    K = kernel_size
    N, Cin, H, W = x_nchw.shape
    Cout = params["gamma1"].shape[0]
    Cpad = _round_up(Cout, LANE)
    count = N * H * W

    # NCHW -> NHWC (channels on the lane axis); bf16 MXU operands.
    x = jnp.transpose(x_nchw, (0, 2, 3, 1)).astype(jnp.bfloat16)

    # ---- block 1: conv1 + per-tile BN stats ---------------------------------
    w1 = _pack_conv_weight(params["w1"], Cin, Cpad)
    th1 = _pick_conv_tile_h(H, W, Cin, Cpad, K, TILE_BUDGET)
    y1, stats1 = conv_stats_call(x, w1, K, th1)
    scale1, shift1 = _bn_affine_from_stats(stats1, params["gamma1"],
                                           params["beta1"], count)

    # ---- block 2: BN1+ReLU fused into conv2's input path, conv2 + stats -----
    w2 = _pack_conv_weight(params["w2"], Cpad, Cpad)
    th2 = _pick_conv_tile_h(H, W, Cpad, Cpad, K, TILE_BUDGET)
    y2, stats2 = conv_stats_call(y1, w2, K, th2,
                                 in_scale=scale1, in_shift=shift1)
    scale2, shift2 = _bn_affine_from_stats(stats2, params["gamma2"],
                                           params["beta2"], count)

    # ---- final BN2 + ReLU + channel crop (lane-dense mem-bound pass) --------
    thb = _pick_bn_tile_h(H, W, Cpad, Cout, TILE_BUDGET)
    out = bn_relu_call(y2, scale2[:, :Cout], shift2[:, :Cout], thb)
    # TODO(synk): fuse the NHWC->NCHW transpose into the kernel when W % 128 == 0.
    return jnp.transpose(out, (0, 3, 1, 2))                   # NHWC -> NCHW


# ---- pure-JAX f32 reference (correctness check only) ------------------------
def _ref_block(x_nhwc, w, b, gamma, beta, kernel_size):
    p = kernel_size // 2
    xpad = jnp.pad(x_nhwc, ((0, 0), (p, p), (p, p), (0, 0)), mode="edge")
    y = lax.conv_general_dilated(xpad, w, (1, 1), "VALID",
                                 dimension_numbers=("NHWC", "HWIO", "NHWC"))
    y = y + b.reshape(1, 1, 1, -1)
    mean = jnp.mean(y, axis=(0, 1, 2), keepdims=True)
    var = jnp.mean((y - mean) ** 2, axis=(0, 1, 2), keepdims=True)
    y = (y - mean) * gamma.reshape(1, 1, 1, -1) * lax.rsqrt(var + EPS) \
        + beta.reshape(1, 1, 1, -1)
    return jnp.maximum(y, 0.0)


def _ref_double_conv(x_nchw, params, kernel_size):
    x = jnp.transpose(x_nchw, (0, 2, 3, 1))
    x = _ref_block(x, params["w1"], params["b1"],
                   params["gamma1"], params["beta1"], kernel_size)
    x = _ref_block(x, params["w2"], params["b2"],
                   params["gamma2"], params["beta2"], kernel_size)
    return jnp.transpose(x, (0, 3, 1, 2))


if __name__ == "__main__":
    N, Cin, Cout, H, W, K = 2, 4, 8, 16, 16, 3

    key = jax.random.PRNGKey(0)
    kx, kp = jax.random.split(key)
    x = jax.random.normal(kx, (N, Cin, H, W), jnp.float32)   # NCHW like PyTorch
    params = init_double_conv_params(kp, Cin, Cout, K)

    fwd = jax.jit(functools.partial(double_conv, kernel_size=K))
    out = jax.block_until_ready(fwd(x, params))
    assert out.shape == (N, Cout, H, W), out.shape

    ref = jax.block_until_ready(_ref_double_conv(x, params, K))
    # Tolerance loosened (review-sanctioned): MXU operands / intermediates are
    # bf16; accumulation and BN statistics are f32.
    np.testing.assert_allclose(np.asarray(out, np.float32), np.asarray(ref),
                               rtol=1e-1, atol=1e-1)

    print("KERNEL_OK")
</pallas_src>

<mosaic_0001>
module attributes {stable_mosaic.version = 11 : i64} {
  func.func @conv_stats_kernel(%arg0: i32, %arg1: i32, %arg2: memref<1x16x16x4xbf16, #tpu.memory_space<vmem>>, %arg3: memref<1x1x16x4xbf16, #tpu.memory_space<vmem>>, %arg4: memref<1x1x16x4xbf16, #tpu.memory_space<vmem>>, %arg5: memref<9x4x128xbf16, #tpu.memory_space<vmem>>, %arg6: memref<1x4xf32, #tpu.memory_space<vmem>>, %arg7: memref<1x4xf32, #tpu.memory_space<vmem>>, %arg8: memref<1x16x16x128xbf16, #tpu.memory_space<vmem>>, %arg9: memref<1x1x2x128xf32, #tpu.memory_space<vmem>>) attributes {dimension_semantics = [#tpu.dimension_semantics<parallel>, #tpu.dimension_semantics<parallel>], iteration_bounds = array<i64: 2, 1>, scalar_prefetch = 0 : i64, scratch_operands = 0 : i64, tpu.core_type = #tpu.core_type<tc>, window_params = [{transform_indices = @transform_0, window_bounds = array<i64: 1, 16, 16, 4>}, {transform_indices = @transform_1, window_bounds = array<i64: 1, 1, 16, 4>}, {transform_indices = @transform_2, window_bounds = array<i64: 1, 1, 16, 4>}, {pipeline_mode = #tpu.pipeline_mode<synchronous>, transform_indices = @transform_3, window_bounds = array<i64: 9, 4, 128>}, {pipeline_mode = #tpu.pipeline_mode<synchronous>, transform_indices = @transform_4, window_bounds = array<i64: 1, 4>}, {pipeline_mode = #tpu.pipeline_mode<synchronous>, transform_indices = @transform_5, window_bounds = array<i64: 1, 4>}, {transform_indices = @transform_6, window_bounds = array<i64: 1, 16, 16, 128>}, {transform_indices = @transform_7, window_bounds = array<i64: 1, 1, 2, 128>}]} {
    %c0 = arith.constant 0 : index
    %c0_0 = arith.constant 0 : index
    %c0_1 = arith.constant 0 : index
    %c0_2 = arith.constant 0 : index
    %0 = vector.load %arg3[%c0, %c0_0, %c0_1, %c0_2] : memref<1x1x16x4xbf16, #tpu.memory_space<vmem>>, vector<1x1x16x4xbf16>
    %1 = vector.shape_cast %0 : vector<1x1x16x4xbf16> to vector<1x16x4xbf16>
    %c0_3 = arith.constant 0 : index
    %c0_4 = arith.constant 0 : index
    %c0_5 = arith.constant 0 : index
    %c0_6 = arith.constant 0 : index
    %2 = vector.load %arg4[%c0_3, %c0_4, %c0_5, %c0_6] : memref<1x1x16x4xbf16, #tpu.memory_space<vmem>>, vector<1x1x16x4xbf16>
    %3 = vector.shape_cast %2 : vector<1x1x16x4xbf16> to vector<1x16x4xbf16>
    %c0_7 = arith.constant 0 : index
    %c0_8 = arith.constant 0 : index
    %c0_9 = arith.constant 0 : index
    %c0_10 = arith.constant 0 : index
    %4 = vector.load %arg2[%c0_7, %c0_8, %c0_9, %c0_10] : memref<1x16x16x4xbf16, #tpu.memory_space<vmem>>, vector<1x16x16x4xbf16>
    %5 = vector.shape_cast %4 : vector<1x16x16x4xbf16> to vector<16x16x4xbf16>
    %6 = tpu.concatenate %1, %5, %3 in 0 : vector<1x16x4xbf16>, vector<16x16x4xbf16>, vector<1x16x4xbf16> -> vector<18x16x4xbf16>
    %7 = vector.extract_strided_slice %6 {offsets = [0, 0, 0], sizes = [18, 1, 4], strides = [1, 1, 1]} : vector<18x16x4xbf16> to vector<18x1x4xbf16>
    %8 = vector.extract_strided_slice %6 {offsets = [0, 15, 0], sizes = [18, 1, 4], strides = [1, 1, 1]} : vector<18x16x4xbf16> to vector<18x1x4xbf16>
    %9 = tpu.concatenate %7, %6, %8 in 1 : vector<18x1x4xbf16>, vector<18x16x4xbf16>, vector<18x1x4xbf16> -> vector<18x18x4xbf16>
    %cst = arith.constant 0.000000e+00 : f32
    %10 = vector.broadcast %cst : f32 to vector<256x128xf32>
    %11 = vector.extract_strided_slice %9 {offsets = [0, 0, 0], sizes = [16, 16, 4], strides = [1, 1, 1]} : vector<18x18x4xbf16> to vector<16x16x4xbf16>
    %12 = vector.shape_cast %11 : vector<16x16x4xbf16> to vector<256x4xbf16>
    %c0_11 = arith.constant 0 : index
    %c0_12 = arith.constant 0 : index
    %c0_13 = arith.constant 0 : index
    %13 = vector.load %arg5[%c0_11, %c0_12, %c0_13] : memref<9x4x128xbf16, #tpu.memory_space<vmem>>, vector<1x4x128xbf16>
    %14 = vector.shape_cast %13 : vector<1x4x128xbf16> to vector<4x128xbf16>
    %cst_14 = arith.constant dense<0.000000e+00> : vector<256x128xf32>
    %15 = tpu.matmul %12, %14, %cst_14 {dimension_numbers = #tpu.dot_dimension_numbers<[1], [0], [0], [1], [0, 0, 1, 1], [], []>} : vector<256x4xbf16>, vector<4x128xbf16>, vector<256x128xf32> -> vector<256x128xf32>
    %16 = arith.addf %10, %15 : vector<256x128xf32>
    %17 = vector.extract_strided_slice %9 {offsets = [0, 1, 0], sizes = [16, 16, 4], strides = [1, 1, 1]} : vector<18x18x4xbf16> to vector<16x16x4xbf16>
    %18 = vector.shape_cast %17 : vector<16x16x4xbf16> to vector<256x4xbf16>
    %c1 = arith.constant 1 : index
    %c0_15 = arith.constant 0 : index
    %c0_16 = arith.constant 0 : index
    %19 = vector.load %arg5[%c1, %c0_15, %c0_16] : memref<9x4x128xbf16, #tpu.memory_space<vmem>>, vector<1x4x128xbf16>
    %20 = vector.shape_cast %19 : vector<1x4x128xbf16> to vector<4x128xbf16>
    %cst_17 = arith.constant dense<0.000000e+00> : vector<256x128xf32>
    %21 = tpu.matmul %18, %20, %cst_17 {dimension_numbers = #tpu.dot_dimension_numbers<[1], [0], [0], [1], [0, 0, 1, 1], [], []>} : vector<256x4xbf16>, vector<4x128xbf16>, vector<256x128xf32> -> vector<256x128xf32>
    %22 = arith.addf %16, %21 : vector<256x128xf32>
    %23 = vector.extract_strided_slice %9 {offsets = [0, 2, 0], sizes = [16, 16, 4], strides = [1, 1, 1]} : vector<18x18x4xbf16> to vector<16x16x4xbf16>
    %24 = vector.shape_cast %23 : vector<16x16x4xbf16> to vector<256x4xbf16>
    %c2 = arith.constant 2 : index
    %c0_18 = arith.constant 0 : index
    %c0_19 = arith.constant 0 : index
    %25 = vector.load %arg5[%c2, %c0_18, %c0_19] : memref<9x4x128xbf16, #tpu.memory_space<vmem>>, vector<1x4x128xbf16>
    %26 = vector.shape_cast %25 : vector<1x4x128xbf16> to vector<4x128xbf16>
    %cst_20 = arith.constant dense<0.000000e+00> : vector<256x128xf32>
    %27 = tpu.matmul %24, %26, %cst_20 {dimension_numbers = #tpu.dot_dimension_numbers<[1], [0], [0], [1], [0, 0, 1, 1], [], []>} : vector<256x4xbf16>, vector<4x128xbf16>, vector<256x128xf32> -> vector<256x128xf32>
    %28 = arith.addf %22, %27 : vector<256x128xf32>
    %29 = vector.extract_strided_slice %9 {offsets = [1, 0, 0], sizes = [16, 16, 4], strides = [1, 1, 1]} : vector<18x18x4xbf16> to vector<16x16x4xbf16>
    %30 = vector.shape_cast %29 : vector<16x16x4xbf16> to vector<256x4xbf16>
    %c3 = arith.constant 3 : index
    %c0_21 = arith.constant 0 : index
    %c0_22 = arith.constant 0 : index
    %31 = vector.load %arg5[%c3, %c0_21, %c0_22] : memref<9x4x128xbf16, #tpu.memory_space<vmem>>, vector<1x4x128xbf16>
    %32 = vector.shape_cast %31 : vector<1x4x128xbf16> to vector<4x128xbf16>
    %cst_23 = arith.constant dense<0.000000e+00> : vector<256x128xf32>
    %33 = tpu.matmul %30, %32, %cst_23 {dimension_numbers = #tpu.dot_dimension_numbers<[1], [0], [0], [1], [0, 0, 1, 1], [], []>} : vector<256x4xbf16>, vector<4x128xbf16>, vector<256x128xf32> -> vector<256x128xf32>
    %34 = arith.addf %28, %33 : vector<256x128xf32>
    %35 = vector.extract_strided_slice %9 {offsets = [1, 1, 0], sizes = [16, 16, 4], strides = [1, 1, 1]} : vector<18x18x4xbf16> to vector<16x16x4xbf16>
    %36 = vector.shape_cast %35 : vector<16x16x4xbf16> to vector<256x4xbf16>
    %c4 = arith.constant 4 : index
    %c0_24 = arith.constant 0 : index
    %c0_25 = arith.constant 0 : index
    %37 = vector.load %arg5[%c4, %c0_24, %c0_25] : memref<9x4x128xbf16, #tpu.memory_space<vmem>>, vector<1x4x128xbf16>
    %38 = vector.shape_cast %37 : vector<1x4x128xbf16> to vector<4x128xbf16>
    %cst_26 = arith.constant dense<0.000000e+00> : vector<256x128xf32>
    %39 = tpu.matmul %36, %38, %cst_26 {dimension_numbers = #tpu.dot_dimension_numbers<[1], [0], [0], [1], [0, 0, 1, 1], [], []>} : vector<256x4xbf16>, vector<4x128xbf16>, vector<256x128xf32> -> vector<256x128xf32>
    %40 = arith.addf %34, %39 : vector<256x128xf32>
    %41 = vector.extract_strided_slice %9 {offsets = [1, 2, 0], sizes = [16, 16, 4], strides = [1, 1, 1]} : vector<18x18x4xbf16> to vector<16x16x4xbf16>
    %42 = vector.shape_cast %41 : vector<16x16x4xbf16> to vector<256x4xbf16>
    %c5 = arith.constant 5 : index
    %c0_27 = arith.constant 0 : index
    %c0_28 = arith.constant 0 : index
    %43 = vector.load %arg5[%c5, %c0_27, %c0_28] : memref<9x4x128xbf16, #tpu.memory_space<vmem>>, vector<1x4x128xbf16>
    %44 = vector.shape_cast %43 : vector<1x4x128xbf16> to vector<4x128xbf16>
    %cst_29 = arith.constant dense<0.000000e+00> : vector<256x128xf32>
    %45 = tpu.matmul %42, %44, %cst_29 {dimension_numbers = #tpu.dot_dimension_numbers<[1], [0], [0], [1], [0, 0, 1, 1], [], []>} : vector<256x4xbf16>, vector<4x128xbf16>, vector<256x128xf32> -> vector<256x128xf32>
    %46 = arith.addf %40, %45 : vector<256x128xf32>
    %47 = vector.extract_strided_slice %9 {offsets = [2, 0, 0], sizes = [16, 16, 4], strides = [1, 1, 1]} : vector<18x18x4xbf16> to vector<16x16x4xbf16>
    %48 = vector.shape_cast %47 : vector<16x16x4xbf16> to vector<256x4xbf16>
    %c6 = arith.constant 6 : index
    %c0_30 = arith.constant 0 : index
    %c0_31 = arith.constant 0 : index
    %49 = vector.load %arg5[%c6, %c0_30, %c0_31] : memref<9x4x128xbf16, #tpu.memory_space<vmem>>, vector<1x4x128xbf16>
    %50 = vector.shape_cast %49 : vector<1x4x128xbf16> to vector<4x128xbf16>
    %cst_32 = arith.constant dense<0.000000e+00> : vector<256x128xf32>
    %51 = tpu.matmul %48, %50, %cst_32 {dimension_numbers = #tpu.dot_dimension_numbers<[1], [0], [0], [1], [0, 0, 1, 1], [], []>} : vector<256x4xbf16>, vector<4x128xbf16>, vector<256x128xf32> -> vector<256x128xf32>
    %52 = arith.addf %46, %51 : vector<256x128xf32>
    %53 = vector.extract_strided_slice %9 {offsets = [2, 1, 0], sizes = [16, 16, 4], strides = [1, 1, 1]} : vector<18x18x4xbf16> to vector<16x16x4xbf16>
    %54 = vector.shape_cast %53 : vector<16x16x4xbf16> to vector<256x4xbf16>
    %c7 = arith.constant 7 : index
    %c0_33 = arith.constant 0 : index
    %c0_34 = arith.constant 0 : index
    %55 = vector.load %arg5[%c7, %c0_33, %c0_34] : memref<9x4x128xbf16, #tpu.memory_space<vmem>>, vector<1x4x128xbf16>
    %56 = vector.shape_cast %55 : vector<1x4x128xbf16> to vector<4x128xbf16>
    %cst_35 = arith.constant dense<0.000000e+00> : vector<256x128xf32>
    %57 = tpu.matmul %54, %56, %cst_35 {dimension_numbers = #tpu.dot_dimension_numbers<[1], [0], [0], [1], [0, 0, 1, 1], [], []>} : vector<256x4xbf16>, vector<4x128xbf16>, vector<256x128xf32> -> vector<256x128xf32>
    %58 = arith.addf %52, %57 : vector<256x128xf32>
    %59 = vector.extract_strided_slice %9 {offsets = [2, 2, 0], sizes = [16, 16, 4], strides = [1, 1, 1]} : vector<18x18x4xbf16> to vector<16x16x4xbf16>
    %60 = vector.shape_cast %59 : vector<16x16x4xbf16> to vector<256x4xbf16>
    %c8 = arith.constant 8 : index
    %c0_36 = arith.constant 0 : index
    %c0_37 = arith.constant 0 : index
    %61 = vector.load %arg5[%c8, %c0_36, %c0_37] : memref<9x4x128xbf16, #tpu.memory_space<vmem>>, vector<1x4x128xbf16>
    %62 = vector.shape_cast %61 : vector<1x4x128xbf16> to vector<4x128xbf16>
    %cst_38 = arith.constant dense<0.000000e+00> : vector<256x128xf32>
    %63 = tpu.matmul %60, %62, %cst_38 {dimension_numbers = #tpu.dot_dimension_numbers<[1], [0], [0], [1], [0, 0, 1, 1], [], []>} : vector<256x4xbf16>, vector<4x128xbf16>, vector<256x128xf32> -> vector<256x128xf32>
    %64 = arith.addf %58, %63 : vector<256x128xf32>
    %65 = vector.shape_cast %64 : vector<256x128xf32> to vector<1x16x16x128xf32>
    %66 = arith.truncf %65 : vector<1x16x16x128xf32> to vector<1x16x16x128xbf16>
    %c0_39 = arith.constant 0 : index
    %c0_40 = arith.constant 0 : index
    %c0_41 = arith.constant 0 : index
    %c0_42 = arith.constant 0 : index
    %67 = vector.load %arg8[%c0_39, %c0_40, %c0_41, %c0_42] : memref<1x16x16x128xbf16, #tpu.memory_space<vmem>>, vector<1x16x16x128xbf16>
    tpu.vector_store %arg8[%c0_39, %c0_40, %c0_41, %c0_42], %66 {strides = array<i32>} : memref<1x16x16x128xbf16, #tpu.memory_space<vmem>>, vector<1x16x16x128xbf16>,
    %cst_43 = arith.constant dense<0.000000e+00> : vector<128xf32>
    %68 = vector.multi_reduction <add>, %64, %cst_43 [0] : vector<256x128xf32> to vector<128xf32>
    %69 = vector.shape_cast %68 : vector<128xf32> to vector<1x128xf32>
    %70 = arith.mulf %64, %64 : vector<256x128xf32>
    %cst_44 = arith.constant dense<0.000000e+00> : vector<128xf32>
    %71 = vector.multi_reduction <add>, %70, %cst_44 [0] : vector<256x128xf32> to vector<128xf32>
    %72 = vector.shape_cast %71 : vector<128xf32> to vector<1x128xf32>
    %73 = tpu.concatenate %69, %72 in 0 : vector<1x128xf32>, vector<1x128xf32> -> vector<2x128xf32>
    %74 = vector.shape_cast %73 : vector<2x128xf32> to vector<1x1x2x128xf32>
    %c0_45 = arith.constant 0 : index
    %c0_46 = arith.constant 0 : index
    %c0_47 = arith.constant 0 : index
    %c0_48 = arith.constant 0 : index
    %75 = vector.load %arg9[%c0_45, %c0_46, %c0_47, %c0_48] : memref<1x1x2x128xf32, #tpu.memory_space<vmem>>, vector<1x1x2x128xf32>
    tpu.vector_store %arg9[%c0_45, %c0_46, %c0_47, %c0_48], %74 {strides = array<i32>} : memref<1x1x2x128xf32, #tpu.memory_space<vmem>>, vector<1x1x2x128xf32>,
    return
  }
  func.func @transform_0(%arg0: i32, %arg1: i32) -> (i32, i32, i32, i32) {
    %c0_i32 = arith.constant 0 : i32
    %c0_i32_0 = arith.constant 0 : i32
    %c0_i32_1 = arith.constant 0 : i32
    return %arg0, %arg1, %c0_i32, %c0_i32_0 : i32, i32, i32, i32
  }
  func.func @transform_1(%arg0: i32, %arg1: i32) -> (i32, i32, i32, i32) {
    %c16_i32 = arith.constant 16 : i32
    %0 = arith.muli %arg1, %c16_i32 : i32
    %c1_i32 = arith.constant 1 : i32
    %1 = arith.subi %0, %c1_i32 : i32
    %c0_i32 = arith.constant 0 : i32
    %2 = arith.addi %1, %c0_i32 : i32
    %c0_i32_0 = arith.constant 0 : i32
    %3 = arith.maxsi %2, %c0_i32_0 : i32
    %c0_i32_1 = arith.constant 0 : i32
    %c0_i32_2 = arith.constant 0 : i32
    %c0_i32_3 = arith.constant 0 : i32
    return %arg0, %3, %c0_i32_1, %c0_i32_2 : i32, i32, i32, i32
  }
  func.func @transform_2(%arg0: i32, %arg1: i32) -> (i32, i32, i32, i32) {
    %c16_i32 = arith.constant 16 : i32
    %0 = arith.muli %arg1, %c16_i32 : i32
    %c16_i32_0 = arith.constant 16 : i32
    %1 = arith.addi %0, %c16_i32_0 : i32
    %c0_i32 = arith.constant 0 : i32
    %2 = arith.addi %1, %c0_i32 : i32
    %c15_i32 = arith.constant 15 : i32
    %3 = arith.minsi %2, %c15_i32 : i32
    %c0_i32_1 = arith.constant 0 : i32
    %c0_i32_2 = arith.constant 0 : i32
    %c0_i32_3 = arith.constant 0 : i32
    return %arg0, %3, %c0_i32_1, %c0_i32_2 : i32, i32, i32, i32
  }
  func.func @transform_3(%arg0: i32, %arg1: i32) -> (i32, i32, i32) {
    %c0_i32 = arith.constant 0 : i32
    %c0_i32_0 = arith.constant 0 : i32
    %c0_i32_1 = arith.constant 0 : i32
    %c0_i32_2 = arith.constant 0 : i32
    return %c0_i32, %c0_i32_0, %c0_i32_1 : i32, i32, i32
  }
  func.func @transform_4(%arg0: i32, %arg1: i32) -> (i32, i32) {
    %c0_i32 = arith.constant 0 : i32
    %c0_i32_0 = arith.constant 0 : i32
    %c0_i32_1 = arith.constant 0 : i32
    return %c0_i32, %c0_i32_0 : i32, i32
  }
  func.func @transform_5(%arg0: i32, %arg1: i32) -> (i32, i32) {
    %c0_i32 = arith.constant 0 : i32
    %c0_i32_0 = arith.constant 0 : i32
    %c0_i32_1 = arith.constant 0 : i32
    return %c0_i32, %c0_i32_0 : i32, i32
  }
  func.func @transform_6(%arg0: i32, %arg1: i32) -> (i32, i32, i32, i32) {
    %c0_i32 = arith.constant 0 : i32
    %c0_i32_0 = arith.constant 0 : i32
    %c0_i32_1 = arith.constant 0 : i32
    return %arg0, %arg1, %c0_i32, %c0_i32_0 : i32, i32, i32, i32
  }
  func.func @transform_7(%arg0: i32, %arg1: i32) -> (i32, i32, i32, i32) {
    %c0_i32 = arith.constant 0 : i32
    %c0_i32_0 = arith.constant 0 : i32
    %c0_i32_1 = arith.constant 0 : i32
    return %arg0, %arg1, %c0_i32, %c0_i32_0 : i32, i32, i32, i32
  }
}

module attributes {stable_mosaic.version = 11 : i64} {
  func.func @conv_stats_kernel(%arg0: i32, %arg1: i32, %arg2: memref<1x16x16x128xbf16, #tpu.memory_space<vmem>>, %arg3: memref<1x1x16x128xbf16, #tpu.memory_space<vmem>>, %arg4: memref<1x1x16x128xbf16, #tpu.memory_space<vmem>>, %arg5: memref<9x128x128xbf16, #tpu.memory_space<vmem>>, %arg6: memref<1x128xf32, #tpu.memory_space<vmem>>, %arg7: memref<1x128xf32, #tpu.memory_space<vmem>>, %arg8: memref<1x16x16x128xbf16, #tpu.memory_space<vmem>>, %arg9: memref<1x1x2x128xf32, #tpu.memory_space<vmem>>) attributes {dimension_semantics = [#tpu.dimension_semantics<parallel>, #tpu.dimension_semantics<parallel>], iteration_bounds = array<i64: 2, 1>, scalar_prefetch = 0 : i64, scratch_operands = 0 : i64, tpu.core_type = #tpu.core_type<tc>, window_params = [{transform_indices = @transform_0, window_bounds = array<i64: 1, 16, 16, 128>}, {transform_indices = @transform_1, window_bounds = array<i64: 1, 1, 16, 128>}, {transform_indices = @transform_2, window_bounds = array<i64: 1, 1, 16, 128>}, {pipeline_mode = #tpu.pipeline_mode<synchronous>, transform_indices = @transform_3, window_bounds = array<i64: 9, 128, 128>}, {pipeline_mode = #tpu.pipeline_mode<synchronous>, transform_indices = @transform_4, window_bounds = array<i64: 1, 128>}, {pipeline_mode = #tpu.pipeline_mode<synchronous>, transform_indices = @transform_5, window_bounds = array<i64: 1, 128>}, {transform_indices = @transform_6, window_bounds = array<i64: 1, 16, 16, 128>}, {transform_indices = @transform_7, window_bounds = array<i64: 1, 1, 2, 128>}]} {
    %c0 = arith.constant 0 : index
    %c0_0 = arith.constant 0 : index
    %c0_1 = arith.constant 0 : index
    %c0_2 = arith.constant 0 : index
    %0 = vector.load %arg3[%c0, %c0_0, %c0_1, %c0_2] : memref<1x1x16x128xbf16, #tpu.memory_space<vmem>>, vector<1x1x16x128xbf16>
    %1 = vector.shape_cast %0 : vector<1x1x16x128xbf16> to vector<1x16x128xbf16>
    %c0_3 = arith.constant 0 : index
    %c0_4 = arith.constant 0 : index
    %c0_5 = arith.constant 0 : index
    %c0_6 = arith.constant 0 : index
    %2 = vector.load %arg4[%c0_3, %c0_4, %c0_5, %c0_6] : memref<1x1x16x128xbf16, #tpu.memory_space<vmem>>, vector<1x1x16x128xbf16>
    %3 = vector.shape_cast %2 : vector<1x1x16x128xbf16> to vector<1x16x128xbf16>
    %c0_7 = arith.constant 0 : index
    %c0_8 = arith.constant 0 : index
    %c0_9 = arith.constant 0 : index
    %c0_10 = arith.constant 0 : index
    %4 = vector.load %arg2[%c0_7, %c0_8, %c0_9, %c0_10] : memref<1x16x16x128xbf16, #tpu.memory_space<vmem>>, vector<1x16x16x128xbf16>
    %5 = vector.shape_cast %4 : vector<1x16x16x128xbf16> to vector<16x16x128xbf16>
    %6 = tpu.concatenate %1, %5, %3 in 0 : vector<1x16x128xbf16>, vector<16x16x128xbf16>, vector<1x16x128xbf16> -> vector<18x16x128xbf16>
    %7 = arith.extf %6 : vector<18x16x128xbf16> to vector<18x16x128xf32>
    %c0_11 = arith.constant 0 : index
    %c0_12 = arith.constant 0 : index
    %8 = vector.load %arg6[%c0_11, %c0_12] : memref<1x128xf32, #tpu.memory_space<vmem>>, vector<1x128xf32>
    %9 = vector.shape_cast %8 : vector<1x128xf32> to vector<1x1x128xf32>
    %10 = vector.broadcast %9 : vector<1x1x128xf32> to vector<18x16x128xf32>
    %11 = arith.mulf %7, %10 : vector<18x16x128xf32>
    %c0_13 = arith.constant 0 : index
    %c0_14 = arith.constant 0 : index
    %12 = vector.load %arg7[%c0_13, %c0_14] : memref<1x128xf32, #tpu.memory_space<vmem>>, vector<1x128xf32>
    %13 = vector.shape_cast %12 : vector<1x128xf32> to vector<1x1x128xf32>
    %14 = vector.broadcast %13 : vector<1x1x128xf32> to vector<18x16x128xf32>
    %15 = arith.addf %11, %14 : vector<18x16x128xf32>
    %cst = arith.constant 0.000000e+00 : f32
    %16 = vector.broadcast %cst : f32 to vector<18x16x128xf32>
    %17 = arith.maximumf %15, %16 : vector<18x16x128xf32>
    %18 = arith.truncf %17 : vector<18x16x128xf32> to vector<18x16x128xbf16>
    %19 = vector.extract_strided_slice %18 {offsets = [0, 0, 0], sizes = [18, 1, 128], strides = [1, 1, 1]} : vector<18x16x128xbf16> to vector<18x1x128xbf16>
    %20 = vector.extract_strided_slice %18 {offsets = [0, 15, 0], sizes = [18, 1, 128], strides = [1, 1, 1]} : vector<18x16x128xbf16> to vector<18x1x128xbf16>
    %21 = tpu.concatenate %19, %18, %20 in 1 : vector<18x1x128xbf16>, vector<18x16x128xbf16>, vector<18x1x128xbf16> -> vector<18x18x128xbf16>
    %cst_15 = arith.constant 0.000000e+00 : f32
    %22 = vector.broadcast %cst_15 : f32 to vector<256x128xf32>
    %23 = vector.extract_strided_slice %21 {offsets = [0, 0, 0], sizes = [16, 16, 128], strides = [1, 1, 1]} : vector<18x18x128xbf16> to vector<16x16x128xbf16>
    %24 = vector.shape_cast %23 : vector<16x16x128xbf16> to vector<256x128xbf16>
    %c0_16 = arith.constant 0 : index
    %c0_17 = arith.constant 0 : index
    %c0_18 = arith.constant 0 : index
    %25 = vector.load %arg5[%c0_16, %c0_17, %c0_18] : memref<9x128x128xbf16, #tpu.memory_space<vmem>>, vector<1x128x128xbf16>
    %26 = vector.shape_cast %25 : vector<1x128x128xbf16> to vector<128x128xbf16>
    %cst_19 = arith.constant dense<0.000000e+00> : vector<256x128xf32>
    %27 = tpu.matmul %24, %26, %cst_19 {dimension_numbers = #tpu.dot_dimension_numbers<[1], [0], [0], [1], [0, 0, 1, 1], [], []>} : vector<256x128xbf16>, vector<128x128xbf16>, vector<256x128xf32> -> vector<256x128xf32>
    %28 = arith.addf %22, %27 : vector<256x128xf32>
    %29 = vector.extract_strided_slice %21 {offsets = [0, 1, 0], sizes = [16, 16, 128], strides = [1, 1, 1]} : vector<18x18x128xbf16> to vector<16x16x128xbf16>
    %30 = vector.shape_cast %29 : vector<16x16x128xbf16> to vector<256x128xbf16>
    %c1 = arith.constant 1 : index
    %c0_20 = arith.constant 0 : index
    %c0_21 = arith.constant 0 : index
    %31 = vector.load %arg5[%c1, %c0_20, %c0_21] : memref<9x128x128xbf16, #tpu.memory_space<vmem>>, vector<1x128x128xbf16>
    %32 = vector.shape_cast %31 : vector<1x128x128xbf16> to vector<128x128xbf16>
    %cst_22 = arith.constant dense<0.000000e+00> : vector<256x128xf32>
    %33 = tpu.matmul %30, %32, %cst_22 {dimension_numbers = #tpu.dot_dimension_numbers<[1], [0], [0], [1], [0, 0, 1, 1], [], []>} : vector<256x128xbf16>, vector<128x128xbf16>, vector<256x128xf32> -> vector<256x128xf32>
    %34 = arith.addf %28, %33 : vector<256x128xf32>
    %35 = vector.extract_strided_slice %21 {offsets = [0, 2, 0], sizes = [16, 16, 128], strides = [1, 1, 1]} : vector<18x18x128xbf16> to vector<16x16x128xbf16>
    %36 = vector.shape_cast %35 : vector<16x16x128xbf16> to vector<256x128xbf16>
    %c2 = arith.constant 2 : index
    %c0_23 = arith.constant 0 : index
    %c0_24 = arith.constant 0 : index
    %37 = vector.load %arg5[%c2, %c0_23, %c0_24] : memref<9x128x128xbf16, #tpu.memory_space<vmem>>, vector<1x128x128xbf16>
    %38 = vector.shape_cast %37 : vector<1x128x128xbf16> to vector<128x128xbf16>
    %cst_25 = arith.constant dense<0.000000e+00> : vector<256x128xf32>
    %39 = tpu.matmul %36, %38, %cst_25 {dimension_numbers = #tpu.dot_dimension_numbers<[1], [0], [0], [1], [0, 0, 1, 1], [], []>} : vector<256x128xbf16>, vector<128x128xbf16>, vector<256x128xf32> -> vector<256x128xf32>
    %40 = arith.addf %34, %39 : vector<256x128xf32>
    %41 = vector.extract_strided_slice %21 {offsets = [1, 0, 0], sizes = [16, 16, 128], strides = [1, 1, 1]} : vector<18x18x128xbf16> to vector<16x16x128xbf16>
    %42 = vector.shape_cast %41 : vector<16x16x128xbf16> to vector<256x128xbf16>
    %c3 = arith.constant 3 : index
    %c0_26 = arith.constant 0 : index
    %c0_27 = arith.constant 0 : index
    %43 = vector.load %arg5[%c3, %c0_26, %c0_27] : memref<9x128x128xbf16, #tpu.memory_space<vmem>>, vector<1x128x128xbf16>
    %44 = vector.shape_cast %43 : vector<1x128x128xbf16> to vector<128x128xbf16>
    %cst_28 = arith.constant dense<0.000000e+00> : vector<256x128xf32>
    %45 = tpu.matmul %42, %44, %cst_28 {dimension_numbers = #tpu.dot_dimension_numbers<[1], [0], [0], [1], [0, 0, 1, 1], [], []>} : vector<256x128xbf16>, vector<128x128xbf16>, vector<256x128xf32> -> vector<256x128xf32>
    %46 = arith.addf %40, %45 : vector<256x128xf32>
    %47 = vector.extract_strided_slice %21 {offsets = [1, 1, 0], sizes = [16, 16, 128], strides = [1, 1, 1]} : vector<18x18x128xbf16> to vector<16x16x128xbf16>
    %48 = vector.shape_cast %47 : vector<16x16x128xbf16> to vector<256x128xbf16>
    %c4 = arith.constant 4 : index
    %c0_29 = arith.constant 0 : index
    %c0_30 = arith.constant 0 : index
    %49 = vector.load %arg5[%c4, %c0_29, %c0_30] : memref<9x128x128xbf16, #tpu.memory_space<vmem>>, vector<1x128x128xbf16>
    %50 = vector.shape_cast %49 : vector<1x128x128xbf16> to vector<128x128xbf16>
    %cst_31 = arith.constant dense<0.000000e+00> : vector<256x128xf32>
    %51 = tpu.matmul %48, %50, %cst_31 {dimension_numbers = #tpu.dot_dimension_numbers<[1], [0], [0], [1], [0, 0, 1, 1], [], []>} : vector<256x128xbf16>, vector<128x128xbf16>, vector<256x128xf32> -> vector<256x128xf32>
    %52 = arith.addf %46, %51 : vector<256x128xf32>
    %53 = vector.extract_strided_slice %21 {offsets = [1, 2, 0], sizes = [16, 16, 128], strides = [1, 1, 1]} : vector<18x18x128xbf16> to vector<16x16x128xbf16>
    %54 = vector.shape_cast %53 : vector<16x16x128xbf16> to vector<256x128xbf16>
    %c5 = arith.constant 5 : index
    %c0_32 = arith.constant 0 : index
    %c0_33 = arith.constant 0 : index
    %55 = vector.load %arg5[%c5, %c0_32, %c0_33] : memref<9x128x128xbf16, #tpu.memory_space<vmem>>, vector<1x128x128xbf16>
    %56 = vector.shape_cast %55 : vector<1x128x128xbf16> to vector<128x128xbf16>
    %cst_34 = arith.constant dense<0.000000e+00> : vector<256x128xf32>
    %57 = tpu.matmul %54, %56, %cst_34 {dimension_numbers = #tpu.dot_dimension_numbers<[1], [0], [0], [1], [0, 0, 1, 1], [], []>} : vector<256x128xbf16>, vector<128x128xbf16>, vector<256x128xf32> -> vector<256x128xf32>
    %58 = arith.addf %52, %57 : vector<256x128xf32>
    %59 = vector.extract_strided_slice %21 {offsets = [2, 0, 0], sizes = [16, 16, 128], strides = [1, 1, 1]} : vector<18x18x128xbf16> to vector<16x16x128xbf16>
    %60 = vector.shape_cast %59 : vector<16x16x128xbf16> to vector<256x128xbf16>
    %c6 = arith.constant 6 : index
    %c0_35 = arith.constant 0 : index
    %c0_36 = arith.constant 0 : index
    %61 = vector.load %arg5[%c6, %c0_35, %c0_36] : memref<9x128x128xbf16, #tpu.memory_space<vmem>>, vector<1x128x128xbf16>
    %62 = vector.shape_cast %61 : vector<1x128x128xbf16> to vector<128x128xbf16>
    %cst_37 = arith.constant dense<0.000000e+00> : vector<256x128xf32>
    %63 = tpu.matmul %60, %62, %cst_37 {dimension_numbers = #tpu.dot_dimension_numbers<[1], [0], [0], [1], [0, 0, 1, 1], [], []>} : vector<256x128xbf16>, vector<128x128xbf16>, vector<256x128xf32> -> vector<256x128xf32>
    %64 = arith.addf %58, %63 : vector<256x128xf32>
    %65 = vector.extract_strided_slice %21 {offsets = [2, 1, 0], sizes = [16, 16, 128], strides = [1, 1, 1]} : vector<18x18x128xbf16> to vector<16x16x128xbf16>
    %66 = vector.shape_cast %65 : vector<16x16x128xbf16> to vector<256x128xbf16>
    %c7 = arith.constant 7 : index
    %c0_38 = arith.constant 0 : index
    %c0_39 = arith.constant 0 : index
    %67 = vector.load %arg5[%c7, %c0_38, %c0_39] : memref<9x128x128xbf16, #tpu.memory_space<vmem>>, vector<1x128x128xbf16>
    %68 = vector.shape_cast %67 : vector<1x128x128xbf16> to vector<128x128xbf16>
    %cst_40 = arith.constant dense<0.000000e+00> : vector<256x128xf32>
    %69 = tpu.matmul %66, %68, %cst_40 {dimension_numbers = #tpu.dot_dimension_numbers<[1], [0], [0], [1], [0, 0, 1, 1], [], []>} : vector<256x128xbf16>, vector<128x128xbf16>, vector<256x128xf32> -> vector<256x128xf32>
    %70 = arith.addf %64, %69 : vector<256x128xf32>
    %71 = vector.extract_strided_slice %21 {offsets = [2, 2, 0], sizes = [16, 16, 128], strides = [1, 1, 1]} : vector<18x18x128xbf16> to vector<16x16x128xbf16>
    %72 = vector.shape_cast %71 : vector<16x16x128xbf16> to vector<256x128xbf16>
    %c8 = arith.constant 8 : index
    %c0_41 = arith.constant 0 : index
    %c0_42 = arith.constant 0 : index
    %73 = vector.load %arg5[%c8, %c0_41, %c0_42] : memref<9x128x128xbf16, #tpu.memory_space<vmem>>, vector<1x128x128xbf16>
    %74 = vector.shape_cast %73 : vector<1x128x128xbf16> to vector<128x128xbf16>
    %cst_43 = arith.constant dense<0.000000e+00> : vector<256x128xf32>
    %75 = tpu.matmul %72, %74, %cst_43 {dimension_numbers = #tpu.dot_dimension_numbers<[1], [0], [0], [1], [0, 0, 1, 1], [], []>} : vector<256x128xbf16>, vector<128x128xbf16>, vector<256x128xf32> -> vector<256x128xf32>
    %76 = arith.addf %70, %75 : vector<256x128xf32>
    %77 = vector.shape_cast %76 : vector<256x128xf32> to vector<1x16x16x128xf32>
    %78 = arith.truncf %77 : vector<1x16x16x128xf32> to vector<1x16x16x128xbf16>
    %c0_44 = arith.constant 0 : index
    %c0_45 = arith.constant 0 : index
    %c0_46 = arith.constant 0 : index
    %c0_47 = arith.constant 0 : index
    %79 = vector.load %arg8[%c0_44, %c0_45, %c0_46, %c0_47] : memref<1x16x16x128xbf16, #tpu.memory_space<vmem>>, vector<1x16x16x128xbf16>
    tpu.vector_store %arg8[%c0_44, %c0_45, %c0_46, %c0_47], %78 {strides = array<i32>} : memref<1x16x16x128xbf16, #tpu.memory_space<vmem>>, vector<1x16x16x128xbf16>,
    %cst_48 = arith.constant dense<0.000000e+00> : vector<128xf32>
    %80 = vector.multi_reduction <add>, %76, %cst_48 [0] : vector<256x128xf32> to vector<128xf32>
    %81 = vector.shape_cast %80 : vector<128xf32> to vector<1x128xf32>
    %82 = arith.mulf %76, %76 : vector<256x128xf32>
    %cst_49 = arith.constant dense<0.000000e+00> : vector<128xf32>
    %83 = vector.multi_reduction <add>, %82, %cst_49 [0] : vector<256x128xf32> to vector<128xf32>
    %84 = vector.shape_cast %83 : vector<128xf32> to vector<1x128xf32>
    %85 = tpu.concatenate %81, %84 in 0 : vector<1x128xf32>, vector<1x128xf32> -> vector<2x128xf32>
    %86 = vector.shape_cast %85 : vector<2x128xf32> to vector<1x1x2x128xf32>
    %c0_50 = arith.constant 0 : index
    %c0_51 = arith.constant 0 : index
    %c0_52 = arith.constant 0 : index
    %c0_53 = arith.constant 0 : index
    %87 = vector.load %arg9[%c0_50, %c0_51, %c0_52, %c0_53] : memref<1x1x2x128xf32, #tpu.memory_space<vmem>>, vector<1x1x2x128xf32>
    tpu.vector_store %arg9[%c0_50, %c0_51, %c0_52, %c0_53], %86 {strides = array<i32>} : memref<1x1x2x128xf32, #tpu.memory_space<vmem>>, vector<1x1x2x128xf32>,
    return
  }
  func.func @transform_0(%arg0: i32, %arg1: i32) -> (i32, i32, i32, i32) {
    %c0_i32 = arith.constant 0 : i32
    %c0_i32_0 = arith.constant 0 : i32
    %c0_i32_1 = arith.constant 0 : i32
    return %arg0, %arg1, %c0_i32, %c0_i32_0 : i32, i32, i32, i32
  }
  func.func @transform_1(%arg0: i32, %arg1: i32) -> (i32, i32, i32, i32) {
    %c16_i32 = arith.constant 16 : i32
    %0 = arith.muli %arg1, %c16_i32 : i32
    %c1_i32 = arith.constant 1 : i32
    %1 = arith.subi %0, %c1_i32 : i32
    %c0_i32 = arith.constant 0 : i32
    %2 = arith.addi %1, %c0_i32 : i32
    %c0_i32_0 = arith.constant 0 : i32
    %3 = arith.maxsi %2, %c0_i32_0 : i32
    %c0_i32_1 = arith.constant 0 : i32
    %c0_i32_2 = arith.constant 0 : i32
    %c0_i32_3 = arith.constant 0 : i32
    return %arg0, %3, %c0_i32_1, %c0_i32_2 : i32, i32, i32, i32
  }
  func.func @transform_2(%arg0: i32, %arg1: i32) -> (i32, i32, i32, i32) {
    %c16_i32 = arith.constant 16 : i32
    %0 = arith.muli %arg1, %c16_i32 : i32
    %c16_i32_0 = arith.constant 16 : i32
    %1 = arith.addi %0, %c16_i32_0 : i32
    %c0_i32 = arith.constant 0 : i32
    %2 = arith.addi %1, %c0_i32 : i32
    %c15_i32 = arith.constant 15 : i32
    %3 = arith.minsi %2, %c15_i32 : i32
    %c0_i32_1 = arith.constant 0 : i32
    %c0_i32_2 = arith.constant 0 : i32
    %c0_i32_3 = arith.constant 0 : i32
    return %arg0, %3, %c0_i32_1, %c0_i32_2 : i32, i32, i32, i32
  }
  func.func @transform_3(%arg0: i32, %arg1: i32) -> (i32, i32, i32) {
    %c0_i32 = arith.constant 0 : i32
    %c0_i32_0 = arith.constant 0 : i32
    %c0_i32_1 = arith.constant 0 : i32
    %c0_i32_2 = arith.constant 0 : i32
    return %c0_i32, %c0_i32_0, %c0_i32_1 : i32, i32, i32
  }
  func.func @transform_4(%arg0: i32, %arg1: i32) -> (i32, i32) {
    %c0_i32 = arith.constant 0 : i32
    %c0_i32_0 = arith.constant 0 : i32
    %c0_i32_1 = arith.constant 0 : i32
    return %c0_i32, %c0_i32_0 : i32, i32
  }
  func.func @transform_5(%arg0: i32, %arg1: i32) -> (i32, i32) {
    %c0_i32 = arith.constant 0 : i32
    %c0_i32_0 = arith.constant 0 : i32
    %c0_i32_1 = arith.constant 0 : i32
    return %c0_i32, %c0_i32_0 : i32, i32
  }
  func.func @transform_6(%arg0: i32, %arg1: i32) -> (i32, i32, i32, i32) {
    %c0_i32 = arith.constant 0 : i32
    %c0_i32_0 = arith.constant 0 : i32
    %c0_i32_1 = arith.constant 0 : i32
    return %arg0, %arg1, %c0_i32, %c0_i32_0 : i32, i32, i32, i32
  }
  func.func @transform_7(%arg0: i32, %arg1: i32) -> (i32, i32, i32, i32) {
    %c0_i32 = arith.constant 0 : i32
    %c0_i32_0 = arith.constant 0 : i32
    %c0_i32_1 = arith.constant 0 : i32
    return %arg0, %arg1, %c0_i32, %c0_i32_0 : i32, i32, i32, i32
  }
}

module attributes {stable_mosaic.version = 11 : i64} {
  func.func @bn_relu_kernel(%arg0: i32, %arg1: i32, %arg2: memref<1x16x16x128xbf16, #tpu.memory_space<vmem>>, %arg3: memref<1x8xf32, #tpu.memory_space<vmem>>, %arg4: memref<1x8xf32, #tpu.memory_space<vmem>>, %arg5: memref<1x16x16x8xf32, #tpu.memory_space<vmem>>) attributes {dimension_semantics = [#tpu.dimension_semantics<parallel>, #tpu.dimension_semantics<parallel>], iteration_bounds = array<i64: 2, 1>, scalar_prefetch = 0 : i64, scratch_operands = 0 : i64, tpu.core_type = #tpu.core_type<tc>, window_params = [{transform_indices = @transform_0, window_bounds = array<i64: 1, 16, 16, 128>}, {pipeline_mode = #tpu.pipeline_mode<synchronous>, transform_indices = @transform_1, window_bounds = array<i64: 1, 8>}, {pipeline_mode = #tpu.pipeline_mode<synchronous>, transform_indices = @transform_2, window_bounds = array<i64: 1, 8>}, {transform_indices = @transform_3, window_bounds = array<i64: 1, 16, 16, 8>}]} {
    %c0 = arith.constant 0 : index
    %c0_0 = arith.constant 0 : index
    %c0_1 = arith.constant 0 : index
    %c0_2 = arith.constant 0 : index
    %0 = vector.load %arg2[%c0, %c0_0, %c0_1, %c0_2] : memref<1x16x16x128xbf16, #tpu.memory_space<vmem>>, vector<1x16x16x128xbf16>
    %1 = vector.extract_strided_slice %0 {offsets = [0, 0, 0, 0], sizes = [1, 16, 16, 8], strides = [1, 1, 1, 1]} : vector<1x16x16x128xbf16> to vector<1x16x16x8xbf16>
    %2 = arith.extf %1 : vector<1x16x16x8xbf16> to vector<1x16x16x8xf32>
    %c0_3 = arith.constant 0 : index
    %c0_4 = arith.constant 0 : index
    %3 = vector.load %arg3[%c0_3, %c0_4] : memref<1x8xf32, #tpu.memory_space<vmem>>, vector<1x8xf32>
    %4 = vector.shape_cast %3 : vector<1x8xf32> to vector<1x1x1x8xf32>
    %5 = vector.broadcast %4 : vector<1x1x1x8xf32> to vector<1x16x16x8xf32>
    %6 = arith.mulf %2, %5 : vector<1x16x16x8xf32>
    %c0_5 = arith.constant 0 : index
    %c0_6 = arith.constant 0 : index
    %7 = vector.load %arg4[%c0_5, %c0_6] : memref<1x8xf32, #tpu.memory_space<vmem>>, vector<1x8xf32>
    %8 = vector.shape_cast %7 : vector<1x8xf32> to vector<1x1x1x8xf32>
    %9 = vector.broadcast %8 : vector<1x1x1x8xf32> to vector<1x16x16x8xf32>
    %10 = arith.addf %6, %9 : vector<1x16x16x8xf32>
    %cst = arith.constant 0.000000e+00 : f32
    %11 = vector.broadcast %cst : f32 to vector<1x16x16x8xf32>
    %12 = arith.maximumf %10, %11 : vector<1x16x16x8xf32>
    %c0_7 = arith.constant 0 : index
    %c0_8 = arith.constant 0 : index
    %c0_9 = arith.constant 0 : index
    %c0_10 = arith.constant 0 : index
    %13 = vector.load %arg5[%c0_7, %c0_8, %c0_9, %c0_10] : memref<1x16x16x8xf32, #tpu.memory_space<vmem>>, vector<1x16x16x8xf32>
    tpu.vector_store %arg5[%c0_7, %c0_8, %c0_9, %c0_10], %12 {strides = array<i32>} : memref<1x16x16x8xf32, #tpu.memory_space<vmem>>, vector<1x16x16x8xf32>,
    return
  }
  func.func @transform_0(%arg0: i32, %arg1: i32) -> (i32, i32, i32, i32) {
    %c0_i32 = arith.constant 0 : i32
    %c0_i32_0 = arith.constant 0 : i32
    %c0_i32_1 = arith.constant 0 : i32
    return %arg0, %arg1, %c0_i32, %c0_i32_0 : i32, i32, i32, i32
  }
  func.func @transform_1(%arg0: i32, %arg1: i32) -> (i32, i32) {
    %c0_i32 = arith.constant 0 : i32
    %c0_i32_0 = arith.constant 0 : i32
    %c0_i32_1 = arith.constant 0 : i32
    return %c0_i32, %c0_i32_0 : i32, i32
  }
  func.func @transform_2(%arg0: i32, %arg1: i32) -> (i32, i32) {
    %c0_i32 = arith.constant 0 : i32
    %c0_i32_0 = arith.constant 0 : i32
    %c0_i32_1 = arith.constant 0 : i32
    return %c0_i32, %c0_i32_0 : i32, i32
  }
  func.func @transform_3(%arg0: i32, %arg1: i32) -> (i32, i32, i32, i32) {
    %c0_i32 = arith.constant 0 : i32
    %c0_i32_0 = arith.constant 0 : i32
    %c0_i32_1 = arith.constant 0 : i32
    return %arg0, %arg1, %c0_i32, %c0_i32_0 : i32, i32, i32, i32
  }
}

</mosaic_0001>

<bundles_post_ra>
// kernel: double_conv.5
= control target key start
LH: loop header
LB: loop body
LE: loop exit
PB: predicated region body
PF: predicated region fallthrough
CT: control target
= control target key end

     0   :  { %s680_s12 = smov 0   ;;  %s682_s13 = smov 0   ;;  %s875_s0 = inlined_call_operand.vmem [shape: bf16[2,16,16,128], index: 0, kind: input, shape index: {}]   ;;  %s876_s1 = inlined_call_operand.vmem [shape: f32[1,8], index: 1, kind: input, shape index: {}]   ;;  %s877_s2 = inlined_call_operand.vmem [shape: f32[1,8], index: 2, kind: input, shape index: {}]   ;;  %s878_s3 = inlined_call_operand.vmem [shape: f32[2,16,16,8], index: 3, kind: output, shape index: {}]  }
   0x1   :  { %s684_s14 = smov 0  }
   0x2 LB: > { %s25_s15 = sadd.s32 1, %s654_s13  ;;  %p522_p0 = scmp.ge.s32.totalorder %s658_s14, 1  ;;  %s658_s14 = sphi %s684_s14, %s13_s14   ;;  %s654_s13 = sphi %s682_s13, %s880_s13   ;;  %s650_s12 = sphi %s680_s12, %s879_s12  }
   0x3   : > { %p27_p1 = scmp.ge.s32.totalorder %s25_s15, 2  ;;  %p159_p2 = scmp.lt.s32.totalorder %s658_s14, 3 }
   0x5   : > { %s882_s15 = smov (%p27_p1, %s25_s15), 0  ;;  %p160_p3 = pnand %p522_p0, %p159_p2 }
   0x6   : > { %p194_p4 = scmp.lt.s32.totalorder (!%p160_p3), %s650_s12, 1 }
   0x7   : > { %163 = sbr.rel (%p160_p3) target bundleno = 52 (0x34), region = 32 }
   0xc   : > { %s884_s12 = smov (!%p194_p4, %s650_s12), 1  ;;  %v709_v0 = vld [vmem:[%s876_s1] ss:$0 sm:$0xff]  ;;  %vm389_vm0 = vcmask 64512  }
   0xd   : > { %s531_s16 = sshll.u32 %s884_s12, 7  ;;  %v718_v9 = vld [vmem:[%s877_s2] ss:$0 sm:$0xff]  ;;  %s532_s24 = sshll.u32 %s884_s12, 8 }
   0xe   : > { %s704_s19 = scalar_lea.vmem %s875_s0, %s531_s16  ;;  %s736_s27 = scalar_lea.vmem %s878_s3, %s532_s24 }
   0xf   : > { %v534_v1 = vld [vmem:[%s704_s19] sm:$0xff]   ;;  %v597_v2 = vld [vmem:[%s704_s19 + $0x8] sm:$0xff]   ;;  %v598_v3 = vld [vmem:[%s704_s19 + $0x10] sm:$0xff]  }
  0x10   : > { %v535_v4 = vunpack.c.l.bf16 %v534_v1  ;;  %v536_v5 = vunpack.c.h.bf16 %v534_v1  ;;  %v539_v6 = vunpack.c.l.bf16 %v597_v2  ;;  %v540_v7 = vunpack.c.h.bf16 %v597_v2  ;;  %v599_v8 = vld [vmem:[%s704_s19 + $0x18] sm:$0xff]   ;;  %v600_v30 = vld [vmem:[%s704_s19 + $0x20] sm:$0xff]   ;;  %v601_v31 = vld [vmem:[%s704_s19 + $0x28] sm:$0xff]  }
  0x11   : > { %v543_v10 = vunpack.c.l.bf16 %v598_v3  ;;  %v544_v11 = vunpack.c.h.bf16 %v598_v3  ;;  %v547_v12 = vunpack.c.l.bf16 %v599_v8  ;;  %v548_v13 = vunpack.c.h.bf16 %v599_v8  ;;  %v602_v36 = vld [vmem:[%s704_s19 + $0x30] sm:$0xff]   ;;  %v603_v37 = vld [vmem:[%s704_s19 + $0x38] sm:$0xff]   ;;  %v604_v3 = vld [vmem:[%s704_s19 + $0x40] sm:$0xff]  }
  0x12   : > { %v286_v14 = vmul.f32 %v535_v4, %v709_v0  ;;  %v287_v15 = vmul.f32 %v536_v5, %v709_v0  ;;  %v288_v16 = vmul.f32 %v539_v6, %v709_v0  ;;  %v289_v17 = vmul.f32 %v540_v7, %v709_v0  ;;  %v605_v4 = vld [vmem:[%s704_s19 + $0x48] sm:$0xff]  }
  0x13   : > { %v290_v18 = vmul.f32 %v543_v10, %v709_v0  ;;  %v291_v19 = vmul.f32 %v544_v11, %v709_v0  ;;  %v292_v20 = vmul.f32 %v547_v12, %v709_v0  ;;  %v293_v21 = vmul.f32 %v548_v13, %v709_v0  ;;  %v606_v10 = vld [vmem:[%s704_s19 + $0x50] sm:$0xff]   ;;  %v607_v11 = vld [vmem:[%s704_s19 + $0x58] sm:$0xff]  }
  0x14   : > { %v325_v22 = vadd.f32 %v718_v9, %v286_v14  ;;  %v326_v23 = vadd.f32 %v718_v9, %v287_v15  ;;  %v327_v24 = vadd.f32 %v718_v9, %v288_v16  ;;  %v328_v25 = vadd.f32 %v718_v9, %v289_v17 }
  0x15   : > { %v329_v26 = vadd.f32 %v718_v9, %v290_v18  ;;  %v330_v27 = vadd.f32 %v718_v9, %v291_v19  ;;  %v331_v28 = vadd.f32 %v718_v9, %v292_v20  ;;  %v332_v29 = vadd.f32 %v718_v9, %v293_v21 }
  0x16   : > { %v357_v32 = vmax.f32 %v325_v22, 0.0  ;;  %v358_v33 = vmax.f32 %v326_v23, 0.0  ;;  %v359_v34 = vmax.f32 %v327_v24, 0.0  ;;  %v360_v35 = vmax.f32 %v328_v25, 0.0 }
  0x17   : > { %v361_v38 = vmax.f32 %v329_v26, 0.0  ;;  %v362_v39 = vmax.f32 %v330_v27, 0.0  ;;  %v363_v40 = vmax.f32 %v331_v28, 0.0  ;;  %v364_v41 = vmax.f32 %v332_v29, 0.0 }
  0x18   : > { %390 = vst.msk [vmem:[%s736_s27] sm:$0xff] %vm389_vm0, %v357_v32  ;;  %391 = vst.msk [vmem:[%s736_s27 + $0x8] sm:$0xff] %vm389_vm0, %v358_v33  ;;  %v551_v42 = vunpack.c.l.bf16 %v600_v30  ;;  %v552_v43 = vunpack.c.h.bf16 %v600_v30  ;;  %v555_v44 = vunpack.c.l.bf16 %v601_v31  ;;  %v556_v45 = vunpack.c.h.bf16 %v601_v31 }
  0x19   : > { %392 = vst.msk [vmem:[%s736_s27 + $0x10] sm:$0xff] %vm389_vm0, %v359_v34  ;;  %393 = vst.msk [vmem:[%s736_s27 + $0x18] sm:$0xff] %vm389_vm0, %v360_v35  ;;  %v559_v46 = vunpack.c.l.bf16 %v602_v36  ;;  %v560_v47 = vunpack.c.h.bf16 %v602_v36  ;;  %v563_v48 = vunpack.c.l.bf16 %v603_v37  ;;  %v564_v49 = vunpack.c.h.bf16 %v603_v37 }
  0x1a   : > { %394 = vst.msk [vmem:[%s736_s27 + $0x20] sm:$0xff] %vm389_vm0, %v361_v38  ;;  %395 = vst.msk [vmem:[%s736_s27 + $0x28] sm:$0xff] %vm389_vm0, %v362_v39  ;;  %v294_v50 = vmul.f32 %v551_v42, %v709_v0  ;;  %v295_v51 = vmul.f32 %v552_v43, %v709_v0  ;;  %v296_v52 = vmul.f32 %v555_v44, %v709_v0  ;;  %v567_v16 = vunpack.c.l.bf16 %v604_v3 }
  0x1b   : > { %396 = vst.msk [vmem:[%s736_s27 + $0x30] sm:$0xff] %vm389_vm0, %v363_v40  ;;  %397 = vst.msk [vmem:[%s736_s27 + $0x38] sm:$0xff] %vm389_vm0, %v364_v41  ;;  %v297_v53 = vmul.f32 %v556_v45, %v709_v0  ;;  %v298_v54 = vmul.f32 %v559_v46, %v709_v0  ;;  %v299_v55 = vmul.f32 %v560_v47, %v709_v0  ;;  %v568_v17 = vunpack.c.h.bf16 %v604_v3  ;;  %v608_v40 = vld [vmem:[%s704_s19 + $0x60] sm:$0xff]   ;;  %v609_v41 = vld [vmem:[%s704_s19 + $0x68] sm:$0xff]  }
  0x1c   : > { %v300_v56 = vmul.f32 %v563_v48, %v709_v0  ;;  %v301_v57 = vmul.f32 %v564_v49, %v709_v0  ;;  %v333_v58 = vadd.f32 %v718_v9, %v294_v50  ;;  %v334_v59 = vadd.f32 %v718_v9, %v295_v51  ;;  %v610_v46 = vld [vmem:[%s704_s19 + $0x70] sm:$0xff]   ;;  %v611_v47 = vld [vmem:[%s704_s19 + $0x78] sm:$0xff]  }
  0x1d   : > { %v335_v60 = vadd.f32 %v718_v9, %v296_v52  ;;  %v336_v61 = vadd.f32 %v718_v9, %v297_v53  ;;  %v337_v62 = vadd.f32 %v718_v9, %v298_v54  ;;  %v338_v63 = vadd.f32 %v718_v9, %v299_v55 }
  0x1e   : > { %v339_v1 = vadd.f32 %v718_v9, %v300_v56  ;;  %v340_v2 = vadd.f32 %v718_v9, %v301_v57  ;;  %v365_v5 = vmax.f32 %v333_v58, 0.0  ;;  %v366_v6 = vmax.f32 %v334_v59, 0.0 }
  0x1f   : > { %v367_v7 = vmax.f32 %v335_v60, 0.0  ;;  %v368_v8 = vmax.f32 %v336_v61, 0.0  ;;  %v369_v12 = vmax.f32 %v337_v62, 0.0  ;;  %v370_v13 = vmax.f32 %v338_v63, 0.0 }
  0x20   : > { %v371_v14 = vmax.f32 %v339_v1, 0.0  ;;  %v372_v15 = vmax.f32 %v340_v2, 0.0  ;;  %398 = vst.msk [vmem:[%s736_s27 + $0x40] sm:$0xff] %vm389_vm0, %v365_v5  ;;  %399 = vst.msk [vmem:[%s736_s27 + $0x48] sm:$0xff] %vm389_vm0, %v366_v6  ;;  %v571_v18 = vunpack.c.l.bf16 %v605_v4  ;;  %v572_v19 = vunpack.c.h.bf16 %v605_v4 }
  0x21   : > { %400 = vst.msk [vmem:[%s736_s27 + $0x50] sm:$0xff] %vm389_vm0, %v367_v7  ;;  %401 = vst.msk [vmem:[%s736_s27 + $0x58] sm:$0xff] %vm389_vm0, %v368_v8  ;;  %v575_v20 = vunpack.c.l.bf16 %v606_v10  ;;  %v576_v21 = vunpack.c.h.bf16 %v606_v10  ;;  %v579_v22 = vunpack.c.l.bf16 %v607_v11  ;;  %v580_v23 = vunpack.c.h.bf16 %v607_v11 }
  0x22   : > { %402 = vst.msk [vmem:[%s736_s27 + $0x60] sm:$0xff] %vm389_vm0, %v369_v12  ;;  %403 = vst.msk [vmem:[%s736_s27 + $0x68] sm:$0xff] %vm389_vm0, %v370_v13  ;;  %v302_v24 = vmul.f32 %v567_v16, %v709_v0  ;;  %v303_v25 = vmul.f32 %v568_v17, %v709_v0  ;;  %v304_v26 = vmul.f32 %v571_v18, %v709_v0  ;;  %v583_v52 = vunpack.c.l.bf16 %v608_v40 }
  0x23   : > { %404 = vst.msk [vmem:[%s736_s27 + $0x70] sm:$0xff] %vm389_vm0, %v371_v14  ;;  %405 = vst.msk [vmem:[%s736_s27 + $0x78] sm:$0xff] %vm389_vm0, %v372_v15  ;;  %v305_v27 = vmul.f32 %v572_v19, %v709_v0  ;;  %v306_v28 = vmul.f32 %v575_v20, %v709_v0  ;;  %v307_v29 = vmul.f32 %v576_v21, %v709_v0  ;;  %v584_v53 = vunpack.c.h.bf16 %v608_v40 }
  0x24   : > { %v308_v30 = vmul.f32 %v579_v22, %v709_v0  ;;  %v309_v31 = vmul.f32 %v580_v23, %v709_v0  ;;  %v341_v32 = vadd.f32 %v718_v9, %v302_v24  ;;  %v342_v33 = vadd.f32 %v718_v9, %v303_v25 }
  0x25   : > { %v343_v34 = vadd.f32 %v718_v9, %v304_v26  ;;  %v344_v35 = vadd.f32 %v718_v9, %v305_v27  ;;  %v345_v36 = vadd.f32 %v718_v9, %v306_v28  ;;  %v346_v37 = vadd.f32 %v718_v9, %v307_v29 }
  0x26   : > { %v347_v38 = vadd.f32 %v718_v9, %v308_v30  ;;  %v348_v39 = vadd.f32 %v718_v9, %v309_v31  ;;  %v373_v42 = vmax.f32 %v341_v32, 0.0  ;;  %v374_v43 = vmax.f32 %v342_v33, 0.0 }
  0x27   : > { %v375_v44 = vmax.f32 %v343_v34, 0.0  ;;  %v376_v45 = vmax.f32 %v344_v35, 0.0  ;;  %v377_v48 = vmax.f32 %v345_v36, 0.0  ;;  %v378_v49 = vmax.f32 %v346_v37, 0.0 }
  0x28   : > { %v379_v50 = vmax.f32 %v347_v38, 0.0  ;;  %v380_v51 = vmax.f32 %v348_v39, 0.0  ;;  %406 = vst.msk [vmem:[%s736_s27 + $0x80] sm:$0xff] %vm389_vm0, %v373_v42  ;;  %407 = vst.msk [vmem:[%s736_s27 + $0x88] sm:$0xff] %vm389_vm0, %v374_v43  ;;  %v587_v54 = vunpack.c.l.bf16 %v609_v41  ;;  %v588_v55 = vunpack.c.h.bf16 %v609_v41 }
  0x29   : > { %408 = vst.msk [vmem:[%s736_s27 + $0x90] sm:$0xff] %vm389_vm0, %v375_v44  ;;  %409 = vst.msk [vmem:[%s736_s27 + $0x98] sm:$0xff] %vm389_vm0, %v376_v45  ;;  %v591_v56 = vunpack.c.l.bf16 %v610_v46  ;;  %v592_v57 = vunpack.c.h.bf16 %v610_v46  ;;  %v595_v58 = vunpack.c.l.bf16 %v611_v47  ;;  %v596_v59 = vunpack.c.h.bf16 %v611_v47 }
  0x2a   : > { %410 = vst.msk [vmem:[%s736_s27 + $0xa0] sm:$0xff] %vm389_vm0, %v377_v48  ;;  %411 = vst.msk [vmem:[%s736_s27 + $0xa8] sm:$0xff] %vm389_vm0, %v378_v49  ;;  %v310_v60 = vmul.f32 %v583_v52, %v709_v0  ;;  %v311_v61 = vmul.f32 %v584_v53, %v709_v0  ;;  %v312_v62 = vmul.f32 %v587_v54, %v709_v0 }
  0x2b   : > { %412 = vst.msk [vmem:[%s736_s27 + $0xb0] sm:$0xff] %vm389_vm0, %v379_v50  ;;  %413 = vst.msk [vmem:[%s736_s27 + $0xb8] sm:$0xff] %vm389_vm0, %v380_v51  ;;  %v313_v63 = vmul.f32 %v588_v55, %v709_v0  ;;  %v314_v1 = vmul.f32 %v591_v56, %v709_v0  ;;  %v315_v2 = vmul.f32 %v592_v57, %v709_v0 }
  0x2c   : > { %v316_v3 = vmul.f32 %v595_v58, %v709_v0  ;;  %v317_v4 = vmul.f32 %v596_v59, %v709_v0  ;;  %v349_v5 = vadd.f32 %v718_v9, %v310_v60  ;;  %v350_v6 = vadd.f32 %v718_v9, %v311_v61 }
  0x2d   : > { %v351_v7 = vadd.f32 %v718_v9, %v312_v62  ;;  %v352_v8 = vadd.f32 %v718_v9, %v313_v63  ;;  %v353_v10 = vadd.f32 %v718_v9, %v314_v1  ;;  %v354_v11 = vadd.f32 %v718_v9, %v315_v2 }
  0x2e   : > { %v355_v0 = vadd.f32 %v718_v9, %v316_v3  ;;  %v356_v12 = vadd.f32 %v718_v9, %v317_v4  ;;  %v381_v13 = vmax.f32 %v349_v5, 0.0  ;;  %v382_v14 = vmax.f32 %v350_v6, 0.0 }
  0x2f   : > { %v383_v15 = vmax.f32 %v351_v7, 0.0  ;;  %v384_v16 = vmax.f32 %v352_v8, 0.0  ;;  %v385_v17 = vmax.f32 %v353_v10, 0.0  ;;  %v386_v18 = vmax.f32 %v354_v11, 0.0 }
  0x30   : > { %v387_v19 = vmax.f32 %v355_v0, 0.0  ;;  %v388_v20 = vmax.f32 %v356_v12, 0.0  ;;  %414 = vst.msk [vmem:[%s736_s27 + $0xc0] sm:$0xff] %vm389_vm0, %v381_v13  ;;  %415 = vst.msk [vmem:[%s736_s27 + $0xc8] sm:$0xff] %vm389_vm0, %v382_v14 }
  0x31   : > { %416 = vst.msk [vmem:[%s736_s27 + $0xd0] sm:$0xff] %vm389_vm0, %v383_v15  ;;  %417 = vst.msk [vmem:[%s736_s27 + $0xd8] sm:$0xff] %vm389_vm0, %v384_v16 }
  0x32   : > { %418 = vst.msk [vmem:[%s736_s27 + $0xe0] sm:$0xff] %vm389_vm0, %v385_v17  ;;  %419 = vst.msk [vmem:[%s736_s27 + $0xe8] sm:$0xff] %vm389_vm0, %v386_v18 }
  0x33   : > { %420 = vst.msk [vmem:[%s736_s27 + $0xf0] sm:$0xff] %vm389_vm0, %v387_v19  ;;  %421 = vst.msk [vmem:[%s736_s27 + $0xf8] sm:$0xff] %vm389_vm0, %v388_v20 }
  0x34 PF: > { %s13_s14 = sadd.s32 1, %s658_s14   ;;  %s879_s12 = smov %s654_s13 }
  0x35   : > { %p10_p5 = scmp.ge.s32.totalorder %s13_s14, 4   ;;  %s880_s13 = smov %s882_s15 }
  0x37   :  { %12 = sbr.rel (!%p10_p5) target bundleno = 2 (0x2), region = 62 }

// kernel: double_conv.3
= control target key start
LH: loop header
LB: loop body
LE: loop exit
PB: predicated region body
PF: predicated region fallthrough
CT: control target
= control target key end

     0   :  { %s4431_s24 = smov 0   ;;  %s4433_s25 = smov 0   ;;  %s5713_s0 = inlined_call_operand.vmem [shape: bf16[2,16,16,4], index: 0, kind: input, shape index: {}, may-alias: {0,1,2}]   ;;  %s5714_s1 = inlined_call_operand.vmem [shape: bf16[2,16,16,4], index: 1, kind: input, shape index: {}, may-alias: {0,1,2}]   ;;  %s5715_s2 = inlined_call_operand.vmem [shape: bf16[2,16,16,4], index: 2, kind: input, shape index: {}, may-alias: {0,1,2}]   ;;  %s5716_s3 = inlined_call_operand.vmem [shape: bf16[9,4,128], index: 3, kind: input, shape index: {}]   ;;  %s5717_s4 = inlined_call_operand.vmem [shape: f32[1,4], index: 4, kind: input, shape index: {}]   ;;  %s5718_s5 = inlined_call_operand.vmem [shape: f32[1,4], index: 5, kind: input, shape index: {}]   ;;  %s5719_s6 = inlined_call_operand.vmem [shape: bf16[2,16,16,128], index: 6, kind: output, shape index: {0}]   ;;  %s5720_s7 = inlined_call_operand.vmem [shape: f32[2,1,2,128], index: 7, kind: output, shape index: {1}]  }
   0x1   :  { %s4435_s26 = smov 0  }
   0x2 LB: > { %s30_s4 = sadd.s32 1, %s4385_s25  ;;  %p3471_p0 = scmp.ge.s32.totalorder %s4389_s26, 1  ;;  %s4389_s26 = sphi %s4435_s26, %s18_s26   ;;  %s4385_s25 = sphi %s4433_s25, %s5811_s25   ;;  %s4381_s24 = sphi %s4431_s24, %s5810_s24  }
   0x3   : > { %p32_p1 = scmp.ge.s32.totalorder %s30_s4, 2  ;;  %p328_p2 = scmp.lt.s32.totalorder %s4389_s26, 3 }
   0x5   : > { %s5813_s4 = smov (%p32_p1, %s30_s4), 0  ;;  %p329_p3 = pnand %p3471_p0, %p328_p2 }
   0x7   : > { %332 = sbr.rel (%p329_p3) target bundleno = 571 (0x23b), region = 44 }
   0xc   : > { %v3517_v0 = vld [vmem:[%s5716_s3 + $0x2] sm:$0x3]  ;;  %vm1093_vm0 = vcmask 1041408   ;;  %p404_p4 = scmp.lt.s32.totalorder %s4381_s24, 1  ;;  %v848_v2 = vld [vmem:[%s5716_s3] sm:$0x3] }
   0xd   : > { %4298 = vmatprep.subr.msk.bf16.mxu1 %vm1093_vm0, %v3517_v0  ;;  %4297 = vmatprep.subr.msk.bf16.mxu0 %vm1093_vm0, %v3517_v0  ;;  %v1095_v1 = vsel %vm1093_vm0, %v3517_v0, 0  ;;  %v3550_v3 = vld [vmem:[%s5716_s3 + $0x4] sm:$0x3]  ;;  %vm809_vm1 = vcmask 1040384   ;;  %vm810_vm2 = vsmask.f32 256 }
   0xe   : > { %4296 = vmatpush3.bf16.msra.mxu1 %v1095_v1  ;;  %3990 = vmatpush3.bf16.msra.mxu0 %v1095_v1  ;;  %s5815_s24 = smov (!%p404_p4, %s4381_s24), 1  ;;  %vm849_vm3 = vsmask.f32 7424  ;;  %vm4486_vm4 = vmand %vm809_vm1, %vm810_vm2  ;;  %vm1044_vm5 = vcmask 31744   ;;  %v4491_v33 = vsel %vm1093_vm0, %v848_v2, 0  ;;  %v4494_v34 = vsel %vm1093_vm0, %v3550_v3, 0 }
   0xf   : > { %4299 = vmatprep.subr.msk.bf16.mxu1 %vm1093_vm0, %v848_v2  ;;  %4300 = vmatprep.subr.msk.bf16.mxu0 %vm1093_vm0, %v3550_v3  ;;  %s4466_s9 = sshll.u32 %s5815_s24, 7  ;;  %vm1486_vm6 = vcmask 1046528  }
  0x10   : > { %s4472_s12 = scalar_lea.vmem %s5713_s0, %s4466_s9  ;;  %s426_s15 = scalar_lea.vmem %s5714_s1, %s4466_s9 }
  0x11   : > { %v467_v4 = vld [vmem:[%s426_s15] sm:$0xf]  ;;  %v468_v5 = vld [vmem:[%s426_s15 + $0x4] sm:$0xf]  ;;  %v485_v6 = vld [vmem:[%s4472_s12 + $0x38] sm:$0xf]  ;;  %s5615_s14 = scalar_lea.vmem %s5719_s6, %s4466_s9 }
  0x12   : > { %v3481_v7 = vcombine.low %v467_v4, %v468_v5  ;;  %v3499_v8 = vcombine.low %v468_v5, %v468_v5  ;;  %v486_v9 = vld [vmem:[%s4472_s12 + $0x3c] sm:$0xf]  ;;  %v471_v10 = vld [vmem:[%s4472_s12] sm:$0xf]  ;;  %v472_v11 = vld [vmem:[%s4472_s12 + $0x4] sm:$0xf] }
  0x13   : > { %v3489_v12 = vcombine.low %v485_v6, %v486_v9  ;;  %v3507_v13 = vcombine.low %v486_v9, %v486_v9  ;;  %v3482_v14 = vcombine.low %v471_v10, %v472_v11  ;;  %v3500_v15 = vcombine.low %v472_v11, %v472_v11  ;;  %v487_v16 = vld [vmem:[%s4472_s12 + $0x40] sm:$0xf]  ;;  %v488_v17 = vld [vmem:[%s4472_s12 + $0x44] sm:$0xf]  ;;  %v4501_v39 = vld [vmem:[%s4472_s12 + $0x8] sm:$0xf] }
  0x14   : > { %v594_v18 = vshrl.u32 %v3481_v7, 16  ;;  %v597_v19 = vshll.u32 %v3481_v7, 16  ;;  %v773_v20 = vrot.slane %v3499_v8, 3  ;;  %v3490_v21 = vcombine.low %v487_v16, %v488_v17  ;;  %v474_v40 = vld [vmem:[%s4472_s12 + $0xc] sm:$0xf]  ;;  %s3706_s30 = sadd.s32 120, %s4466_s9 }
  0x15   : > { %v650_v22 = vshrl.u32 %v3489_v12, 16  ;;  %v653_v23 = vshll.u32 %v3489_v12, 16  ;;  %v781_v24 = vrot.slane %v3507_v13, 3  ;;  %v601_v25 = vshrl.u32 %v3482_v14, 16  ;;  %v4543_v9 = vld [vmem:[%s4472_s12 + $0x48] sm:$0xf]  ;;  %s443_s11 = scalar_lea.vmem %s5715_s2, %s3706_s30 }
  0x16   : > { %v596_v26 = vrot.slane %v594_v18, 7  ;;  %v604_v27 = vshll.u32 %v3482_v14, 16  ;;  %v774_v28 = vrot.slane %v3500_v15, 3  ;;  %v657_v29 = vshrl.u32 %v3490_v21, 16  ;;  %v475_v15 = vld [vmem:[%s4472_s12 + $0x10] sm:$0xf] }
  0x17   : > { %v652_v31 = vrot.slane %v650_v22, 7  ;;  %v603_v32 = vrot.slane %v601_v25, 7  ;;  %v660_v37 = vshll.u32 %v3490_v21, 16  ;;  %v3508_v38 = vcombine.low %v488_v17, %v488_v17  ;;  %v476_v17 = vld [vmem:[%s4472_s12 + $0x14] sm:$0xf]  ;;  %s3480_s9 = sshll.u32 %s5815_s24, 1 }
  0x18   : > { %v599_v35 = vor.u32 %v597_v19, %v596_v26  ;;  %v4498_v36 = vsel %vm4486_vm4, %v596_v26, %v773_v20  ;;  %v659_v44 = vrot.slane %v657_v29, 7  ;;  %v3483_v52 = vcombine.low %v4501_v39, %v474_v40  ;;  %v4565_v25 = vld [vmem:[%s5716_s3 + $0x8] sm:$0x3]  ;;  %s465_s17 = scalar_lea.vmem %s5720_s7, %s3480_s9 }
  0x19   : > { %v858_v41 = vshll.u32 %v4498_v36, 16  ;;  %v655_v42 = vor.u32 %v653_v23, %v652_v31  ;;  %v4507_v43 = vsel %vm4486_vm4, %v652_v31, %v781_v24  ;;  %v606_v47 = vor.u32 %v604_v27, %v603_v32  ;;  %v4570_v31 = vld [vmem:[%s4472_s12 + $0x50] sm:$0xf] }
  0x1a   : > { %v4511_v45 = vsel %vm4486_vm4, %v467_v4, %v599_v35  ;;  %v954_v46 = vshll.u32 %v4507_v43, 16  ;;  %v4516_v48 = vsel %vm4486_vm4, %v603_v32, %v774_v28  ;;  %v662_v63 = vor.u32 %v660_v37, %v659_v44 }
  0x1b   : > { %v851_v49 = vshrl.u32 %v4511_v45, 16  ;;  %v853_v50 = vshll.u32 %v4511_v45, 16  ;;  %v4522_v51 = vsel %vm4486_vm4, %v485_v6, %v655_v42  ;;  %v860_v53 = vrot.slane %v858_v41, 1 }
  0x1c   : > { %v947_v54 = vshrl.u32 %v4522_v51, 16  ;;  %v949_v55 = vshll.u32 %v4522_v51, 16  ;;  %v4529_v56 = vsel %vm4486_vm4, %v471_v10, %v606_v47  ;;  %v870_v60 = vshll.u32 %v4516_v48, 16  ;;  %v490_v10 = vld [vmem:[%s4472_s12 + $0x4c] sm:$0xf] }
  0x1d   : > { %v855_v57 = vrot.slane %v853_v50, 1  ;;  %v863_v58 = vshrl.u32 %v4529_v56, 16  ;;  %v865_v59 = vshll.u32 %v4529_v56, 16  ;;  %v956_v62 = vrot.slane %v954_v46, 1  ;;  %v4584_v47 = vld [vmem:[%s4472_s12 + $0x18] sm:$0xf] }
  0x1e   : > { %v951_v61 = vrot.slane %v949_v55, 1  ;;  %v782_v0 = vrot.slane %v3508_v38, 3  ;;  %v872_v3 = vrot.slane %v870_v60, 1  ;;  %v608_v4 = vshrl.u32 %v3483_v52, 16 }
  0x1f   : > { %v856_v1 = vor.u32 %v855_v57, %v851_v49  ;;  %v867_v2 = vrot.slane %v865_v59, 1  ;;  %v4536_v6 = vsel %vm4486_vm4, %v487_v16, %v662_v63  ;;  %v611_v8 = vshll.u32 %v3483_v52, 16  ;;  %v478_v49 = vld [vmem:[%s4472_s12 + $0x1c] sm:$0xf] }
  0x20   : > { %v952_v5 = vor.u32 %v951_v61, %v947_v54  ;;  %v4540_v7 = vsel %vm4486_vm4, %v659_v44, %v782_v0  ;;  %v959_v13 = vshrl.u32 %v4536_v6, 16  ;;  %v961_v14 = vshll.u32 %v4536_v6, 16 }
  0x21   : > { %v861_v11 = vsel %vm849_vm3, %v856_v1, %v860_v53  ;;  %v868_v12 = vor.u32 %v867_v2, %v863_v58  ;;  %v966_v18 = vshll.u32 %v4540_v7, 16  ;;  %v610_v19 = vrot.slane %v608_v4, 7  ;;  %v4598_v53 = vld [vmem:[%s5716_s3 + $0x6] sm:$0x3] }
  0x22   : > { %3991 = vmatprep.mubr.msk.bf16.mxu0 %vm1044_vm5, %v861_v11  ;;  %v4553_v16 = vsel %vm849_vm3, %v952_v5, %v956_v62  ;;  %v3501_v20 = vcombine.low %v474_v40, %v474_v40  ;;  %v963_v22 = vrot.slane %v961_v14, 1  ;;  %v3491_v23 = vcombine.low %v4543_v9, %v490_v10  ;;  %v492_v40 = vld [vmem:[%s4472_s12 + $0x54] sm:$0xf] }
  0x23   : > { %4007 = vmatprep.mubr.msk.bf16.mxu1 %vm1044_vm5, %v4553_v16  ;;  %v4559_v21 = vsel %vm849_vm3, %v868_v12, %v872_v3  ;;  %v3509_v24 = vcombine.low %v490_v10, %v490_v10  ;;  %v968_v26 = vrot.slane %v966_v18, 1  ;;  %v613_v27 = vor.u32 %v611_v8, %v610_v19 }
  0x24   : > { %3992 = vmatmul.mubr.msk.bf16.vlgmr.msra.gmra.mxu0 %vm1044_vm5, %v4559_v21  ;;  %v775_v28 = vrot.slane %v3501_v20, 3  ;;  %v3484_v29 = vcombine.low %v475_v15, %v476_v17  ;;  %v964_v32 = vor.u32 %v963_v22, %v959_v13  ;;  %v664_v35 = vshrl.u32 %v3491_v23, 16  ;;  %v493_v22 = vld [vmem:[%s4472_s12 + $0x58] sm:$0xf] }
  0x25   : > { %4058 = vmatpush3.bf16.msra.mxu0 %v4494_v34  ;;  %v667_v37 = vshll.u32 %v3491_v23, 16  ;;  %v783_v38 = vrot.slane %v3509_v24, 3  ;;  %v4577_v41 = vsel %vm4486_vm4, %v4501_v39, %v613_v27  ;;  %v3502_v57 = vcombine.low %v476_v17, %v476_v17 }
  0x26   : > { %v4581_v42 = vsel %vm4486_vm4, %v610_v19, %v775_v28  ;;  %v615_v44 = vshrl.u32 %v3484_v29, 16  ;;  %v618_v46 = vshll.u32 %v3484_v29, 16  ;;  %4302 = vmatprep.subr.msk.bf16.mxu0 %vm1093_vm0, %v4565_v25  ;;  %v4590_v34 = vsel %vm849_vm3, %v964_v32, %v968_v26  ;;  %v494_v28 = vld [vmem:[%s4472_s12 + $0x5c] sm:$0xf] }
  0x27   : > { %v875_v50 = vshrl.u32 %v4577_v41, 16  ;;  %v877_v39 = vshll.u32 %v4577_v41, 16  ;;  %v882_v52 = vshll.u32 %v4581_v42, 16  ;;  %4008 = vmatmul.mubr.msk.bf16.vlgmr.msra.gmra.mxu1 %vm1044_vm5, %v4590_v34  ;;  %v666_v54 = vrot.slane %v664_v35, 7 }
  0x28   : > { %v617_v55 = vrot.slane %v615_v44, 7  ;;  %v3492_v58 = vcombine.low %v4570_v31, %v492_v40  ;;  %4024 = vmatpush3.bf16.msra.mxu1 %v4491_v33  ;;  %v3510_v61 = vcombine.low %v492_v40, %v492_v40  ;;  %v3485_v62 = vcombine.low %v4584_v47, %v478_v49 }
  0x29   : > { %v879_v59 = vrot.slane %v877_v39, 1  ;;  %v884_v60 = vrot.slane %v882_v52, 1  ;;  %v669_v63 = vor.u32 %v667_v37, %v666_v54  ;;  %v4607_v0 = vsel %vm4486_vm4, %v666_v54, %v783_v38  ;;  %4301 = vmatprep.subr.msk.bf16.mxu1 %vm1093_vm0, %v4598_v53  ;;  %v479_v54 = vld [vmem:[%s4472_s12 + $0x20] sm:$0xf] }
  0x2a   : > { %v620_v1 = vor.u32 %v618_v46, %v617_v55  ;;  %v776_v2 = vrot.slane %v3502_v57, 3  ;;  %v978_v4 = vshll.u32 %v4607_v0, 16  ;;  %v671_v33 = vshrl.u32 %v3492_v58, 16 }
  0x2b   : > { %v880_v3 = vor.u32 %v879_v59, %v875_v50  ;;  %v674_v5 = vshll.u32 %v3492_v58, 16  ;;  %v4615_v8 = vsel %vm4486_vm4, %v4543_v9, %v669_v63  ;;  %v784_v12 = vrot.slane %v3510_v61, 3 }
  0x2c   : > { %v4619_v10 = vsel %vm4486_vm4, %v475_v15, %v620_v1  ;;  %v4623_v11 = vsel %vm4486_vm4, %v617_v55, %v776_v2  ;;  %v971_v14 = vshrl.u32 %v4615_v8, 16  ;;  %v973_v17 = vshll.u32 %v4615_v8, 16 }
  0x2d   : > { %v4626_v13 = vsel %vm849_vm3, %v880_v3, %v884_v60  ;;  %v980_v18 = vrot.slane %v978_v4, 1  ;;  %v887_v9 = vshrl.u32 %v4619_v10, 16  ;;  %v889_v15 = vshll.u32 %v4619_v10, 16  ;;  %v480_v60 = vld [vmem:[%s4472_s12 + $0x24] sm:$0xf] }
  0x2e   : > { %3995 = vmatprep.mubr.msk.bf16.mxu0 %vm1044_vm5, %v4626_v13  ;;  %v894_v19 = vshll.u32 %v4623_v11, 16  ;;  %v673_v20 = vrot.slane %v671_v33, 7  ;;  %v975_v23 = vrot.slane %v973_v17, 1  ;;  %v622_v24 = vshrl.u32 %v3485_v62, 16  ;;  %v495_v17 = vld [vmem:[%s4472_s12 + $0x60] sm:$0xf] }
  0x2f   : > { %v625_v26 = vshll.u32 %v3485_v62, 16  ;;  %v3503_v27 = vcombine.low %v478_v49, %v478_v49  ;;  %v891_v29 = vrot.slane %v889_v15, 1  ;;  %v3493_v49 = vcombine.low %v493_v22, %v494_v28 }
  0x30   : > { %v896_v32 = vrot.slane %v894_v19, 1  ;;  %v676_v35 = vor.u32 %v674_v5, %v673_v20  ;;  %v4639_v37 = vsel %vm4486_vm4, %v673_v20, %v784_v12  ;;  %v976_v38 = vor.u32 %v975_v23, %v971_v14  ;;  %v496_v20 = vld [vmem:[%s4472_s12 + $0x64] sm:$0xf] }
  0x31   : > { %v990_v40 = vshll.u32 %v4639_v37, 16  ;;  %v624_v44 = vrot.slane %v622_v24, 7  ;;  %v777_v46 = vrot.slane %v3503_v27, 3  ;;  %v892_v50 = vor.u32 %v891_v29, %v887_v9 }
  0x32   : > { %v4645_v39 = vsel %vm4486_vm4, %v4570_v31, %v676_v35  ;;  %v3511_v52 = vcombine.low %v494_v28, %v494_v28  ;;  %v4649_v55 = vsel %vm849_vm3, %v976_v38, %v980_v18  ;;  %v678_v63 = vshrl.u32 %v3493_v49, 16 }
  0x33   : > { %v983_v57 = vshrl.u32 %v4645_v39, 16  ;;  %v985_v58 = vshll.u32 %v4645_v39, 16  ;;  %v992_v59 = vrot.slane %v990_v40, 1  ;;  %4011 = vmatprep.mubr.msk.bf16.mxu1 %vm1044_vm5, %v4649_v55  ;;  %v4657_v61 = vsel %vm849_vm3, %v892_v50, %v896_v32 }
  0x34   : > { %v627_v31 = vor.u32 %v625_v26, %v624_v44  ;;  %v4661_v62 = vsel %vm4486_vm4, %v624_v44, %v777_v46  ;;  %3996 = vmatmul.mubr.msk.bf16.gmra.mxu0 %vm1044_vm5, %v4657_v61  ;;  %v681_v3 = vshll.u32 %v3493_v49, 16  ;;  %v785_v4 = vrot.slane %v3511_v52, 3  ;;  %v481_v46 = vld [vmem:[%s4472_s12 + $0x28] sm:$0xf] }
  0x35   : > { %v987_v1 = vrot.slane %v985_v58, 1  ;;  %v906_v2 = vshll.u32 %v4661_v62, 16  ;;  %v680_v5 = vrot.slane %v678_v63, 7  ;;  %v3486_v12 = vcombine.low %v479_v54, %v480_v60  ;;  %v482_v58 = vld [vmem:[%s4472_s12 + $0x2c] sm:$0xf] }
  0x36   : > { %v4669_v33 = vsel %vm4486_vm4, %v4584_v47, %v627_v31  ;;  %v3504_v14 = vcombine.low %v480_v60, %v480_v60  ;;  %v3494_v40 = vcombine.low %v495_v17, %v496_v20  ;;  %v3512_v44 = vcombine.low %v496_v20, %v496_v20 }
  0x37   : > { %v988_v18 = vor.u32 %v987_v1, %v983_v57  ;;  %v899_v9 = vshrl.u32 %v4669_v33, 16  ;;  %v901_v15 = vshll.u32 %v4669_v33, 16  ;;  %v908_v19 = vrot.slane %v906_v2, 1 }
  0x38   : > { %v683_v23 = vor.u32 %v681_v3, %v680_v5  ;;  %v4677_v24 = vsel %vm4486_vm4, %v680_v5, %v785_v4  ;;  %v629_v26 = vshrl.u32 %v3486_v12, 16  ;;  %v632_v47 = vshll.u32 %v3486_v12, 16 }
  0x39   : > { %v4680_v27 = vsel %vm849_vm3, %v988_v18, %v992_v59  ;;  %v903_v28 = vrot.slane %v901_v15, 1  ;;  %v1002_v29 = vshll.u32 %v4677_v24, 16  ;;  %v778_v32 = vrot.slane %v3504_v14, 3  ;;  %v497_v18 = vld [vmem:[%s4472_s12 + $0x68] sm:$0xf] }
  0x3a   : > { %4012 = vmatmul.mubr.msk.bf16.gmra.mxu1 %vm1044_vm5, %v4680_v27  ;;  %v4687_v35 = vsel %vm4486_vm4, %v493_v22, %v683_v23  ;;  %v631_v38 = vrot.slane %v629_v26, 7  ;;  %v685_v31 = vshrl.u32 %v3494_v40, 16  ;;  %v688_v22 = vshll.u32 %v3494_v40, 16  ;;  %v498_v23 = vld [vmem:[%s4472_s12 + $0x6c] sm:$0xf] }
  0x3b   : > { %v904_v50 = vor.u32 %v903_v28, %v899_v9  ;;  %v995_v49 = vshrl.u32 %v4687_v35, 16  ;;  %v997_v52 = vshll.u32 %v4687_v35, 16  ;;  %v1004_v57 = vrot.slane %v1002_v29, 1 }
  0x3c   : > { %v634_v59 = vor.u32 %v632_v47, %v631_v38  ;;  %v4695_v60 = vsel %vm4486_vm4, %v631_v38, %v778_v32  ;;  %v786_v3 = vrot.slane %v3512_v44, 3  ;;  %v687_v5 = vrot.slane %v685_v31, 7 }
  0x3d   : > { %v4698_v63 = vsel %vm849_vm3, %v904_v50, %v908_v19  ;;  %v999_v1 = vrot.slane %v997_v52, 1  ;;  %v918_v2 = vshll.u32 %v4695_v60, 16  ;;  %v3487_v12 = vcombine.low %v481_v46, %v482_v58 }
  0x3e   : > { %3999 = vmatprep.mubr.msk.bf16.mxu0 %vm1044_vm5, %v4698_v63  ;;  %v4705_v4 = vsel %vm4486_vm4, %v479_v54, %v634_v59  ;;  %v3505_v14 = vcombine.low %v482_v58, %v482_v58  ;;  %v690_v26 = vor.u32 %v688_v22, %v687_v5  ;;  %v4713_v47 = vsel %vm4486_vm4, %v687_v5, %v786_v3  ;;  %v483_v58 = vld [vmem:[%s4472_s12 + $0x30] sm:$0xf] }
  0x3f   : > { %v1000_v9 = vor.u32 %v999_v1, %v995_v49  ;;  %v911_v15 = vshrl.u32 %v4705_v4, 16  ;;  %v913_v19 = vshll.u32 %v4705_v4, 16  ;;  %v920_v20 = vrot.slane %v918_v2, 1  ;;  %v484_v1 = vld [vmem:[%s4472_s12 + $0x34] sm:$0xf] }
  0x40   : > { %v636_v28 = vshrl.u32 %v3487_v12, 16  ;;  %v639_v54 = vshll.u32 %v3487_v12, 16  ;;  %v1014_v38 = vshll.u32 %v4713_v47, 16  ;;  %v779_v40 = vrot.slane %v3505_v14, 3 }
  0x41   : > { %v4716_v29 = vsel %vm849_vm3, %v1000_v9, %v1004_v57  ;;  %v915_v32 = vrot.slane %v913_v19, 1  ;;  %v4723_v44 = vsel %vm4486_vm4, %v495_v17, %v690_v26  ;;  %v3495_v49 = vcombine.low %v497_v18, %v498_v23 }
  0x42   : > { %5728 = vst [vmem:[#allocation2_spill] sm:$0xff] %v4716_v29  ;;  %4015 = vmatprep.mubr.msk.bf16.mxu1 %vm1044_vm5, %v4716_v29  ;;  %v638_v50 = vrot.slane %v636_v28, 7  ;;  %v3513_v52 = vcombine.low %v498_v23, %v498_v23  ;;  %v1007_v31 = vshrl.u32 %v4723_v44, 16  ;;  %v1009_v57 = vshll.u32 %v4723_v44, 16 }
  0x43   : > { %v916_v59 = vor.u32 %v915_v32, %v911_v15  ;;  %v1016_v22 = vrot.slane %v1014_v38, 1  ;;  %v692_v5 = vshrl.u32 %v3495_v49, 16  ;;  %v695_v17 = vshll.u32 %v3495_v49, 16 }
  0x44   : > { %v641_v2 = vor.u32 %v639_v54, %v638_v50  ;;  %v4731_v3 = vsel %vm4486_vm4, %v638_v50, %v779_v40  ;;  %v1011_v14 = vrot.slane %v1009_v57, 1  ;;  %v787_v15 = vrot.slane %v3513_v52, 3  ;;  %v499_v54 = vld [vmem:[%s4472_s12 + $0x70] sm:$0xf]  ;;  %v500_v50 = vld [vmem:[%s4472_s12 + $0x74] sm:$0xf] }
  0x45   : > { %v4734_v12 = vsel %vm849_vm3, %v916_v59, %v920_v20  ;;  %v930_v9 = vshll.u32 %v4731_v3, 16  ;;  %v694_v23 = vrot.slane %v692_v5, 7  ;;  %v3488_v26 = vcombine.low %v483_v58, %v484_v1 }
  0x46   : > { %4000 = vmatmul.mubr.msk.bf16.gmra.mxu0 %vm1044_vm5, %v4734_v12  ;;  %v4741_v19 = vsel %vm4486_vm4, %v481_v46, %v641_v2  ;;  %v3506_v28 = vcombine.low %v484_v1, %v484_v1  ;;  %v1012_v32 = vor.u32 %v1011_v14, %v1007_v31  ;;  %v3496_v14 = vcombine.low %v499_v54, %v500_v50 }
  0x47   : > { %v923_v38 = vshrl.u32 %v4741_v19, 16  ;;  %v925_v20 = vshll.u32 %v4741_v19, 16  ;;  %v932_v40 = vrot.slane %v930_v9, 1  ;;  %v697_v49 = vor.u32 %v695_v17, %v694_v23 }
  0x48   : > { %v4749_v52 = vsel %vm4486_vm4, %v694_v23, %v787_v15  ;;  %v643_v59 = vshrl.u32 %v3488_v26, 16  ;;  %v646_v57 = vshll.u32 %v3488_v26, 16  ;;  %v4752_v46 = vsel %vm849_vm3, %v1012_v32, %v1016_v22 }
  0x49   : > { %5729 = vst [vmem:[#allocation3_spill] sm:$0xff] %v4752_v46  ;;  %v927_v2 = vrot.slane %v925_v20, 1  ;;  %v1026_v1 = vshll.u32 %v4749_v52, 16  ;;  %v780_v31 = vrot.slane %v3506_v28, 3  ;;  %4016 = vmatmul.mubr.msk.bf16.gmra.mxu1 %vm1044_vm5, %v4752_v46  ;;  %v4759_v5 = vsel %vm4486_vm4, %v497_v18, %v697_v49 }
  0x4a   : > { %v645_v17 = vrot.slane %v643_v59, 7  ;;  %v3514_v9 = vcombine.low %v500_v50, %v500_v50  ;;  %v1019_v23 = vshrl.u32 %v4759_v5, 16  ;;  %v1021_v22 = vshll.u32 %v4759_v5, 16 }
  0x4b   : > { %v928_v15 = vor.u32 %v927_v2, %v923_v38  ;;  %v1028_v26 = vrot.slane %v1026_v1, 1  ;;  %v699_v20 = vshrl.u32 %v3496_v14, 16  ;;  %v702_v46 = vshll.u32 %v3496_v14, 16 }
  0x4c   : > { %v648_v32 = vor.u32 %v646_v57, %v645_v17  ;;  %v4765_v28 = vsel %vm4486_vm4, %v645_v17, %v780_v31  ;;  %v1023_v18 = vrot.slane %v1021_v22, 1  ;;  %v788_v50 = vrot.slane %v3514_v9, 3 }
  0x4d   : > { %v4768_v29 = vsel %vm849_vm3, %v928_v15, %v932_v40  ;;  %v942_v49 = vshll.u32 %v4765_v28, 16  ;;  %v701_v59 = vrot.slane %v699_v20, 7  ;;  %v1488_v40 = vrot.slane %v4498_v36, 1 }
  0x4e   : > { %4003 = vmatprep.mubr.msk.bf16.mxu0 %vm1044_vm5, %v4768_v29  ;;  %v4775_v38 = vsel %vm4486_vm4, %v483_v58, %v648_v32  ;;  %v1024_v57 = vor.u32 %v1023_v18, %v1019_v23  ;;  %v1487_v14 = vrot.slane %v4511_v45, 1 }
  0x4f   : > { %v935_v2 = vshrl.u32 %v4775_v38, 16  ;;  %v937_v1 = vshll.u32 %v4775_v38, 16  ;;  %v704_v31 = vor.u32 %v702_v46, %v701_v59  ;;  %v4782_v17 = vsel %vm4486_vm4, %v701_v59, %v788_v50 }
  0x50   : > { %v4786_v9 = vsel %vm849_vm3, %v1024_v57, %v1028_v26  ;;  %v944_v15 = vrot.slane %v942_v49, 1  ;;  %v1038_v23 = vshll.u32 %v4782_v17, 16  ;;  %v1489_v20 = vsel %vm1486_vm6, %v1487_v14, %v1488_v40 }
  0x51   : > { %v939_v58 = vrot.slane %v937_v1, 1  ;;  %4019 = vmatprep.mubr.msk.bf16.mxu1 %vm1044_vm5, %v4786_v9  ;;  %v4793_v36 = vsel %vm4486_vm4, %v499_v54, %v704_v31  ;;  %v1491_v50 = vrot.slane %v4516_v48, 1  ;;  %v1490_v54 = vrot.slane %v4529_v56, 1 }
  0x52   : > { %v1031_v22 = vshrl.u32 %v4793_v36, 16  ;;  %v1033_v32 = vshll.u32 %v4793_v36, 16  ;;  %v1040_v49 = vrot.slane %v1038_v23, 1  ;;  %v1493_v57 = vrot.slane %v4577_v41, 1  ;;  %v4843_v23 = vld [vmem:[%s5716_s3 + $0xa] sm:$0x3] }
  0x53   : > { %v940_v46 = vor.u32 %v939_v58, %v935_v2  ;;  %v1494_v2 = vrot.slane %v4581_v42, 1  ;;  %v4816_v48 = vsel %vm1486_vm6, %v1490_v54, %v1491_v50  ;;  %v1999_v40 = vsel %vm1093_vm0, %v4565_v25, 0  ;;  %v4826_v42 = vld [vmem:[%s5716_s3 + $0xc] sm:$0x3] }
  0x54   : > { %v1035_v18 = vrot.slane %v1033_v32, 1  ;;  %v1497_v14 = vrot.slane %v4623_v11, 1  ;;  %v1787_v25 = vsel %vm1093_vm0, %v4598_v53, 0  ;;  %v1499_v58 = vrot.slane %v4669_v33, 1 }
  0x55   : > { %v4799_v26 = vsel %vm849_vm3, %v940_v46, %v944_v15  ;;  %v4821_v31 = vsel %vm1486_vm6, %v1493_v57, %v1494_v2  ;;  %v1500_v15 = vrot.slane %v4661_v62, 1  ;;  %v1502_v62 = vrot.slane %v4705_v4, 1 }
  0x56   : > { %4004 = vmatmul.mubr.msk.bf16.gmra.mxu0 %vm1044_vm5, %v4799_v26  ;;  %v1036_v59 = vor.u32 %v1035_v18, %v1031_v22  ;;  %v1503_v46 = vrot.slane %v4695_v60, 1  ;;  %v1505_v22 = vrot.slane %v4741_v19, 1  ;;  %v1506_v32 = vrot.slane %v4731_v3, 1 }
  0x57   : > { %4059 = vmatprep.mubr.msk.bf16.mxu0 %vm1044_vm5, %v1489_v20  ;;  %v4853_v11 = vsel %vm1486_vm6, %v1499_v58, %v1500_v15  ;;  %v1508_v60 = vrot.slane %v4775_v38, 1  ;;  %v1509_v3 = vrot.slane %v4765_v28, 1  ;;  %v1512_v50 = vrot.slane %v4507_v43, 1 }
  0x58   : > { %v4809_v1 = vsel %vm849_vm3, %v1036_v59, %v1040_v49  ;;  %v4870_v20 = vsel %vm1486_vm6, %v1502_v62, %v1503_v46  ;;  %v4873_v18 = vsel %vm1486_vm6, %v1505_v22, %v1506_v32  ;;  %v1511_v49 = vrot.slane %v4522_v51, 1 }
  0x59   : > { %4020 = vmatmul.mubr.msk.bf16.gmra.mxu1 %vm1044_vm5, %v4809_v1  ;;  %v4888_v59 = vsel %vm1486_vm6, %v1508_v60, %v1509_v3  ;;  %v1514_v43 = vrot.slane %v4536_v6, 1  ;;  %v1515_v28 = vrot.slane %v4540_v7, 1  ;;  %v1517_v57 = vrot.slane %v4615_v8, 1  ;;  %v4973_v3 = vld [vmem:[%s5716_s3 + $0x10] sm:$0x3] }
  0x5a   : > { %4025 = vmatprep.mubr.msk.bf16.mxu1 %vm1044_vm5, %v4511_v45  ;;  %v1496_v45 = vrot.slane %v4619_v10, 1  ;;  %v4891_v54 = vsel %vm1486_vm6, %v1511_v49, %v1512_v50  ;;  %v1518_v2 = vrot.slane %v4607_v0, 1  ;;  %v1520_v7 = vrot.slane %v4645_v39, 1 }
  0x5b   : > { %v1521_v0 = vrot.slane %v4639_v37, 1  ;;  %v1526_v37 = vrot.slane %v4723_v44, 1  ;;  %v1529_v62 = vrot.slane %v4759_v5, 1  ;;  %v1530_v46 = vrot.slane %v4749_v52, 1 }
  0x5c   : > { %v4850_v53 = vsel %vm1486_vm6, %v1496_v45, %v1497_v14  ;;  %v4909_v45 = vsel %vm1486_vm6, %v1517_v57, %v1518_v2  ;;  %v1523_v14 = vrot.slane %v4687_v35, 1  ;;  %v1533_v52 = vrot.slane %v4782_v17, 1 }
  0x5d   : > { %v4924_v58 = vsel %vm1486_vm6, %v1520_v7, %v1521_v0  ;;  %v4945_v32 = vsel %vm1486_vm6, %v1529_v62, %v1530_v46  ;;  %v2406_v17 = vsel %vm1093_vm0, %v4826_v42, 0  ;;  %v470_v62 = vld [vmem:[%s443_s11 + $0x4] sm:$0xf] }
  0x5e   : > { %4060 = vmatmul.mubr.msk.bf16.vlgmr.msra.gmra.mxu0 %vm1044_vm5, %v4816_v48 }
  0x5f   : > { %4126 = vmatpush3.bf16.msra.mxu0 %v1999_v40  ;;  %4063 = vmatprep.mubr.msk.bf16.mxu0 %vm1044_vm5, %v4821_v31  ;;  %v4906_v40 = vsel %vm1486_vm6, %v1514_v43, %v1515_v28 }
  0x60   : > { %4304 = vmatprep.subr.msk.bf16.mxu0 %vm1093_vm0, %v4826_v42  ;;  %v501_v42 = vld [vmem:[%s4472_s12 + $0x78] sm:$0xf] }
  0x61   : > { %4026 = vmatmul.mubr.msk.bf16.vlgmr.msra.gmra.mxu1 %vm1044_vm5, %v4529_v56 }
  0x62   : > { %4092 = vmatpush3.bf16.msra.mxu1 %v1787_v25  ;;  %4029 = vmatprep.mubr.msk.bf16.mxu1 %vm1044_vm5, %v4577_v41  ;;  %v1524_v25 = vrot.slane %v4677_v24, 1  ;;  %v1527_v24 = vrot.slane %v4713_v47, 1  ;;  %v1532_v47 = vrot.slane %v4793_v36, 1 }
  0x63   : > { %4303 = vmatprep.subr.msk.bf16.mxu1 %vm1093_vm0, %v4843_v23 }
  0x64   : > { %v4927_v15 = vsel %vm1486_vm6, %v1523_v14, %v1524_v25  ;;  %v4942_v22 = vsel %vm1486_vm6, %v1526_v37, %v1527_v24  ;;  %v4958_v60 = vsel %vm1486_vm6, %v1532_v47, %v1533_v52  ;;  %v5730_v14 = vld [vmem:[#allocation2_spill] sm:$0xff]  ;;  %v5731_v25 = vld [vmem:[#allocation3_spill] sm:$0xff] }
  0x65   : > { %v5041_v24 = vld [vmem:[%s443_s11] sm:$0xf] }
  0x66   : > { %4064 = vmatmul.mubr.msk.bf16.gmra.mxu0 %vm1044_vm5, %v4850_v53  ;;  %v5050_v47 = vcombine.low %v5041_v24, %v470_v62 }
  0x67   : > { %4067 = vmatprep.mubr.msk.bf16.mxu0 %vm1044_vm5, %v4853_v11 }
  0x69   : > { %4030 = vmatmul.mubr.msk.bf16.gmra.mxu1 %vm1044_vm5, %v4619_v10 }
  0x6a   : > { %4033 = vmatprep.mubr.msk.bf16.mxu1 %vm1044_vm5, %v4669_v33 }
  0x6e   : > { %4068 = vmatmul.mubr.msk.bf16.gmra.mxu0 %vm1044_vm5, %v4870_v20 }
  0x6f   : > { %4071 = vmatprep.mubr.msk.bf16.mxu0 %vm1044_vm5, %v4873_v18 }
  0x71   : > { %4034 = vmatmul.mubr.msk.bf16.gmra.mxu1 %vm1044_vm5, %v4705_v4 }
  0x72   : > { %4037 = vmatprep.mubr.msk.bf16.mxu1 %vm1044_vm5, %v4741_v19 }
  0x76   : > { %4072 = vmatmul.mubr.msk.bf16.gmra.mxu0 %vm1044_vm5, %v4888_v59 }
  0x77   : > { %4075 = vmatprep.mubr.msk.bf16.mxu0 %vm1044_vm5, %v4891_v54 }
  0x79   : > { %4038 = vmatmul.mubr.msk.bf16.gmra.mxu1 %vm1044_vm5, %v4775_v38 }
  0x7a   : > { %4041 = vmatprep.mubr.msk.bf16.mxu1 %vm1044_vm5, %v4522_v51 }
  0x7e   : > { %4076 = vmatmul.mubr.msk.bf16.gmra.mxu0 %vm1044_vm5, %v4906_v40 }
  0x7f   : > { %4079 = vmatprep.mubr.msk.bf16.mxu0 %vm1044_vm5, %v4909_v45 }
  0x81   : > { %4042 = vmatmul.mubr.msk.bf16.gmra.mxu1 %vm1044_vm5, %v4536_v6 }
  0x82   : > { %4045 = vmatprep.mubr.msk.bf16.mxu1 %vm1044_vm5, %v4615_v8 }
  0x86   : > { %4080 = vmatmul.mubr.msk.bf16.gmra.mxu0 %vm1044_vm5, %v4924_v58 }
  0x87   : > { %4083 = vmatprep.mubr.msk.bf16.mxu0 %vm1044_vm5, %v4927_v15 }
  0x89   : > { %4046 = vmatmul.mubr.msk.bf16.gmra.mxu1 %vm1044_vm5, %v4645_v39 }
  0x8a   : > { %4049 = vmatprep.mubr.msk.bf16.mxu1 %vm1044_vm5, %v4687_v35 }
  0x8e   : > { %4084 = vmatmul.mubr.msk.bf16.gmra.mxu0 %vm1044_vm5, %v4942_v22 }
  0x8f   : > { %4087 = vmatprep.mubr.msk.bf16.mxu0 %vm1044_vm5, %v4945_v32 }
  0x91   : > { %4050 = vmatmul.mubr.msk.bf16.gmra.mxu1 %vm1044_vm5, %v4723_v44 }
  0x92   : > { %4053 = vmatprep.mubr.msk.bf16.mxu1 %vm1044_vm5, %v4759_v5 }
  0x96   : > { %4088 = vmatmul.mubr.msk.bf16.gmra.mxu0 %vm1044_vm5, %v4958_v60 }
  0x97   : > { %4127 = vmatprep.mubr.msk.bf16.mxu0 %vm1044_vm5, %v4559_v21  ;;  %v4986_v21 = vld [vmem:[%s5716_s3 + $0xe] sm:$0x3] }
  0x99   : > { %4054 = vmatmul.mubr.msk.bf16.gmra.mxu1 %vm1044_vm5, %v4793_v36 }
  0x9a   : > { %4093 = vmatprep.mubr.msk.bf16.mxu1 %vm1044_vm5, %v4529_v56  ;;  %v2205_v56 = vsel %vm1093_vm0, %v4843_v23, 0  ;;  %v502_v23 = vld [vmem:[%s4472_s12 + $0x7c] sm:$0xf] }
  0x9b   : > { %v3497_v49 = vcombine.low %v501_v42, %v502_v23  ;;  %v3515_v2 = vcombine.low %v502_v23, %v502_v23  ;;  %v713_v23 = vshrl.u32 %v5050_v47, 16 }
  0x9d   : > { %v706_v50 = vshrl.u32 %v3497_v49, 16  ;;  %v709_v28 = vshll.u32 %v3497_v49, 16  ;;  %v789_v7 = vrot.slane %v3515_v2, 3 }
  0x9e   : > { %4128 = vmatmul.mubr.msk.bf16.vlgmr.msra.gmra.mxu0 %vm1044_vm5, %v4626_v13 }
  0x9f   : > { %4194 = vmatpush3.bf16.msra.mxu0 %v2406_v17  ;;  %4131 = vmatprep.mubr.msk.bf16.mxu0 %vm1044_vm5, %v4657_v61  ;;  %v708_v43 = vrot.slane %v706_v50, 7 }
  0xa0   : > { %4306 = vmatprep.subr.msk.bf16.mxu0 %vm1093_vm0, %v4973_v3 }
  0xa1   : > { %4094 = vmatmul.mubr.msk.bf16.vlgmr.msra.gmra.mxu1 %vm1044_vm5, %v4577_v41  ;;  %v711_v57 = vor.u32 %v709_v28, %v708_v43  ;;  %v5045_v46 = vsel %vm4486_vm4, %v708_v43, %v789_v7  ;;  %v715_v28 = vrot.slane %v713_v23, 7  ;;  %v2824_v7 = vsel %vm1093_vm0, %v4973_v3, 0 }
  0xa2   : > { %4160 = vmatpush3.bf16.msra.mxu1 %v2205_v56  ;;  %4097 = vmatprep.mubr.msk.bf16.mxu1 %vm1044_vm5, %v4619_v10  ;;  %v1989_v56 = vshll.u32 %v5045_v46, 16  ;;  %v716_v23 = vshll.u32 %v5050_v47, 16  ;;  %v2197_v47 = vrot.slane %v5045_v46, 1 }
  0xa3   : > { %4305 = vmatprep.subr.msk.bf16.mxu1 %vm1093_vm0, %v4986_v21  ;;  %v5031_v0 = vsel %vm4486_vm4, %v501_v42, %v711_v57  ;;  %v3516_v42 = vcombine.low %v470_v62, %v470_v62 }
  0xa4   : > { %v1984_v37 = vshll.u32 %v5031_v0, 16  ;;  %v1982_v52 = vshrl.u32 %v5031_v0, 16  ;;  %v1991_v50 = vrot.slane %v1989_v56, 1 }
  0xa5   : > { %v790_v43 = vrot.slane %v3516_v42, 3 }
  0xa6   : > { %4132 = vmatmul.mubr.msk.bf16.gmra.mxu0 %vm1044_vm5, %v4698_v63  ;;  %v1986_v17 = vrot.slane %v1984_v37, 1  ;;  %v2618_v37 = vsel %vm1093_vm0, %v4986_v21, 0 }
  0xa7   : > { %4135 = vmatprep.mubr.msk.bf16.mxu0 %vm1044_vm5, %v4734_v12  ;;  %v5070_v2 = vsel %vm4486_vm4, %v715_v28, %v790_v43 }
  0xa8   : > { %v1987_v49 = vor.u32 %v1986_v17, %v1982_v52 }
  0xa9   : > { %4098 = vmatmul.mubr.msk.bf16.gmra.mxu1 %vm1044_vm5, %v4669_v33 }
  0xaa   : > { %4101 = vmatprep.mubr.msk.bf16.mxu1 %vm1044_vm5, %v4705_v4  ;;  %v5066_v57 = vsel %vm849_vm3, %v1987_v49, %v1991_v50 }
  0xab   : > { %5732 = vst [vmem:[#allocation2_spill] sm:$0xff] %v5066_v57 }
  0xae   : > { %4136 = vmatmul.mubr.msk.bf16.gmra.mxu0 %vm1044_vm5, %v4768_v29 }
  0xaf   : > { %4139 = vmatprep.mubr.msk.bf16.mxu0 %vm1044_vm5, %v4799_v26 }
  0xb1   : > { %4102 = vmatmul.mubr.msk.bf16.gmra.mxu1 %vm1044_vm5, %v4741_v19 }
  0xb2   : > { %4105 = vmatprep.mubr.msk.bf16.mxu1 %vm1044_vm5, %v4775_v38 }
  0xb6   : > { %4140 = vmatmul.mubr.msk.bf16.gmra.mxu0 %vm1044_vm5, %v4553_v16 }
  0xb7   : > { %4143 = vmatprep.mubr.msk.bf16.mxu0 %vm1044_vm5, %v4590_v34 }
  0xb9   : > { %4106 = vmatmul.mubr.msk.bf16.gmra.mxu1 %vm1044_vm5, %v4522_v51 }
  0xba   : > { %4109 = vmatprep.mubr.msk.bf16.mxu1 %vm1044_vm5, %v4536_v6 }
  0xbe   : > { %4144 = vmatmul.mubr.msk.bf16.gmra.mxu0 %vm1044_vm5, %v4649_v55 }
  0xbf   : > { %4147 = vmatprep.mubr.msk.bf16.mxu0 %vm1044_vm5, %v4680_v27 }
  0xc1   : > { %4110 = vmatmul.mubr.msk.bf16.gmra.mxu1 %vm1044_vm5, %v4615_v8 }
  0xc2   : > { %4113 = vmatprep.mubr.msk.bf16.mxu1 %vm1044_vm5, %v4645_v39 }
  0xc6   : > { %4148 = vmatmul.mubr.msk.bf16.gmra.mxu0 %vm1044_vm5, %v5730_v14 }
  0xc7   : > { %4151 = vmatprep.mubr.msk.bf16.mxu0 %vm1044_vm5, %v5731_v25 }
  0xc9   : > { %4114 = vmatmul.mubr.msk.bf16.gmra.mxu1 %vm1044_vm5, %v4687_v35 }
  0xca   : > { %4117 = vmatprep.mubr.msk.bf16.mxu1 %vm1044_vm5, %v4723_v44 }
  0xce   : > { %4152 = vmatmul.mubr.msk.bf16.gmra.mxu0 %vm1044_vm5, %v4786_v9 }
  0xcf   : > { %4155 = vmatprep.mubr.msk.bf16.mxu0 %vm1044_vm5, %v4809_v1 }
  0xd1   : > { %4118 = vmatmul.mubr.msk.bf16.gmra.mxu1 %vm1044_vm5, %v4759_v5 }
  0xd2   : > { %4121 = vmatprep.mubr.msk.bf16.mxu1 %vm1044_vm5, %v4793_v36 }
  0xd6   : > { %4156 = vmatmul.mubr.msk.bf16.gmra.mxu0 %vm1044_vm5, %v5066_v57 }
  0xd7   : > { %4195 = vmatprep.mubr.msk.bf16.mxu0 %vm1044_vm5, %v4577_v41 }
  0xd9   : > { %4122 = vmatmul.mubr.msk.bf16.gmra.mxu1 %vm1044_vm5, %v5031_v0 }
  0xda   : > { %4161 = vmatprep.mubr.msk.bf16.mxu1 %vm1044_vm5, %v4816_v48 }
  0xde   : > { %4196 = vmatmul.mubr.msk.bf16.vlgmr.msra.gmra.mxu0 %vm1044_vm5, %v4619_v10 }
  0xdf   : > { %4262 = vmatpush3.bf16.msra.mxu0 %v2824_v7  ;;  %4199 = vmatprep.mubr.msk.bf16.mxu0 %vm1044_vm5, %v4669_v33 }
  0xe1   : > { %4162 = vmatmul.mubr.msk.bf16.vlgmr.msra.gmra.mxu1 %vm1044_vm5, %v4821_v31 }
  0xe2   : > { %4228 = vmatpush3.bf16.msra.mxu1 %v2618_v37  ;;  %4165 = vmatprep.mubr.msk.bf16.mxu1 %vm1044_vm5, %v4850_v53 }
  0xe4   : > { %v5094_v41 = vpop.f32.mrf.mxu0 }
  0xe6   : > { %4200 = vmatmul.mubr.msk.bf16.gmra.mxu0 %vm1044_vm5, %v4705_v4  ;;  %v5102_v33 = vpop.f32.mrf.mxu0 }
  0xe7   : > { %4203 = vmatprep.mubr.msk.bf16.mxu0 %vm1044_vm5, %v4741_v19  ;;  %v5100_v10 = vpop.f32.mrf.mxu1 }
  0xe8   : > { %v5110_v4 = vpop.f32.mrf.mxu0 }
  0xe9   : > { %4166 = vmatmul.mubr.msk.bf16.gmra.mxu1 %vm1044_vm5, %v4853_v11  ;;  %v5108_v48 = vpop.f32.mrf.mxu1 }
  0xea   : > { %4169 = vmatprep.mubr.msk.bf16.mxu1 %vm1044_vm5, %v4870_v20  ;;  %v5118_v3 = vpop.f32.mrf.mxu0 }
  0xeb   : > { %v5116_v19 = vpop.f32.mrf.mxu1 }
  0xee   : > { %4204 = vmatmul.mubr.msk.bf16.gmra.mxu0 %vm1044_vm5, %v4775_v38  ;;  %v5124_v38 = vpop.f32.mrf.mxu1 }
  0xef   : > { %4207 = vmatprep.mubr.msk.bf16.mxu0 %vm1044_vm5, %v4522_v51 }
  0xf1   : > { %4170 = vmatmul.mubr.msk.bf16.gmra.mxu1 %vm1044_vm5, %v4873_v18 }
  0xf2   : > { %4173 = vmatprep.mubr.msk.bf16.mxu1 %vm1044_vm5, %v4888_v59 }
  0xf4   : > { %v5126_v21 = vpop.f32.mrf.mxu0 }
  0xf6   : > { %4208 = vmatmul.mubr.msk.bf16.gmra.mxu0 %vm1044_vm5, %v4536_v6  ;;  %v5134_v62 = vpop.f32.mrf.mxu0 }
  0xf7   : > { %4211 = vmatprep.mubr.msk.bf16.mxu0 %vm1044_vm5, %v4615_v8 }
  0xf8   : > { %v5142_v52 = vpop.f32.mrf.mxu0 }
  0xf9   : > { %4174 = vmatmul.mubr.msk.bf16.gmra.mxu1 %vm1044_vm5, %v4891_v54 }
  0xfa   : > { %v5132_v51 = vpop.f32.mrf.mxu1  ;;  %4177 = vmatprep.mubr.msk.bf16.mxu1 %vm1044_vm5, %v4906_v40  ;;  %v5150_v17 = vpop.f32.mrf.mxu0 }
  0xfc   : > { %v5140_v6 = vpop.f32.mrf.mxu1 }
  0xfe   : > { %4212 = vmatmul.mubr.msk.bf16.gmra.mxu0 %vm1044_vm5, %v4645_v39  ;;  %v5148_v8 = vpop.f32.mrf.mxu1 }
  0xff   : > { %4215 = vmatprep.mubr.msk.bf16.mxu0 %vm1044_vm5, %v4687_v35 }
 0x100   : > { %v5156_v39 = vpop.f32.mrf.mxu1 }
 0x101   : > { %4178 = vmatmul.mubr.msk.bf16.gmra.mxu1 %vm1044_vm5, %v4909_v45 }
 0x102   : > { %4181 = vmatprep.mubr.msk.bf16.mxu1 %vm1044_vm5, %v4924_v58 }
 0x106   : > { %4216 = vmatmul.mubr.msk.bf16.gmra.mxu0 %vm1044_vm5, %v4723_v44  ;;  %v5158_v56 = vpop.f32.mrf.mxu0 }
 0x107   : > { %4219 = vmatprep.mubr.msk.bf16.mxu0 %vm1044_vm5, %v4759_v5  ;;  %v718_v5 = vor.u32 %v716_v23, %v715_v28 }
 0x108   : > { %v5166_v42 = vpop.f32.mrf.mxu0 }
 0x109   : > { %4182 = vmatmul.mubr.msk.bf16.gmra.mxu1 %vm1044_vm5, %v4927_v15  ;;  %v5164_v35 = vpop.f32.mrf.mxu1  ;;  %v5192_v7 = vsel %vm4486_vm4, %v5041_v24, %v718_v5 }
 0x10a   : > { %4185 = vmatprep.mubr.msk.bf16.mxu1 %vm1044_vm5, %v4942_v22  ;;  %v5175_v49 = vpop.f32.mrf.mxu0 }
 0x10b   : > { %v5173_v44 = vpop.f32.mrf.mxu1 }
 0x10c   : > { %5733 = vst [vmem:[#allocation3_spill] sm:$0xff] %v5173_v44  ;;  %v5183_v43 = vpop.f32.mrf.mxu0 }
 0x10d   : > { %v5181_v50 = vpop.f32.mrf.mxu1 }
 0x10e   : > { %4220 = vmatmul.mubr.msk.bf16.gmra.mxu0 %vm1044_vm5, %v4793_v36  ;;  %5734 = vst [vmem:[#allocation4_spill] sm:$0xff] %v5181_v50  ;;  %v2196_v36 = vrot.slane %v5031_v0, 1 }
 0x10f   : > { %4223 = vmatprep.mubr.msk.bf16.mxu0 %vm1044_vm5, %v5031_v0  ;;  %v5194_v28 = vpop.f32.mrf.mxu1 }
 0x110   : > { %5735 = vst [vmem:[#allocation5_spill] sm:$0xff] %v5194_v28  ;;  %v5201_v23 = vsel %vm1486_vm6, %v2196_v36, %v2197_v47 }
 0x111   : > { %4186 = vmatmul.mubr.msk.bf16.gmra.mxu1 %vm1044_vm5, %v4945_v32 }
 0x112   : > { %4189 = vmatprep.mubr.msk.bf16.mxu1 %vm1044_vm5, %v4958_v60 }
 0x116   : > { %v5196_v37 = vpop.f32.mrf.mxu0  ;;  %4224 = vmatmul.mubr.msk.bf16.gmra.mxu0 %vm1044_vm5, %v5192_v7 }
 0x117   : > { %4263 = vmatprep.mubr.msk.bf16.mxu0 %vm1044_vm5, %v4821_v31 }
 0x118   : > { %v5205_v0 = vpop.f32.mrf.mxu0 }
 0x119   : > { %v5207_v46 = vpop.f32.mrf.mxu1  ;;  %4190 = vmatmul.mubr.msk.bf16.gmra.mxu1 %vm1044_vm5, %v5201_v23 }
 0x11a   : > { %5736 = vst [vmem:[#allocation6_spill] sm:$0xff] %v5207_v46  ;;  %v5211_v30 = vpop.f32.mrf.mxu0  ;;  %4229 = vmatprep.mubr.msk.bf16.mxu1 %vm1044_vm5, %v4626_v13 }
 0x11b   : > { %v5215_v24 = vpop.f32.mrf.mxu1 }
 0x11c   : > { %5737 = vst [vmem:[#allocation7_spill] sm:$0xff] %v5215_v24  ;;  %v5217_v5 = vpop.f32.mrf.mxu0 }
 0x11d   : > { %v5219_v36 = vpop.f32.mrf.mxu1 }
 0x11e   : > { %5738 = vst [vmem:[#allocation8_spill] sm:$0xff] %v5219_v36  ;;  %v4061_v47 = vpop.f32.mrf.mxu0  ;;  %4264 = vmatmul.mubr.msk.bf16.vlgmr.msra.gmra.mxu0 %vm1044_vm5, %v4850_v53 }
 0x11f   : > { %4267 = vmatprep.mubr.msk.bf16.mxu0 %vm1044_vm5, %v4853_v11  ;;  %v5225_v31 = vpop.f32.mrf.mxu1 }
 0x120   : > { %5739 = vst [vmem:[#allocation9_spill] sm:$0xff] %v5225_v31  ;;  %v1622_v46 = vpop.f32.mrf.mxu0 }
 0x121   : > { %v4027_v28 = vpop.f32.mrf.mxu1  ;;  %4230 = vmatmul.mubr.msk.bf16.vlgmr.msra.gmra.mxu1 %vm1044_vm5, %v4657_v61 }
 0x122   : > { %v4062_v13 = vpop.f32.mrf.mxu0  ;;  %v1336_v24 = vadd.f32 %v4027_v28, %v5094_v41  ;;  %4233 = vmatprep.mubr.msk.bf16.mxu1 %vm1044_vm5, %v4698_v63 }
 0x123   : > { %v1327_v36 = vpop.f32.mrf.mxu1 }
 0x124   : > { %v1625_v50 = vpop.f32.mrf.mxu0  ;;  %v5232_v44 = vadd.f32 %v4061_v47, %v1336_v24  ;;  %v1328_v53 = vadd.f32 %v1327_v36, %v5102_v33 }
 0x125   : > { %v4028_v11 = vpop.f32.mrf.mxu1 }
 0x126   : > { %v4065_v57 = vpop.f32.mrf.mxu0  ;;  %4268 = vmatmul.mubr.msk.bf16.gmra.mxu0 %vm1044_vm5, %v4870_v20  ;;  %v5237_v31 = vadd.f32 %v1622_v46, %v1328_v53  ;;  %v1339_v61 = vadd.f32 %v4028_v11, %v5110_v4 }
 0x127   : > { %4271 = vmatprep.mubr.msk.bf16.mxu0 %vm1044_vm5, %v4873_v18  ;;  %v1330_v41 = vpop.f32.mrf.mxu1 }
 0x128   : > { %v1638_v63 = vpop.f32.mrf.mxu0  ;;  %v5242_v28 = vadd.f32 %v4062_v13, %v1339_v61  ;;  %v1331_v24 = vadd.f32 %v1330_v41, %v5118_v3 }
 0x129   : > { %v4031_v47 = vpop.f32.mrf.mxu1  ;;  %4234 = vmatmul.mubr.msk.bf16.gmra.mxu1 %vm1044_vm5, %v4734_v12 }
 0x12a   : > { %v4066_v33 = vpop.f32.mrf.mxu0  ;;  %v5247_v36 = vadd.f32 %v1625_v50, %v1331_v24  ;;  %v1352_v20 = vadd.f32 %v4031_v47, %v5126_v21  ;;  %4237 = vmatprep.mubr.msk.bf16.mxu1 %vm1044_vm5, %v4768_v29 }
 0x12b   : > { %v1343_v4 = vpop.f32.mrf.mxu1 }
 0x12c   : > { %v1641_v18 = vpop.f32.mrf.mxu0  ;;  %v5252_v46 = vadd.f32 %v4065_v57, %v1352_v20  ;;  %v1344_v13 = vadd.f32 %v1343_v4, %v5134_v62 }
 0x12d   : > { %v4032_v53 = vpop.f32.mrf.mxu1 }
 0x12e   : > { %v4069_v3 = vpop.f32.mrf.mxu0  ;;  %4272 = vmatmul.mubr.msk.bf16.gmra.mxu0 %vm1044_vm5, %v4888_v59  ;;  %v5257_v12 = vadd.f32 %v1638_v63, %v1344_v13  ;;  %v1355_v50 = vadd.f32 %v4032_v53, %v5142_v52 }
 0x12f   : > { %4275 = vmatprep.mubr.msk.bf16.mxu0 %vm1044_vm5, %v4891_v54  ;;  %v1346_v21 = vpop.f32.mrf.mxu1 }
 0x130   : > { %v1654_v29 = vpop.f32.mrf.mxu0  ;;  %v5262_v11 = vadd.f32 %v4066_v33, %v1355_v50  ;;  %v1347_v57 = vadd.f32 %v1346_v21, %v5150_v17 }
 0x131   : > { %v4035_v61 = vpop.f32.mrf.mxu1  ;;  %4238 = vmatmul.mubr.msk.bf16.gmra.mxu1 %vm1044_vm5, %v4799_v26 }
 0x132   : > { %v4070_v62 = vpop.f32.mrf.mxu0  ;;  %v5267_v41 = vadd.f32 %v1641_v18, %v1347_v57  ;;  %v1368_v59 = vadd.f32 %v4035_v61, %v5158_v56  ;;  %4241 = vmatprep.mubr.msk.bf16.mxu1 %vm1044_vm5, %v4553_v16 }
 0x133   : > { %v1359_v52 = vpop.f32.mrf.mxu1 }
 0x134   : > { %v1657_v54 = vpop.f32.mrf.mxu0  ;;  %v5272_v63 = vadd.f32 %v4069_v3, %v1368_v59  ;;  %v1360_v24 = vadd.f32 %v1359_v52, %v5166_v42 }
 0x135   : > { %v4036_v47 = vpop.f32.mrf.mxu1 }
 0x136   : > { %v4073_v17 = vpop.f32.mrf.mxu0  ;;  %4276 = vmatmul.mubr.msk.bf16.gmra.mxu0 %vm1044_vm5, %v4906_v40  ;;  %v5277_v26 = vadd.f32 %v1654_v29, %v1360_v24  ;;  %v1371_v33 = vadd.f32 %v4036_v47, %v5175_v49 }
 0x137   : > { %4279 = vmatprep.mubr.msk.bf16.mxu0 %vm1044_vm5, %v4909_v45  ;;  %v1362_v56 = vpop.f32.mrf.mxu1 }
 0x138   : > { %v1670_v16 = vpop.f32.mrf.mxu0  ;;  %v5282_v20 = vadd.f32 %v4070_v62, %v1371_v33  ;;  %v1363_v4 = vadd.f32 %v1362_v56, %v5183_v43 }
 0x139   : > { %v4039_v18 = vpop.f32.mrf.mxu1  ;;  %4242 = vmatmul.mubr.msk.bf16.gmra.mxu1 %vm1044_vm5, %v4590_v34 }
 0x13a   : > { %v4074_v42 = vpop.f32.mrf.mxu0  ;;  %v5287_v13 = vadd.f32 %v1657_v54, %v1363_v4  ;;  %v1384_v40 = vadd.f32 %v4039_v18, %v5196_v37  ;;  %4245 = vmatprep.mubr.msk.bf16.mxu1 %vm1044_vm5, %v4649_v55  ;;  %v2601_v18 = vshrl.u32 %v5192_v7, 16 }
 0x13b   : > { %v1375_v49 = vpop.f32.mrf.mxu1 }
 0x13c   : > { %v1673_v45 = vpop.f32.mrf.mxu0  ;;  %v5292_v53 = vadd.f32 %v4073_v17, %v1384_v40  ;;  %v1376_v3 = vadd.f32 %v1375_v49, %v5205_v0  ;;  %v2815_v40 = vrot.slane %v5192_v7, 1 }
 0x13d   : > { %v4040_v50 = vpop.f32.mrf.mxu1 }
 0x13e   : > { %v4077_v43 = vpop.f32.mrf.mxu0  ;;  %4280 = vmatmul.mubr.msk.bf16.gmra.mxu0 %vm1044_vm5, %v4924_v58  ;;  %v5297_v34 = vadd.f32 %v1670_v16, %v1376_v3  ;;  %v1387_v21 = vadd.f32 %v4040_v50, %v5211_v30 }
 0x13f   : > { %4283 = vmatprep.mubr.msk.bf16.mxu0 %vm1044_vm5, %v4927_v15  ;;  %v1378_v37 = vpop.f32.mrf.mxu1 }
 0x140   : > { %v1686_v55 = vpop.f32.mrf.mxu0  ;;  %v5302_v29 = vadd.f32 %v4074_v42, %v1387_v21  ;;  %v1379_v57 = vadd.f32 %v1378_v37, %v5217_v5 }
 0x141   : > { %v4043_v61 = vpop.f32.mrf.mxu1  ;;  %4246 = vmatmul.mubr.msk.bf16.gmra.mxu1 %vm1044_vm5, %v4680_v27 }
 0x142   : > { %v4078_v0 = vpop.f32.mrf.mxu0  ;;  %v5307_v62 = vadd.f32 %v1673_v45, %v1379_v57  ;;  %v1400_v58 = vadd.f32 %v4043_v61, %v5100_v10  ;;  %4249 = vmatprep.mubr.msk.bf16.mxu1 %vm1044_vm5, %v5730_v14  ;;  %v2608_v45 = vshll.u32 %v5070_v2, 16 }
 0x143   : > { %v1391_v30 = vpop.f32.mrf.mxu1 }
 0x144   : > { %v1689_v15 = vpop.f32.mrf.mxu0  ;;  %v5312_v59 = vadd.f32 %v4077_v43, %v1400_v58  ;;  %v1392_v52 = vadd.f32 %v1391_v30, %v5108_v48  ;;  %v2603_v48 = vshll.u32 %v5192_v7, 16 }
 0x145   : > { %v4044_v54 = vpop.f32.mrf.mxu1 }
 0x146   : > { %v4081_v5 = vpop.f32.mrf.mxu0  ;;  %4284 = vmatmul.mubr.msk.bf16.gmra.mxu0 %vm1044_vm5, %v4942_v22  ;;  %v5317_v27 = vadd.f32 %v1686_v55, %v1392_v52  ;;  %v1403_v24 = vadd.f32 %v4044_v54, %v5116_v19  ;;  %v2605_v42 = vrot.slane %v2603_v48, 1  ;;  %v5740_v55 = vld [vmem:[#allocation2_spill] sm:$0xff]  ;;  %v5742_v54 = vld [vmem:[#allocation4_spill] sm:$0xff] }
 0x147   : > { %4287 = vmatprep.mubr.msk.bf16.mxu0 %vm1044_vm5, %v4945_v32  ;;  %v1394_v10 = vpop.f32.mrf.mxu1 }
 0x148   : > { %v1702_v14 = vpop.f32.mrf.mxu0  ;;  %v5322_v47 = vadd.f32 %v4078_v0, %v1403_v24  ;;  %v1395_v17 = vadd.f32 %v1394_v10, %v5124_v38  ;;  %v2606_v21 = vor.u32 %v2605_v42, %v2601_v18 }
 0x149   : > { %v4047_v33 = vpop.f32.mrf.mxu1  ;;  %4250 = vmatmul.mubr.msk.bf16.gmra.mxu1 %vm1044_vm5, %v5731_v25 }
 0x14a   : > { %v4082_v22 = vpop.f32.mrf.mxu0  ;;  %v5328_v56 = vadd.f32 %v1689_v15, %v1395_v17  ;;  %v1416_v19 = vadd.f32 %v4047_v33, %v5132_v51  ;;  %4253 = vmatprep.mubr.msk.bf16.mxu1 %vm1044_vm5, %v4786_v9  ;;  %v5743_v17 = vld [vmem:[#allocation5_spill] sm:$0xff] }
 0x14b   : > { %v1407_v32 = vpop.f32.mrf.mxu1 }
 0x14c   : > { %v1705_v16 = vpop.f32.mrf.mxu0  ;;  %v5333_v4 = vadd.f32 %v4081_v5, %v1416_v19  ;;  %v1408_v38 = vadd.f32 %v1407_v32, %v5140_v6  ;;  %v2816_v6 = vrot.slane %v5070_v2, 1  ;;  %v2610_v2 = vrot.slane %v2608_v45, 1  ;;  %v5744_v32 = vld [vmem:[#allocation6_spill] sm:$0xff] }
 0x14d   : > { %v4048_v25 = vpop.f32.mrf.mxu1 }
 0x14e   : > { %v4085_v49 = vpop.f32.mrf.mxu0  ;;  %4288 = vmatmul.mubr.msk.bf16.gmra.mxu0 %vm1044_vm5, %v4958_v60  ;;  %v5340_v51 = vadd.f32 %v1702_v14, %v1408_v38  ;;  %v1419_v9 = vadd.f32 %v4048_v25, %v5148_v8  ;;  %v2817_v57 = vsel %vm1486_vm6, %v2815_v40, %v2816_v6  ;;  %v2611_v5 = vsel %vm849_vm3, %v2606_v21, %v2610_v2  ;;  %v5745_v40 = vld [vmem:[#allocation7_spill] sm:$0xff]  ;;  %v5746_v6 = vld [vmem:[#allocation8_spill] sm:$0xff] }
 0x14f   : > { %4291 = vmatprep.mubr.msk.bf16.mxu0 %vm1044_vm5, %v5201_v23  ;;  %v1410_v3 = vpop.f32.mrf.mxu1 }
 0x150   : > { %v1718_v50 = vpop.f32.mrf.mxu0  ;;  %v5347_v43 = vadd.f32 %v4082_v22, %v1419_v9  ;;  %v1411_v7 = vadd.f32 %v1410_v3, %v5156_v39  ;;  %v5741_v39 = vld [vmem:[#allocation3_spill] sm:$0xff] }
 0x151   : > { %v4051_v37 = vpop.f32.mrf.mxu1  ;;  %4254 = vmatmul.mubr.msk.bf16.gmra.mxu1 %vm1044_vm5, %v4809_v1 }
 0x152   : > { %v4086_v60 = vpop.f32.mrf.mxu0  ;;  %v5352_v8 = vadd.f32 %v1705_v16, %v1411_v7  ;;  %v1432_v23 = vadd.f32 %v4051_v37, %v5164_v35  ;;  %4257 = vmatprep.mubr.msk.bf16.mxu1 %vm1044_vm5, %v5740_v55  ;;  %v5747_v37 = vld [vmem:[#allocation9_spill] sm:$0xff] }
 0x153   : > { %v1423_v61 = vpop.f32.mrf.mxu1 }
 0x154   : > { %v1721_v0 = vpop.f32.mrf.mxu0  ;;  %v5358_v58 = vadd.f32 %v4085_v49, %v1432_v23  ;;  %v1424_v30 = vadd.f32 %v1423_v61, %v5741_v39 }
 0x155   : > { %v4052_v15 = vpop.f32.mrf.mxu1 }
 0x156   : > { %v4089_v52 = vpop.f32.mrf.mxu0  ;;  %4292 = vmatmul.mubr.msk.bf16.gmra.mxu0 %vm1044_vm5, %v2817_v57  ;;  %v5362_v1 = vadd.f32 %v1718_v50, %v1424_v30  ;;  %v1435_v35 = vadd.f32 %v4052_v15, %v5742_v54 }
 0x157   : > { %v1426_v24 = vpop.f32.mrf.mxu1 }
 0x158   : > { %v1734_v10 = vpop.f32.mrf.mxu0  ;;  %v5366_v14 = vadd.f32 %v4086_v60, %v1435_v35  ;;  %v1427_v48 = vadd.f32 %v1426_v24, %v5743_v17 }
 0x159   : > { %v4055_v33 = vpop.f32.mrf.mxu1  ;;  %4258 = vmatmul.mubr.msk.bf16.gmra.mxu1 %vm1044_vm5, %v2611_v5 }
 0x15a   : > { %v4090_v22 = vpop.f32.mrf.mxu0  ;;  %v5370_v19 = vadd.f32 %v1721_v0, %v1427_v48  ;;  %v1448_v16 = vadd.f32 %v4055_v33, %v5744_v32 }
 0x15b   : > { %v1439_v38 = vpop.f32.mrf.mxu1 }
 0x15c   : > { %v1737_v18 = vpop.f32.mrf.mxu0  ;;  %v5373_v42 = vadd.f32 %v4089_v52, %v1448_v16  ;;  %v1440_v25 = vadd.f32 %v1439_v38, %v5745_v40 }
 0x15d   : > { %v4056_v49 = vpop.f32.mrf.mxu1 }
 0x15e   : > { %v4129_v9 = vpop.f32.mrf.mxu0  ;;  %v5376_v45 = vadd.f32 %v1734_v10, %v1440_v25  ;;  %v1451_v3 = vadd.f32 %v4056_v49, %v5746_v6 }
 0x15f   : > { %v1442_v50 = vpop.f32.mrf.mxu1 }
 0x160   : > { %v2035_v7 = vpop.f32.mrf.mxu0  ;;  %v5379_v21 = vadd.f32 %v4090_v22, %v1451_v3  ;;  %v1443_v60 = vadd.f32 %v1442_v50, %v5747_v37 }
 0x161   : > { %v4095_v23 = vpop.f32.mrf.mxu1 }
 0x162   : > { %v4130_v55 = vpop.f32.mrf.mxu0  ;;  %v5382_v2 = vadd.f32 %v1737_v18, %v1443_v60  ;;  %v1952_v57 = vadd.f32 %v4095_v23, %v5232_v44 }
 0x163   : > { %v1823_v61 = vpop.f32.mrf.mxu1 }
 0x164   : > { %v2038_v0 = vpop.f32.mrf.mxu0  ;;  %v5385_v39 = vadd.f32 %v4129_v9, %v1952_v57  ;;  %v1950_v30 = vadd.f32 %v1823_v61, %v5237_v31 }
 0x165   : > { %v4096_v15 = vpop.f32.mrf.mxu1 }
 0x166   : > { %v4133_v52 = vpop.f32.mrf.mxu0  ;;  %v5388_v54 = vadd.f32 %v2035_v7, %v1950_v30  ;;  %v1953_v35 = vadd.f32 %v4096_v15, %v5242_v28 }
 0x167   : > { %v1826_v5 = vpop.f32.mrf.mxu1 }
 0x168   : > { %v2051_v24 = vpop.f32.mrf.mxu0  ;;  %v5391_v10 = vadd.f32 %v4130_v55, %v1953_v35  ;;  %v1951_v17 = vadd.f32 %v1826_v5, %v5247_v36 }
 0x169   : > { %v4099_v48 = vpop.f32.mrf.mxu1 }
 0x16a   : > { %v4134_v44 = vpop.f32.mrf.mxu0  ;;  %v5394_v33 = vadd.f32 %v2038_v0, %v1951_v17  ;;  %v1956_v22 = vadd.f32 %v4099_v48, %v5252_v46 }
 0x16b   : > { %v1839_v32 = vpop.f32.mrf.mxu1 }
 0x16c   : > { %v2054_v31 = vpop.f32.mrf.mxu0  ;;  %v5397_v16 = vadd.f32 %v4133_v52, %v1956_v22  ;;  %v1954_v38 = vadd.f32 %v1839_v32, %v5257_v12 }
 0x16d   : > { %v4100_v18 = vpop.f32.mrf.mxu1 }
 0x16e   : > { %v4137_v28 = vpop.f32.mrf.mxu0  ;;  %v5400_v40 = vadd.f32 %v2051_v24, %v1954_v38  ;;  %v1957_v25 = vadd.f32 %v4100_v18, %v5262_v11 }
 0x16f   : > { %v1842_v49 = vpop.f32.mrf.mxu1 }
 0x170   : > { %v2067_v36 = vpop.f32.mrf.mxu0  ;;  %v5403_v9 = vadd.f32 %v4134_v44, %v1957_v25  ;;  %v1955_v6 = vadd.f32 %v1842_v49, %v5267_v41 }
 0x171   : > { %v4103_v3 = vpop.f32.mrf.mxu1 }
 0x172   : > { %v4138_v46 = vpop.f32.mrf.mxu0  ;;  %v5406_v50 = vadd.f32 %v2054_v31, %v1955_v6  ;;  %v1960_v7 = vadd.f32 %v4103_v3, %v5272_v63 }
 0x173   : > { %v1855_v37 = vpop.f32.mrf.mxu1 }
 0x174   : > { %v2070_v12 = vpop.f32.mrf.mxu0  ;;  %v5409_v60 = vadd.f32 %v4137_v28, %v1960_v7  ;;  %v1958_v23 = vadd.f32 %v1855_v37, %v5277_v26 }
 0x175   : > { %v4104_v55 = vpop.f32.mrf.mxu1 }
 0x176   : > { %v4141_v11 = vpop.f32.mrf.mxu0  ;;  %v5412_v57 = vadd.f32 %v2067_v36, %v1958_v23  ;;  %v1961_v61 = vadd.f32 %v4104_v55, %v5282_v20 }
 0x177   : > { %v1858_v0 = vpop.f32.mrf.mxu1 }
 0x178   : > { %v2083_v41 = vpop.f32.mrf.mxu0  ;;  %v5415_v30 = vadd.f32 %v4138_v46, %v1961_v61  ;;  %v1959_v15 = vadd.f32 %v1858_v0, %v5287_v13 }
 0x179   : > { %v4107_v52 = vpop.f32.mrf.mxu1 }
 0x17a   : > { %v4142_v63 = vpop.f32.mrf.mxu0  ;;  %v5418_v35 = vadd.f32 %v2070_v12, %v1959_v15  ;;  %v1964_v5 = vadd.f32 %v4107_v52, %v5292_v53 }
 0x17b   : > { %v1871_v24 = vpop.f32.mrf.mxu1 }
 0x17c   : > { %v2086_v26 = vpop.f32.mrf.mxu0  ;;  %v5421_v17 = vadd.f32 %v4141_v11, %v1964_v5  ;;  %v1962_v48 = vadd.f32 %v1871_v24, %v5297_v34 }
 0x17d   : > { %v4108_v44 = vpop.f32.mrf.mxu1 }
 0x17e   : > { %v4145_v20 = vpop.f32.mrf.mxu0  ;;  %v5424_v22 = vadd.f32 %v2083_v41, %v1962_v48  ;;  %v1965_v32 = vadd.f32 %v4108_v44, %v5302_v29 }
 0x17f   : > { %v1874_v31 = vpop.f32.mrf.mxu1 }
 0x180   : > { %v2099_v13 = vpop.f32.mrf.mxu0  ;;  %v5427_v38 = vadd.f32 %v4142_v63, %v1965_v32  ;;  %v1963_v18 = vadd.f32 %v1874_v31, %v5307_v62 }
 0x181   : > { %v4111_v28 = vpop.f32.mrf.mxu1 }
 0x182   : > { %v4146_v53 = vpop.f32.mrf.mxu0  ;;  %v5430_v25 = vadd.f32 %v2086_v26, %v1963_v18  ;;  %v1968_v49 = vadd.f32 %v4111_v28, %v5312_v59 }
 0x183   : > { %v1887_v36 = vpop.f32.mrf.mxu1 }
 0x184   : > { %v2102_v34 = vpop.f32.mrf.mxu0  ;;  %v5433_v6 = vadd.f32 %v4145_v20, %v1968_v49  ;;  %v1966_v3 = vadd.f32 %v1887_v36, %v5317_v27 }
 0x185   : > { %v4112_v46 = vpop.f32.mrf.mxu1 }
 0x186   : > { %v4149_v29 = vpop.f32.mrf.mxu0  ;;  %v5436_v7 = vadd.f32 %v2099_v13, %v1966_v3  ;;  %v1969_v37 = vadd.f32 %v4112_v46, %v5322_v47 }
 0x187   : > { %v1890_v12 = vpop.f32.mrf.mxu1 }
 0x188   : > { %v2115_v62 = vpop.f32.mrf.mxu0  ;;  %v5439_v23 = vadd.f32 %v4146_v53, %v1969_v37  ;;  %v1967_v55 = vadd.f32 %v1890_v12, %v5328_v56 }
 0x189   : > { %v4115_v11 = vpop.f32.mrf.mxu1 }
 0x18a   : > { %v4150_v59 = vpop.f32.mrf.mxu0  ;;  %v5442_v61 = vadd.f32 %v2102_v34, %v1967_v55  ;;  %v1972_v0 = vadd.f32 %v4115_v11, %v5333_v4 }
 0x18b   : > { %v1903_v41 = vpop.f32.mrf.mxu1 }
 0x18c   : > { %v2118_v27 = vpop.f32.mrf.mxu0  ;;  %v5445_v15 = vadd.f32 %v4149_v29, %v1972_v0  ;;  %v1970_v52 = vadd.f32 %v1903_v41, %v5340_v51 }
 0x18d   : > { %v4116_v63 = vpop.f32.mrf.mxu1 }
 0x18e   : > { %v4153_v47 = vpop.f32.mrf.mxu0  ;;  %v5448_v5 = vadd.f32 %v2115_v62, %v1970_v52  ;;  %v1973_v24 = vadd.f32 %v4116_v63, %v5347_v43 }
 0x18f   : > { %v1906_v26 = vpop.f32.mrf.mxu1 }
 0x190   : > { %5748 = vst [vmem:[#allocation2_spill] sm:$0xff] %v5448_v5  ;;  %v2131_v56 = vpop.f32.mrf.mxu0  ;;  %v5451_v48 = vadd.f32 %v4150_v59, %v1973_v24  ;;  %v1971_v44 = vadd.f32 %v1906_v26, %v5352_v8 }
 0x191   : > { %v4119_v20 = vpop.f32.mrf.mxu1 }
 0x192   : > { %5749 = vst [vmem:[#allocation3_spill] sm:$0xff] %v5451_v48  ;;  %v4154_v4 = vpop.f32.mrf.mxu0  ;;  %v5454_v32 = vadd.f32 %v2118_v27, %v1971_v44  ;;  %v1976_v31 = vadd.f32 %v4119_v20, %v5358_v58 }
 0x193   : > { %v1919_v13 = vpop.f32.mrf.mxu1 }
 0x194   : > { %5750 = vst [vmem:[#allocation4_spill] sm:$0xff] %v5454_v32  ;;  %v2134_v51 = vpop.f32.mrf.mxu0  ;;  %v5457_v18 = vadd.f32 %v4153_v47, %v1976_v31  ;;  %v1974_v28 = vadd.f32 %v1919_v13, %v5362_v1 }
 0x195   : > { %v4120_v53 = vpop.f32.mrf.mxu1 }
 0x196   : > { %v4157_v43 = vpop.f32.mrf.mxu0  ;;  %v5460_v49 = vadd.f32 %v2131_v56, %v1974_v28  ;;  %v1977_v36 = vadd.f32 %v4120_v53, %v5366_v14 }
 0x197   : > { %v1922_v34 = vpop.f32.mrf.mxu1 }
 0x198   : > { %5751 = vst [vmem:[#allocation5_spill] sm:$0xff] %v5460_v49  ;;  %v2147_v8 = vpop.f32.mrf.mxu0  ;;  %v5463_v3 = vadd.f32 %v4154_v4, %v1977_v36  ;;  %v1975_v46 = vadd.f32 %v1922_v34, %v5370_v19 }
 0x199   : > { %v4123_v29 = vpop.f32.mrf.mxu1 }
 0x19a   : > { %5752 = vst [vmem:[#allocation6_spill] sm:$0xff] %v5463_v3  ;;  %v4158_v58 = vpop.f32.mrf.mxu0  ;;  %v5466_v37 = vadd.f32 %v2134_v51, %v1975_v46  ;;  %v1980_v12 = vadd.f32 %v4123_v29, %v5373_v42 }
 0x19b   : > { %v1935_v62 = vpop.f32.mrf.mxu1 }
 0x19c   : > { %5753 = vst [vmem:[#allocation7_spill] sm:$0xff] %v5466_v37  ;;  %v2150_v1 = vpop.f32.mrf.mxu0  ;;  %v5469_v55 = vadd.f32 %v4157_v43, %v1980_v12  ;;  %v1978_v11 = vadd.f32 %v1935_v62, %v5376_v45 }
 0x19d   : > { %v4124_v59 = vpop.f32.mrf.mxu1 }
 0x19e   : > { %v4197_v14 = vpop.f32.mrf.mxu0  ;;  %v5472_v0 = vadd.f32 %v2147_v8, %v1978_v11  ;;  %v1981_v41 = vadd.f32 %v4124_v59, %v5379_v21 }
 0x19f   : > { %v1938_v27 = vpop.f32.mrf.mxu1 }
 0x1a0   : > { %5754 = vst [vmem:[#allocation8_spill] sm:$0xff] %v5472_v0  ;;  %v2442_v19 = vpop.f32.mrf.mxu0  ;;  %v5475_v52 = vadd.f32 %v4158_v58, %v1981_v41  ;;  %v1979_v63 = vadd.f32 %v1938_v27, %v5382_v2 }
 0x1a1   : > { %v4163_v47 = vpop.f32.mrf.mxu1 }
 0x1a2   : > { %5755 = vst [vmem:[#allocation9_spill] sm:$0xff] %v5475_v52  ;;  %v5478_v42 = vpop.f32.mrf.mxu0  ;;  %v5480_v24 = vadd.f32 %v2150_v1, %v1979_v63  ;;  %v2370_v26 = vadd.f32 %v4163_v47, %v5385_v39 }
 0x1a3   : > { %v2241_v45 = vpop.f32.mrf.mxu1 }
 0x1a4   : > { %5756 = vst [vmem:[#allocation10_spill] sm:$0xff] %v5480_v24  ;;  %v5483_v56 = vpop.f32.mrf.mxu0  ;;  %v5485_v44 = vadd.f32 %v4197_v14, %v2370_v26  ;;  %v2368_v21 = vadd.f32 %v2241_v45, %v5388_v54 }
 0x1a5   : > { %v5488_v20 = vpop.f32.mrf.mxu1 }
 0x1a6   : > { %v4201_v4 = vpop.f32.mrf.mxu0  ;;  %v5490_v31 = vadd.f32 %v2442_v19, %v2368_v21 }
 0x1a7   : > { %v5492_v2 = vpop.f32.mrf.mxu1 }
 0x1a8   : > { %v5494_v13 = vpop.f32.mrf.mxu0 }
 0x1a9   : > { %v4167_v51 = vpop.f32.mrf.mxu1 }
 0x1aa   : > { %v5496_v28 = vpop.f32.mrf.mxu0  ;;  %v2374_v39 = vadd.f32 %v4167_v51, %v5397_v16 }
 0x1ab   : > { %v5499_v53 = vpop.f32.mrf.mxu1 }
 0x1ac   : > { %v5501_v43 = vpop.f32.mrf.mxu0  ;;  %v5503_v36 = vadd.f32 %v4201_v4, %v2374_v39 }
 0x1ad   : > { %v5505_v54 = vpop.f32.mrf.mxu1 }
 0x1ae   : > { %v4205_v34 = vpop.f32.mrf.mxu0 }
 0x1af   : > { %v5507_v8 = vpop.f32.mrf.mxu1 }
 0x1b0   : > { %v5509_v46 = vpop.f32.mrf.mxu0 }
 0x1b1   : > { %v4171_v29 = vpop.f32.mrf.mxu1 }
 0x1b2   : > { %v5511_v58 = vpop.f32.mrf.mxu0  ;;  %v2378_v12 = vadd.f32 %v4171_v29, %v5409_v60 }
 0x1b3   : > { %v5514_v62 = vpop.f32.mrf.mxu1 }
 0x1b4   : > { %v5516_v16 = vpop.f32.mrf.mxu0  ;;  %v5518_v1 = vadd.f32 %v4205_v34, %v2378_v12 }
 0x1b5   : > { %v5520_v11 = vpop.f32.mrf.mxu1 }
 0x1b6   : > { %v4209_v59 = vpop.f32.mrf.mxu0 }
 0x1b7   : > { %v5522_v14 = vpop.f32.mrf.mxu1 }
 0x1b8   : > { %v5524_v41 = vpop.f32.mrf.mxu0 }
 0x1b9   : > { %v4175_v27 = vpop.f32.mrf.mxu1 }
 0x1ba   : > { %v5526_v19 = vpop.f32.mrf.mxu0  ;;  %v2382_v63 = vadd.f32 %v4175_v27, %v5421_v17 }
 0x1bb   : > { %v5529_v47 = vpop.f32.mrf.mxu1 }
 0x1bc   : > { %v5531_v60 = vpop.f32.mrf.mxu0  ;;  %v5533_v26 = vadd.f32 %v4209_v59, %v2382_v63 }
 0x1bd   : > { %v5535_v45 = vpop.f32.mrf.mxu1 }
 0x1be   : > { %v4213_v21 = vpop.f32.mrf.mxu0 }
 0x1bf   : > { %v5537_v4 = vpop.f32.mrf.mxu1 }
 0x1c0   : > { %v5539_v51 = vpop.f32.mrf.mxu0 }
 0x1c1   : > { %v4179_v39 = vpop.f32.mrf.mxu1 }
 0x1c2   : > { %v5541_v34 = vpop.f32.mrf.mxu0  ;;  %v2386_v29 = vadd.f32 %v4179_v39, %v5433_v6 }
 0x1c3   : > { %v5544_v12 = vpop.f32.mrf.mxu1 }
 0x1c4   : > { %v5546_v17 = vpop.f32.mrf.mxu0  ;;  %v5548_v27 = vadd.f32 %v4213_v21, %v2386_v29 }
 0x1c5   : > { %5757 = vst [vmem:[#allocation11_spill] sm:$0xff] %v5546_v17  ;;  %v5550_v59 = vpop.f32.mrf.mxu1 }
 0x1c6   : > { %v4217_v63 = vpop.f32.mrf.mxu0 }
 0x1c7   : > { %v5552_v24 = vpop.f32.mrf.mxu1 }
 0x1c8   : > { %v5554_v52 = vpop.f32.mrf.mxu0 }
 0x1c9   : > { %5758 = vst [vmem:[#allocation12_spill] sm:$0xff] %v5554_v52  ;;  %v4183_v0 = vpop.f32.mrf.mxu1 }
 0x1ca   : > { %v5556_v37 = vpop.f32.mrf.mxu0  ;;  %v2390_v3 = vadd.f32 %v4183_v0, %v5445_v15 }
 0x1cb   : > { %5759 = vst [vmem:[#allocation13_spill] sm:$0xff] %v5556_v37  ;;  %v5559_v49 = vpop.f32.mrf.mxu1 }
 0x1cc   : > { %5760 = vst [vmem:[#allocation14_spill] sm:$0xff] %v5559_v49  ;;  %v5561_v6 = vpop.f32.mrf.mxu0  ;;  %v5563_v39 = vadd.f32 %v4217_v63, %v2390_v3 }
 0x1cd   : > { %5761 = vst [vmem:[#allocation15_spill] sm:$0xff] %v5561_v6  ;;  %v5565_v21 = vpop.f32.mrf.mxu1 }
 0x1ce   : > { %5762 = vst [vmem:[#allocation16_spill] sm:$0xff] %v5563_v39  ;;  %5763 = vst [vmem:[#allocation17_spill] sm:$0xff] %v5565_v21  ;;  %v4221_v29 = vpop.f32.mrf.mxu0 }
 0x1cf   : > { %v5567_v32 = vpop.f32.mrf.mxu1 }
 0x1d0   : > { %5764 = vst [vmem:[#allocation18_spill] sm:$0xff] %v5567_v32  ;;  %v5569_v48 = vpop.f32.mrf.mxu0 }
 0x1d1   : > { %5765 = vst [vmem:[#allocation19_spill] sm:$0xff] %v5569_v48  ;;  %v4187_v5 = vpop.f32.mrf.mxu1 }
 0x1d2   : > { %v5571_v52 = vpop.f32.mrf.mxu0  ;;  %v2394_v37 = vadd.f32 %v4187_v5, %v5457_v18 }
 0x1d3   : > { %5766 = vst [vmem:[#allocation20_spill] sm:$0xff] %v5571_v52  ;;  %v5574_v17 = vpop.f32.mrf.mxu1 }
 0x1d4   : > { %5767 = vst [vmem:[#allocation21_spill] sm:$0xff] %v5574_v17  ;;  %v5576_v15 = vpop.f32.mrf.mxu0  ;;  %v5578_v0 = vadd.f32 %v4221_v29, %v2394_v37 }
 0x1d5   : > { %5768 = vst [vmem:[#allocation22_spill] sm:$0xff] %v5576_v15  ;;  %v5580_v3 = vpop.f32.mrf.mxu1 }
 0x1d6   : > { %5769 = vst [vmem:[#allocation23_spill] sm:$0xff] %v5578_v0  ;;  %5770 = vst [vmem:[#allocation24_spill] sm:$0xff] %v5580_v3  ;;  %v4225_v63 = vpop.f32.mrf.mxu0 }
 0x1d7   : > { %v5582_v6 = vpop.f32.mrf.mxu1 }
 0x1d8   : > { %5771 = vst [vmem:[#allocation25_spill] sm:$0xff] %v5582_v6  ;;  %v5584_v39 = vpop.f32.mrf.mxu0 }
 0x1d9   : > { %5772 = vst [vmem:[#allocation26_spill] sm:$0xff] %v5584_v39  ;;  %v4191_v32 = vpop.f32.mrf.mxu1  ;;  %v2371_v39 = vadd.f32 %v5488_v20, %v5391_v10  ;;  %v2372_v10 = vadd.f32 %v5499_v53, %v5400_v40 }
 0x1da   : > { %v5586_v48 = vpop.f32.mrf.mxu0  ;;  %v2398_v52 = vadd.f32 %v4191_v32, %v5469_v55  ;;  %v2369_v32 = vadd.f32 %v5492_v2, %v5394_v33  ;;  %v2375_v33 = vadd.f32 %v5505_v54, %v5403_v9 }
 0x1db   : > { %5773 = vst [vmem:[#allocation27_spill] sm:$0xff] %v5586_v48  ;;  %v5589_v21 = vpop.f32.mrf.mxu1  ;;  %v2573_v9 = vadd.f32 %v5494_v13, %v2372_v10 }
 0x1dc   : > { %5774 = vst [vmem:[#allocation28_spill] sm:$0xff] %v5589_v21  ;;  %v5591_v5 = vpop.f32.mrf.mxu0  ;;  %v5593_v18 = vadd.f32 %v4225_v63, %v2398_v52  ;;  %v2572_v52 = vadd.f32 %v5478_v42, %v2371_v39  ;;  %v2576_v54 = vadd.f32 %v5496_v28, %v2375_v33 }
 0x1dd   : > { %5775 = vst [vmem:[#allocation29_spill] sm:$0xff] %v5591_v5  ;;  %v5595_v37 = vpop.f32.mrf.mxu1 }
 0x1de   : > { %5776 = vst [vmem:[#allocation30_spill] sm:$0xff] %v5593_v18  ;;  %5777 = vst [vmem:[#allocation31_spill] sm:$0xff] %v5595_v37  ;;  %v4265_v29 = vpop.f32.mrf.mxu0  ;;  %v2570_v37 = vadd.f32 %v5483_v56, %v2369_v32  ;;  %v2373_v56 = vadd.f32 %v5507_v8, %v5406_v50  ;;  %v2376_v8 = vadd.f32 %v5514_v62, %v5412_v57 }
 0x1df   : > { %v5597_v15 = vpop.f32.mrf.mxu1 }
 0x1e0   : > { %5778 = vst [vmem:[#allocation32_spill] sm:$0xff] %v5597_v15  ;;  %v2860_v0 = vpop.f32.mrf.mxu0  ;;  %v2574_v50 = vadd.f32 %v5501_v43, %v2373_v56  ;;  %v2577_v56 = vadd.f32 %v5509_v46, %v2376_v8 }
 0x1e1   : > { %v4231_v6 = vpop.f32.mrf.mxu1 }
 0x1e2   : > { %v4266_v3 = vpop.f32.mrf.mxu0  ;;  %v2783_v63 = vadd.f32 %v4231_v6, %v5485_v44 }
 0x1e3   : > { %v2654_v55 = vpop.f32.mrf.mxu1 }
 0x1e4   : > { %v2863_v48 = vpop.f32.mrf.mxu0  ;;  %v2781_v5 = vadd.f32 %v2654_v55, %v5490_v31  ;;  %v2989_v17 = vadd.f32 %v4265_v29, %v2783_v63 }
 0x1e5   : > { %v4232_v18 = vpop.f32.mrf.mxu1 }
 0x1e6   : > { %v4269_v15 = vpop.f32.mrf.mxu0  ;;  %v2784_v21 = vadd.f32 %v4232_v18, %v2572_v52  ;;  %v2987_v49 = vadd.f32 %v2860_v0, %v2781_v5  ;;  %v3218_v32 = vmul.f32 %v2989_v17, %v2989_v17  ;;  %v2379_v52 = vadd.f32 %v5520_v11, %v5415_v30 }
 0x1e7   : > { %v2657_v20 = vpop.f32.mrf.mxu1 }
 0x1e8   : > { %v2876_v2 = vpop.f32.mrf.mxu0  ;;  %v2990_v42 = vadd.f32 %v4266_v3, %v2784_v21  ;;  %v2782_v39 = vadd.f32 %v2657_v20, %v2570_v37  ;;  %v3216_v3 = vmul.f32 %v2987_v49, %v2987_v49 }
 0x1e9   : > { %v4235_v44 = vpop.f32.mrf.mxu1 }
 0x1ea   : > { %v4270_v40 = vpop.f32.mrf.mxu0  ;;  %v3748_v31 = vpack.c.bf16 %v2990_v42, %v2989_v17  ;;  %v2988_v53 = vadd.f32 %v2863_v48, %v2782_v39  ;;  %v2787_v6 = vadd.f32 %v4235_v44, %v5503_v36  ;;  %v3219_v63 = vmul.f32 %v2990_v42, %v2990_v42 }
 0x1eb   : > { %v2670_v21 = vpop.f32.mrf.mxu1 }
 0x1ec   : > { %v2879_v0 = vpop.f32.mrf.mxu0  ;;  %3821 = vst [vmem:[%s5615_s14 + $0x8] sm:$0xff] %v3748_v31   ;;  %v3743_v5 = vpack.c.bf16 %v2988_v53, %v2987_v49  ;;  %v3179_v18 = vadd.f32 %v2988_v53, %v2987_v49  ;;  %v3217_v37 = vmul.f32 %v2988_v53, %v2988_v53  ;;  %v2785_v48 = vadd.f32 %v2670_v21, %v2573_v9 }
 0x1ed   : > { %v4236_v29 = vpop.f32.mrf.mxu1  ;;  %v2993_v10 = vadd.f32 %v4269_v15, %v2787_v6 }
 0x1ee   : > { %v4273_v13 = vpop.f32.mrf.mxu0  ;;  %3744 = vst [vmem:[%s5615_s14] sm:$0xff] %v3743_v5   ;;  %v3180_v28 = vadd.f32 %v3179_v18, %v2989_v17  ;;  %v3248_v55 = vadd.f32 %v3217_v37, %v3216_v3  ;;  %v2788_v36 = vadd.f32 %v4236_v29, %v2576_v54  ;;  %v2991_v49 = vadd.f32 %v2876_v2, %v2785_v48 }
 0x1ef   : > { %v2673_v33 = vpop.f32.mrf.mxu1  ;;  %v2377_v17 = vadd.f32 %v5522_v14, %v5418_v35  ;;  %v2383_v37 = vadd.f32 %v5535_v45, %v5427_v38  ;;  %v2381_v38 = vadd.f32 %v5537_v4, %v5430_v25 }
 0x1f0   : > { %v2892_v20 = vpop.f32.mrf.mxu0  ;;  %v3249_v43 = vadd.f32 %v3248_v55, %v3218_v32  ;;  %v3181_v39 = vadd.f32 %v3180_v28, %v2990_v42  ;;  %v2994_v57 = vadd.f32 %v4270_v40, %v2788_v36  ;;  %v2786_v62 = vadd.f32 %v2673_v33, %v2574_v50 }
 0x1f1   : > { %v4239_v44 = vpop.f32.mrf.mxu1  ;;  %v3220_v9 = vmul.f32 %v2991_v49, %v2991_v49  ;;  %v2580_v42 = vadd.f32 %v5511_v58, %v2379_v52  ;;  %v2578_v18 = vadd.f32 %v5516_v16, %v2377_v17  ;;  %v3222_v58 = vmul.f32 %v2993_v10, %v2993_v10 }
 0x1f2   : > { %v4274_v31 = vpop.f32.mrf.mxu0  ;;  %v3182_v53 = vadd.f32 %v3181_v39, %v2991_v49  ;;  %v3250_v30 = vadd.f32 %v3249_v43, %v3219_v63  ;;  %v3758_v11 = vpack.c.bf16 %v2994_v57, %v2993_v10  ;;  %v2992_v15 = vadd.f32 %v2879_v0, %v2786_v62 }
 0x1f3   : > { %v2686_v2 = vpop.f32.mrf.mxu1  ;;  %v2791_v40 = vadd.f32 %v4239_v44, %v5518_v1  ;;  %v2380_v0 = vadd.f32 %v5529_v47, %v5424_v22  ;;  %v3223_v52 = vmul.f32 %v2994_v57, %v2994_v57  ;;  %v2584_v33 = vadd.f32 %v5526_v19, %v2383_v37 }
 0x1f4   : > { %v2895_v54 = vpop.f32.mrf.mxu0  ;;  %v3251_v6 = vadd.f32 %v3250_v30, %v3220_v9  ;;  %3823 = vst [vmem:[%s5615_s14 + $0x18] sm:$0xff] %v3758_v11   ;;  %v2789_v46 = vadd.f32 %v2686_v2, %v2577_v56  ;;  %v3753_v21 = vpack.c.bf16 %v2992_v15, %v2991_v49  ;;  %v3183_v3 = vadd.f32 %v3182_v53, %v2992_v15 }
 0x1f5   : > { %v3221_v35 = vmul.f32 %v2992_v15, %v2992_v15  ;;  %v4240_v14 = vpop.f32.mrf.mxu1  ;;  %v2997_v28 = vadd.f32 %v4273_v13, %v2791_v40  ;;  %v2581_v47 = vadd.f32 %v5524_v41, %v2380_v0  ;;  %v2582_v4 = vadd.f32 %v5531_v60, %v2381_v38 }
 0x1f6   : > { %v4277_v5 = vpop.f32.mrf.mxu0  ;;  %v2792_v50 = vadd.f32 %v4240_v14, %v2580_v42  ;;  %3822 = vst [vmem:[%s5615_s14 + $0x10] sm:$0xff] %v3753_v21   ;;  %v3184_v8 = vadd.f32 %v3183_v3, %v2993_v10  ;;  %v2995_v1 = vadd.f32 %v2892_v20, %v2789_v46  ;;  %v2384_v19 = vadd.f32 %v5544_v12, %v5436_v7 }
 0x1f7   : > { %v3252_v48 = vadd.f32 %v3251_v6, %v3221_v35  ;;  %v2689_v29 = vpop.f32.mrf.mxu1  ;;  %v2387_v9 = vadd.f32 %v5550_v59, %v5439_v23  ;;  %v3226_v11 = vmul.f32 %v2997_v28, %v2997_v28  ;;  %v2385_v23 = vadd.f32 %v5552_v24, %v5442_v61  ;;  %v5779_v24 = vld [vmem:[#allocation11_spill] sm:$0xff] }
 0x1f8   : > { %v2908_v32 = vpop.f32.mrf.mxu0  ;;  %v2998_v55 = vadd.f32 %v4274_v31, %v2792_v50  ;;  %v2790_v36 = vadd.f32 %v2689_v29, %v2578_v18  ;;  %v3185_v63 = vadd.f32 %v3184_v8, %v2994_v57  ;;  %v3224_v43 = vmul.f32 %v2995_v1, %v2995_v1 }
 0x1f9   : > { %v3253_v16 = vadd.f32 %v3252_v48, %v3222_v58  ;;  %v4243_v49 = vpop.f32.mrf.mxu1  ;;  %v2585_v12 = vadd.f32 %v5539_v51, %v2384_v19  ;;  %v2588_v18 = vadd.f32 %v5541_v34, %v2387_v9  ;;  %v5781_v34 = vld [vmem:[#allocation14_spill] sm:$0xff] }
 0x1fa   : > { %v4278_v22 = vpop.f32.mrf.mxu0  ;;  %v3768_v45 = vpack.c.bf16 %v2998_v55, %v2997_v28  ;;  %v2996_v10 = vadd.f32 %v2895_v54, %v2790_v36  ;;  %v3186_v20 = vadd.f32 %v3185_v63, %v2995_v1  ;;  %v2795_v17 = vadd.f32 %v4243_v49, %v5533_v26  ;;  %v5780_v36 = vld [vmem:[#allocation2_spill] sm:$0xff]  ;;  %v5783_v63 = vld [vmem:[#allocation17_spill] sm:$0xff] }
 0x1fb   : > { %v3254_v13 = vadd.f32 %v3253_v16, %v3223_v52  ;;  %v2702_v39 = vpop.f32.mrf.mxu1  ;;  %v3227_v21 = vmul.f32 %v2998_v55, %v2998_v55  ;;  %v2388_v52 = vadd.f32 %v5781_v34, %v5780_v36  ;;  %v5782_v16 = vld [vmem:[#allocation3_spill] sm:$0xff] }
 0x1fc   : > { %v2911_v62 = vpop.f32.mrf.mxu0  ;;  %3825 = vst [vmem:[%s5615_s14 + $0x28] sm:$0xff] %v3768_v45   ;;  %v3763_v56 = vpack.c.bf16 %v2996_v10, %v2995_v1  ;;  %v3225_v57 = vmul.f32 %v2996_v10, %v2996_v10  ;;  %v2793_v44 = vadd.f32 %v2702_v39, %v2581_v47  ;;  %v3187_v31 = vadd.f32 %v3186_v20, %v2996_v10 }
 0x1fd   : > { %v3255_v41 = vadd.f32 %v3254_v13, %v3224_v43  ;;  %v4244_v53 = vpop.f32.mrf.mxu1  ;;  %v3001_v6 = vadd.f32 %v4277_v5, %v2795_v17  ;;  %v2391_v49 = vadd.f32 %v5783_v63, %v5782_v16  ;;  %v5794_v63 = vld [vmem:[#allocation19_spill] sm:$0xff] }
 0x1fe   : > { %v4281_v25 = vpop.f32.mrf.mxu0  ;;  %3824 = vst [vmem:[%s5615_s14 + $0x20] sm:$0xff] %v3763_v56   ;;  %v2796_v30 = vadd.f32 %v4244_v53, %v2584_v33  ;;  %v3188_v15 = vadd.f32 %v3187_v31, %v2997_v28  ;;  %v2999_v54 = vadd.f32 %v2908_v32, %v2793_v44  ;;  %v5784_v44 = vld [vmem:[#allocation12_spill] sm:$0xff]  ;;  %v5786_v53 = vld [vmem:[#allocation18_spill] sm:$0xff] }
 0x1ff   : > { %v3256_v2 = vadd.f32 %v3255_v41, %v3225_v57  ;;  %v2705_v26 = vpop.f32.mrf.mxu1  ;;  %v3230_v47 = vmul.f32 %v3001_v6, %v3001_v6  ;;  %v2589_v41 = vadd.f32 %v5784_v44, %v2388_v52  ;;  %v5785_v31 = vld [vmem:[#allocation4_spill] sm:$0xff] }
 0x200   : > { %v2924_v42 = vpop.f32.mrf.mxu0  ;;  %v3002_v40 = vadd.f32 %v4278_v22, %v2796_v30  ;;  %v2794_v46 = vadd.f32 %v2705_v26, %v2582_v4  ;;  %v3189_v3 = vadd.f32 %v3188_v15, %v2998_v55  ;;  %v3228_v37 = vmul.f32 %v2999_v54, %v2999_v54  ;;  %v5787_v30 = vld [vmem:[#allocation13_spill] sm:$0xff] }
 0x201   : > { %v3257_v60 = vadd.f32 %v3256_v2, %v3226_v11  ;;  %v4247_v35 = vpop.f32.mrf.mxu1  ;;  %v2586_v55 = vadd.f32 %v5779_v24, %v2385_v23  ;;  %v2389_v4 = vadd.f32 %v5786_v53, %v5785_v31  ;;  %v2592_v11 = vadd.f32 %v5787_v30, %v2391_v49  ;;  %v5800_v30 = vld [vmem:[#allocation8_spill] sm:$0xff] }
 0x202   : > { %v4282_v7 = vpop.f32.mrf.mxu0  ;;  %v3778_v59 = vpack.c.bf16 %v3002_v40, %v3001_v6  ;;  %v3000_v14 = vadd.f32 %v2911_v62, %v2794_v46  ;;  %v3190_v0 = vadd.f32 %v3189_v3, %v2999_v54  ;;  %v2799_v1 = vadd.f32 %v4247_v35, %v5548_v27 }
 0x203   : > { %v3258_v5 = vadd.f32 %v3257_v60, %v3227_v21  ;;  %v2718_v50 = vpop.f32.mrf.mxu1  ;;  %v3231_v39 = vmul.f32 %v3002_v40, %v3002_v40 }
 0x204   : > { %v2927_v58 = vpop.f32.mrf.mxu0  ;;  %3827 = vst [vmem:[%s5615_s14 + $0x38] sm:$0xff] %v3778_v59   ;;  %v3773_v8 = vpack.c.bf16 %v3000_v14, %v2999_v54  ;;  %v3229_v48 = vmul.f32 %v3000_v14, %v3000_v14  ;;  %v2797_v29 = vadd.f32 %v2718_v50, %v2585_v12  ;;  %v3191_v32 = vadd.f32 %v3190_v0, %v3000_v14  ;;  %v5789_v12 = vld [vmem:[#allocation15_spill] sm:$0xff]  ;;  %v5790_v59 = vld [vmem:[#allocation5_spill] sm:$0xff]  ;;  %v5792_v0 = vld [vmem:[#allocation6_spill] sm:$0xff] }
 0x205   : > { %v3259_v51 = vadd.f32 %v3258_v5, %v3228_v37  ;;  %v4248_v28 = vpop.f32.mrf.mxu1  ;;  %v3005_v20 = vadd.f32 %v4281_v25, %v2799_v1  ;;  %v2590_v23 = vadd.f32 %v5789_v12, %v2389_v4  ;;  %v5791_v14 = vld [vmem:[#allocation21_spill] sm:$0xff]  ;;  %v5793_v37 = vld [vmem:[#allocation24_spill] sm:$0xff] }
 0x206   : > { %v4285_v61 = vpop.f32.mrf.mxu0  ;;  %3826 = vst [vmem:[%s5615_s14 + $0x30] sm:$0xff] %v3773_v8   ;;  %v2800_v22 = vadd.f32 %v4248_v28, %v2588_v18  ;;  %v3192_v38 = vadd.f32 %v3191_v32, %v3001_v6  ;;  %v3003_v10 = vadd.f32 %v2924_v42, %v2797_v29  ;;  %v2392_v18 = vadd.f32 %v5791_v14, %v5790_v59 }
 0x207   : > { %v3260_v45 = vadd.f32 %v3259_v51, %v3229_v48  ;;  %v2721_v27 = vpop.f32.mrf.mxu1  ;;  %v2395_v5 = vadd.f32 %v5793_v37, %v5792_v0  ;;  %v5804_v0 = vld [vmem:[#allocation26_spill] sm:$0xff] }
 0x208   : > { %v2940_v33 = vpop.f32.mrf.mxu0  ;;  %v3006_v43 = vadd.f32 %v4282_v7, %v2800_v22  ;;  %v2798_v13 = vadd.f32 %v2721_v27, %v2586_v55  ;;  %v3193_v56 = vadd.f32 %v3192_v38, %v3002_v40  ;;  %v3232_v2 = vmul.f32 %v3003_v10, %v3003_v10  ;;  %v5788_v40 = vld [vmem:[#allocation16_spill] sm:$0xff]  ;;  %v5795_v22 = vld [vmem:[#allocation7_spill] sm:$0xff] }
 0x209   : > { %v3261_v62 = vadd.f32 %v3260_v45, %v3230_v47  ;;  %v4251_v57 = vpop.f32.mrf.mxu1  ;;  %v2593_v49 = vadd.f32 %v5794_v63, %v2392_v18  ;;  %v5796_v47 = vld [vmem:[#allocation25_spill] sm:$0xff]  ;;  %v5797_v27 = vld [vmem:[#allocation20_spill] sm:$0xff] }
 0x20a   : > { %v4286_v17 = vpop.f32.mrf.mxu0  ;;  %v3788_v19 = vpack.c.bf16 %v3006_v43, %v3005_v20  ;;  %v3004_v9 = vadd.f32 %v2927_v58, %v2798_v13  ;;  %v3194_v15 = vadd.f32 %v3193_v56, %v3003_v10  ;;  %v2803_v46 = vadd.f32 %v4251_v57, %v5788_v40  ;;  %v5798_v57 = vld [vmem:[#allocation23_spill] sm:$0xff] }
 0x20b   : > { %v3262_v25 = vadd.f32 %v3261_v62, %v3231_v39  ;;  %v2734_v54 = vpop.f32.mrf.mxu1  ;;  %v3234_v58 = vmul.f32 %v3005_v20, %v3005_v20  ;;  %v3235_v55 = vmul.f32 %v3006_v43, %v3006_v43  ;;  %v2393_v38 = vadd.f32 %v5796_v47, %v5795_v22  ;;  %v5809_v47 = vld [vmem:[#allocation29_spill] sm:$0xff] }
 0x20c   : > { %v2943_v26 = vpop.f32.mrf.mxu0  ;;  %3829 = vst [vmem:[%s5615_s14 + $0x48] sm:$0xff] %v3788_v19   ;;  %v3783_v42 = vpack.c.bf16 %v3004_v9, %v3003_v10  ;;  %v3233_v6 = vmul.f32 %v3004_v9, %v3004_v9  ;;  %v2801_v21 = vadd.f32 %v2734_v54, %v2589_v41  ;;  %v3195_v3 = vadd.f32 %v3194_v15, %v3004_v9  ;;  %v5799_v19 = vld [vmem:[#allocation22_spill] sm:$0xff] }
 0x20d   : > { %v3263_v60 = vadd.f32 %v3262_v25, %v3232_v2  ;;  %v4252_v35 = vpop.f32.mrf.mxu1  ;;  %v3009_v32 = vadd.f32 %v4285_v61, %v2803_v46  ;;  %v2594_v9 = vadd.f32 %v5799_v19, %v2393_v38  ;;  %v5802_v2 = vld [vmem:[#allocation9_spill] sm:$0xff]  ;;  %v5803_v25 = vld [vmem:[#allocation31_spill] sm:$0xff] }
 0x20e   : > { %v4289_v7 = vpop.f32.mrf.mxu0  ;;  %3828 = vst [vmem:[%s5615_s14 + $0x40] sm:$0xff] %v3783_v42   ;;  %v2804_v50 = vadd.f32 %v4252_v35, %v2592_v11  ;;  %v3196_v8 = vadd.f32 %v3195_v3, %v3005_v20  ;;  %v3007_v1 = vadd.f32 %v2940_v33, %v2801_v21  ;;  %v2596_v33 = vadd.f32 %v5797_v27, %v2395_v5  ;;  %v5801_v11 = vld [vmem:[#allocation28_spill] sm:$0xff]  ;;  %v5805_v5 = vld [vmem:[#allocation10_spill] sm:$0xff] }
 0x20f   : > { %v3264_v48 = vadd.f32 %v3263_v60, %v3233_v6  ;;  %v2737_v29 = vpop.f32.mrf.mxu1  ;;  %v2396_v15 = vadd.f32 %v5801_v11, %v5800_v30  ;;  %v2399_v54 = vadd.f32 %v5803_v25, %v5802_v2  ;;  %v3238_v42 = vmul.f32 %v3009_v32, %v3009_v32 }
 0x210   : > { %v2956_v51 = vpop.f32.mrf.mxu0  ;;  %v3010_v28 = vadd.f32 %v4286_v17, %v2804_v50  ;;  %v2802_v24 = vadd.f32 %v2737_v29, %v2590_v23  ;;  %v3197_v34 = vadd.f32 %v3196_v8, %v3006_v43  ;;  %v3236_v13 = vmul.f32 %v3007_v1, %v3007_v1  ;;  %v5806_v50 = vld [vmem:[#allocation32_spill] sm:$0xff] }
 0x211   : > { %v3265_v36 = vadd.f32 %v3264_v48, %v3234_v58  ;;  %v4255_v52 = vpop.f32.mrf.mxu1  ;;  %v2597_v37 = vadd.f32 %v5804_v0, %v2396_v15  ;;  %v2397_v58 = vadd.f32 %v5806_v50, %v5805_v5 }
 0x212   : > { %v4290_v16 = vpop.f32.mrf.mxu0  ;;  %v3798_v45 = vpack.c.bf16 %v3010_v28, %v3009_v32  ;;  %v3008_v10 = vadd.f32 %v2943_v26, %v2802_v24  ;;  %v3198_v20 = vadd.f32 %v3197_v34, %v3007_v1  ;;  %v2807_v17 = vadd.f32 %v4255_v52, %v5798_v57 }
 0x213   : > { %v3266_v61 = vadd.f32 %v3265_v36, %v3235_v55  ;;  %v2750_v39 = vpop.f32.mrf.mxu1  ;;  %v3239_v12 = vmul.f32 %v3010_v28, %v3010_v28  ;;  %v2598_v38 = vadd.f32 %v5809_v47, %v2397_v58 }
 0x214   : > { %v2959_v62 = vpop.f32.mrf.mxu0  ;;  %3831 = vst [vmem:[%s5615_s14 + $0x58] sm:$0xff] %v3798_v45   ;;  %v3793_v56 = vpack.c.bf16 %v3008_v10, %v3007_v1  ;;  %v3237_v43 = vmul.f32 %v3008_v10, %v3008_v10  ;;  %v2805_v44 = vadd.f32 %v2750_v39, %v2593_v49  ;;  %v3199_v31 = vadd.f32 %v3198_v20, %v3008_v10  ;;  %v5807_v1 = vld [vmem:[#allocation27_spill] sm:$0xff] }
 0x215   : > { %v3267_v41 = vadd.f32 %v3266_v61, %v3236_v13  ;;  %v4256_v53 = vpop.f32.mrf.mxu1  ;;  %v3013_v60 = vadd.f32 %v4289_v7, %v2807_v17  ;;  %v2600_v29 = vadd.f32 %v5807_v1, %v2399_v54 }
 0x216   : > { %v4293_v4 = vpop.f32.mrf.mxu0  ;;  %3830 = vst [vmem:[%s5615_s14 + $0x50] sm:$0xff] %v3793_v56   ;;  %v2808_v26 = vadd.f32 %v4256_v53, %v2596_v33  ;;  %v3200_v6 = vadd.f32 %v3199_v31, %v3009_v32  ;;  %v3011_v46 = vadd.f32 %v2956_v51, %v2805_v44 }
 0x217   : > { %v3268_v40 = vadd.f32 %v3267_v41, %v3237_v43  ;;  %v2753_v21 = vpop.f32.mrf.mxu1  ;;  %v3242_v10 = vmul.f32 %v3013_v60, %v3013_v60 }
 0x218   : > { %v3014_v3 = vadd.f32 %v4290_v16, %v2808_v26  ;;  %v2806_v35 = vadd.f32 %v2753_v21, %v2594_v9  ;;  %v3201_v59 = vadd.f32 %v3200_v6, %v3010_v28  ;;  %v2972_v18 = vpop.f32.mrf.mxu0  ;;  %v3240_v7 = vmul.f32 %v3011_v46, %v3011_v46  ;;  %v5808_v28 = vld [vmem:[#allocation30_spill] sm:$0xff] }
 0x219   : > { %v3269_v23 = vadd.f32 %v3268_v40, %v3238_v42  ;;  %v4259_v14 = vpop.f32.mrf.mxu1 }
 0x21a   : > { %v3808_v8 = vpack.c.bf16 %v3014_v3, %v3013_v60  ;;  %v3012_v48 = vadd.f32 %v2959_v62, %v2806_v35  ;;  %v3202_v51 = vadd.f32 %v3201_v59, %v3011_v46  ;;  %v2811_v34 = vadd.f32 %v4259_v14, %v5808_v28  ;;  %v4294_v22 = vpop.f32.mrf.mxu0 }
 0x21b   : > { %v3270_v32 = vadd.f32 %v3269_v23, %v3239_v12  ;;  %v2766_v24 = vpop.f32.mrf.mxu1  ;;  %v3243_v56 = vmul.f32 %v3014_v3, %v3014_v3 }
 0x21c   : > { %3833 = vst [vmem:[%s5615_s14 + $0x68] sm:$0xff] %v3808_v8   ;;  %v3803_v55 = vpack.c.bf16 %v3012_v48, %v3011_v46  ;;  %v3241_v36 = vmul.f32 %v3012_v48, %v3012_v48  ;;  %v2809_v52 = vadd.f32 %v2766_v24, %v2597_v37  ;;  %v3203_v63 = vadd.f32 %v3202_v51, %v3012_v48  ;;  %v2975_v17 = vpop.f32.mrf.mxu0 }
 0x21d   : > { %v3271_v16 = vadd.f32 %v3270_v32, %v3240_v7  ;;  %v4260_v49 = vpop.f32.mrf.mxu1  ;;  %v3017_v61 = vadd.f32 %v4293_v4, %v2811_v34 }
 0x21e   : > { %3832 = vst [vmem:[%s5615_s14 + $0x60] sm:$0xff] %v3803_v55   ;;  %v2812_v45 = vadd.f32 %v4260_v49, %v2600_v29  ;;  %v3204_v27 = vadd.f32 %v3203_v63, %v3013_v60  ;;  %v3015_v20 = vadd.f32 %v2972_v18, %v2809_v52 }
 0x21f   : > { %v3272_v33 = vadd.f32 %v3271_v16, %v3241_v36  ;;  %v2769_v13 = vpop.f32.mrf.mxu1  ;;  %v3246_v2 = vmul.f32 %v3017_v61, %v3017_v61 }
 0x220   : > { %v3018_v39 = vadd.f32 %v4294_v22, %v2812_v45  ;;  %v2810_v62 = vadd.f32 %v2769_v13, %v2598_v38  ;;  %v3205_v57 = vadd.f32 %v3204_v27, %v3014_v3  ;;  %v3244_v53 = vmul.f32 %v3015_v20, %v3015_v20 }
 0x221   : > { %v3273_v43 = vadd.f32 %v3272_v33, %v3242_v10 }
 0x222   : > { %v3818_v44 = vpack.c.bf16 %v3018_v39, %v3017_v61  ;;  %v3016_v41 = vadd.f32 %v2975_v17, %v2810_v62  ;;  %v3206_v31 = vadd.f32 %v3205_v57, %v3015_v20  ;;  %v3247_v54 = vmul.f32 %v3018_v39, %v3018_v39 }
 0x223   : > { %v3274_v19 = vadd.f32 %v3273_v43, %v3243_v56 }
 0x224   : > { %3835 = vst [vmem:[%s5615_s14 + $0x78] sm:$0xff] %v3818_v44   ;;  %v3813_v9 = vpack.c.bf16 %v3016_v41, %v3015_v20  ;;  %v3245_v30 = vmul.f32 %v3016_v41, %v3016_v41  ;;  %v3207_v15 = vadd.f32 %v3206_v31, %v3016_v41 }
 0x225   : > { %v3275_v11 = vadd.f32 %v3274_v19, %v3244_v53 }
 0x226   : > { %3834 = vst [vmem:[%s5615_s14 + $0x70] sm:$0xff] %v3813_v9   ;;  %v3208_v4 = vadd.f32 %v3207_v15, %v3017_v61 }
 0x227   : > { %v3276_v25 = vadd.f32 %v3275_v11, %v3245_v30 }
 0x228   : > { %v3209_v26 = vadd.f32 %v3208_v4, %v3018_v39 }
 0x229   : > { %v3277_v42 = vadd.f32 %v3276_v25, %v3246_v2 }
 0x22a   : > { %v3210_v6 = vrot.slane %v3209_v26, 4 }
 0x22b   : > { %v3278_v40 = vadd.f32 %v3277_v42, %v3247_v54 }
 0x22c   : > { %v3211_v46 = vadd.f32 %v3210_v6, %v3209_v26 }
 0x22d   : > { %v3279_v21 = vrot.slane %v3278_v40, 4 }
 0x22e   : > { %v3212_v60 = vrot.slane %v3211_v46, 2 }
 0x22f   : > { %v3280_v3 = vadd.f32 %v3279_v21, %v3278_v40 }
 0x230   : > { %v3213_v35 = vadd.f32 %v3212_v60, %v3211_v46 }
 0x231   : > { %v3281_v12 = vrot.slane %v3280_v3, 2 }
 0x232   : > { %v3214_v23 = vrot.slane %v3213_v35, 1 }
 0x233   : > { %v3282_v59 = vadd.f32 %v3281_v12, %v3280_v3 }
 0x234   : > { %v3215_v18 = vadd.f32 %v3214_v23, %v3213_v35 }
 0x235   : > { %v3283_v14 = vrot.slane %v3282_v59, 1 }
 0x237   : > { %v3284_v0 = vadd.f32 %v3283_v14, %v3282_v59 }
 0x239   : > { %v3286_v37 = vsel %vm809_vm1, %v3215_v18, %v3284_v0 }
 0x23a   : > { %3287 = vst [vmem:[%s465_s17] sm:$0x3] %v3286_v37 }
 0x23b PF: > { %s18_s26 = sadd.s32 1, %s4389_s26   ;;  %s5810_s24 = smov %s4385_s25 }
 0x23c   : > { %p15_p5 = scmp.ge.s32.totalorder %s18_s26, 4   ;;  %s5811_s25 = smov %s5813_s4 }
 0x23e   :  { %17 = sbr.rel (!%p15_p5) target bundleno = 2 (0x2), region = 100 }

// kernel: double_conv.4
= control target key start
LH: loop header
LB: loop body
LE: loop exit
PB: predicated region body
PF: predicated region fallthrough
CT: control target
= control target key end

     0   :  { %s5279_s24 = smov 0   ;;  %s5281_s25 = smov 0   ;;  %s6651_s0 = inlined_call_operand.vmem [shape: bf16[2,16,16,128], index: 0, kind: input, shape index: {}, may-alias: {0,1,2}]   ;;  %s6652_s1 = inlined_call_operand.vmem [shape: bf16[2,16,16,128], index: 1, kind: input, shape index: {}, may-alias: {0,1,2}]   ;;  %s6653_s2 = inlined_call_operand.vmem [shape: bf16[2,16,16,128], index: 2, kind: input, shape index: {}, may-alias: {0,1,2}]   ;;  %s6654_s3 = inlined_call_operand.vmem [shape: bf16[9,128,128], index: 3, kind: input, shape index: {}]   ;;  %s6655_s4 = inlined_call_operand.vmem [shape: f32[1,128], index: 4, kind: input, shape index: {}]   ;;  %s6656_s5 = inlined_call_operand.vmem [shape: f32[1,128], index: 5, kind: input, shape index: {}]   ;;  %s6657_s6 = inlined_call_operand.vmem [shape: bf16[2,16,16,128], index: 6, kind: output, shape index: {0}]   ;;  %s6658_s7 = inlined_call_operand.vmem [shape: f32[2,1,2,128], index: 7, kind: output, shape index: {1}]  }
   0x1   :  { %s5283_s26 = smov 0  }
   0x2 LB: > { %s30_s27 = sadd.s32 1, %s5233_s25  ;;  %p3987_p0 = scmp.ge.s32.totalorder %s5237_s26, 1  ;;  %s5237_s26 = sphi %s5283_s26, %s18_s26   ;;  %s5233_s25 = sphi %s5281_s25, %s6758_s25   ;;  %s5229_s24 = sphi %s5279_s24, %s6757_s24  }
   0x3   : > { %p32_p1 = scmp.ge.s32.totalorder %s30_s27, 2  ;;  %p328_p2 = scmp.lt.s32.totalorder %s5237_s26, 3 }
   0x5   : > { %s6760_s27 = smov (%p32_p1, %s30_s27), 0  ;;  %p329_p3 = pnand %p3987_p0, %p328_p2 }
   0x7   : > { %332 = sbr.rel (%p329_p3) target bundleno = 605 (0x25d), region = 44 }
   0xc   : > { %v5141_v0 = vld [vmem:[%s6654_s3 + $0x78] sm:$0xff]   ;;  %p404_p4 = scmp.lt.s32.totalorder %s5229_s24, 1  ;;  %v5142_v1 = vld [vmem:[%s6654_s3 + $0x70] sm:$0xff]   ;;  %v5143_v2 = vld [vmem:[%s6654_s3 + $0x68] sm:$0xff]   ;;  %vm895_vm0 = vcmask 1040384   ;;  %vm1626_vm4 = vcmask 1046528  }
   0xd   : > { %4669 = vmatprep.subr.bf16.mxu0 %v5141_v0  ;;  %5101 = vmatprep.subr.bf16.mxu1 %v5141_v0  ;;  %v5144_v3 = vld [vmem:[%s6654_s3 + $0x60] sm:$0xff]   ;;  %v5145_v16 = vld [vmem:[%s6654_s3 + $0x58] sm:$0xff]   ;;  %vm896_vm1 = vsmask.f32 256  ;;  %v5146_v37 = vld [vmem:[%s6654_s3 + $0x50] sm:$0xff]  }
   0xe   : > { %s6762_s24 = smov (!%p404_p4, %s5229_s24), 1  ;;  %4670 = vmatpush3.bf16.msra.mxu0 %v5141_v0  ;;  %5109 = vmatpush3.bf16.msra.mxu1 %v5141_v0  ;;  %v5327_v5 = vld [vmem:[%s6655_s4] ss:$0 sm:$0xff]  ;;  %v5147_v54 = vld [vmem:[%s6654_s3 + $0x48] sm:$0xff]   ;;  %vm950_vm2 = vsmask.f32 7424  ;;  %vm5372_vm3 = vmand %vm895_vm0, %vm896_vm1 }
   0xf   : > { %4671 = vmatprep.subr.bf16.mxu0 %v5142_v1  ;;  %5102 = vmatprep.subr.bf16.mxu1 %v5142_v1  ;;  %s5309_s11 = sshll.u32 %s6762_s24, 7  ;;  %v5334_v10 = vld [vmem:[%s6656_s5] ss:$0 sm:$0xff] }
  0x10   : > { %s426_s14 = scalar_lea.vmem %s6652_s1, %s5309_s11  ;;  %s5319_s17 = scalar_lea.vmem %s6651_s0, %s5309_s11 }
  0x11   : > { %v4271_v4 = vld [vmem:[%s426_s14] sm:$0xff]   ;;  %v4429_v8 = vld [vmem:[%s5319_s17 + $0x38] sm:$0xff]   ;;  %v5356_v36 = vld [vmem:[%s5319_s17 + $0x8] sm:$0xff]   ;;  %s4236_s23 = sadd.s32 120, %s5309_s11  ;;  %s6553_s12 = scalar_lea.vmem %s6657_s6, %s5309_s11 }
  0x12   : > { %4672 = vmatpush3.bf16.msra.mxu0 %v5142_v1  ;;  %5110 = vmatpush3.bf16.msra.mxu1 %v5142_v1  ;;  %v4272_v6 = vunpack.c.l.bf16 %v4271_v4  ;;  %v4273_v7 = vunpack.c.h.bf16 %v4271_v4  ;;  %v4279_v9 = vld [vmem:[%s5319_s17] sm:$0xff]   ;;  %v4308_v11 = vunpack.c.l.bf16 %v4429_v8  ;;  %v4309_v12 = vunpack.c.h.bf16 %v4429_v8  ;;  %v5365_v53 = vld [vmem:[%s5319_s17 + $0x48] sm:$0xff]   ;;  %s443_s10 = scalar_lea.vmem %s6653_s2, %s4236_s23  ;;  %s3996_s11 = sshll.u32 %s6762_s24, 1 }
  0x13   : > { %4673 = vmatprep.subr.bf16.mxu0 %v5143_v2  ;;  %5103 = vmatprep.subr.bf16.mxu1 %v5143_v2  ;;  %v4280_v13 = vunpack.c.l.bf16 %v4279_v9  ;;  %v4281_v14 = vunpack.c.h.bf16 %v4279_v9  ;;  %v4430_v15 = vld [vmem:[%s5319_s17 + $0x40] sm:$0xff]   ;;  %v4284_v47 = vunpack.c.l.bf16 %v5356_v36  ;;  %v4285_v48 = vunpack.c.h.bf16 %v5356_v36  ;;  %s465_s15 = scalar_lea.vmem %s6658_s7, %s3996_s11 }
  0x14   : > { %v546_v17 = vmul.f32 %v4272_v6, %v5327_v5  ;;  %v547_v18 = vmul.f32 %v4273_v7, %v5327_v5  ;;  %v4312_v19 = vunpack.c.l.bf16 %v4430_v15  ;;  %v4313_v20 = vunpack.c.h.bf16 %v4430_v15  ;;  %v5148_v9 = vld [vmem:[%s6654_s3 + $0x40] sm:$0xff]  }
  0x15   : > { %v562_v21 = vmul.f32 %v4308_v11, %v5327_v5  ;;  %v563_v22 = vmul.f32 %v4309_v12, %v5327_v5  ;;  %v548_v23 = vmul.f32 %v4280_v13, %v5327_v5  ;;  %v549_v26 = vmul.f32 %v4281_v14, %v5327_v5 }
  0x16   : > { %4674 = vmatpush3.bf16.msra.mxu0 %v5143_v2  ;;  %5111 = vmatpush3.bf16.msra.mxu1 %v5143_v2  ;;  %v589_v24 = vadd.f32 %v5334_v10, %v546_v17  ;;  %v590_v25 = vadd.f32 %v5334_v10, %v547_v18  ;;  %v564_v27 = vmul.f32 %v4312_v19, %v5327_v5 }
  0x17   : > { %4675 = vmatprep.subr.bf16.mxu0 %v5144_v3  ;;  %5104 = vmatprep.subr.bf16.mxu1 %v5144_v3  ;;  %v605_v28 = vadd.f32 %v5334_v10, %v562_v21  ;;  %v606_v29 = vadd.f32 %v5334_v10, %v563_v22  ;;  %v591_v30 = vadd.f32 %v5334_v10, %v548_v23  ;;  %v5407_v22 = vld [vmem:[%s6654_s3 + $0x38] sm:$0xff]  }
  0x18   : > { %v565_v31 = vmul.f32 %v4313_v20, %v5327_v5  ;;  %v625_v32 = vmax.f32 %v589_v24, 0.0  ;;  %v626_v33 = vmax.f32 %v590_v25, 0.0  ;;  %v592_v34 = vadd.f32 %v5334_v10, %v549_v26 }
  0x19   : > { %v607_v35 = vadd.f32 %v5334_v10, %v564_v27  ;;  %v641_v38 = vmax.f32 %v605_v28, 0.0  ;;  %v642_v39 = vmax.f32 %v606_v29, 0.0  ;;  %v627_v40 = vmax.f32 %v591_v30, 0.0  ;;  %v5150_v28 = vld [vmem:[%s6654_s3 + $0xb8] sm:$0xff]  }
  0x1a   : > { %4676 = vmatpush3.bf16.msra.mxu0 %v5144_v3  ;;  %5112 = vmatpush3.bf16.msra.mxu1 %v5144_v3  ;;  %v608_v41 = vadd.f32 %v5334_v10, %v565_v31  ;;  %v661_v42 = vpack.c.bf16 %v626_v33, %v625_v32  ;;  %v628_v43 = vmax.f32 %v592_v34, 0.0  ;;  %v4316_v3 = vunpack.c.l.bf16 %v5365_v53 }
  0x1b   : > { %4677 = vmatprep.subr.bf16.mxu0 %v5145_v16  ;;  %5105 = vmatprep.subr.bf16.mxu1 %v5145_v16  ;;  %v643_v44 = vmax.f32 %v607_v35, 0.0  ;;  %v669_v45 = vpack.c.bf16 %v642_v39, %v641_v38  ;;  %v550_v23 = vmul.f32 %v4284_v47, %v5327_v5 }
  0x1c   : > { %v644_v46 = vmax.f32 %v608_v41, 0.0  ;;  %v680_v49 = vshrl.u32 %v661_v42, 16  ;;  %v683_v50 = vshll.u32 %v661_v42, 16  ;;  %v859_v51 = vrot.slane %v661_v42, 7 }
  0x1d   : > { %v662_v52 = vpack.c.bf16 %v628_v43, %v627_v40  ;;  %v736_v55 = vshrl.u32 %v669_v45, 16  ;;  %v739_v56 = vshll.u32 %v669_v45, 16  ;;  %v867_v57 = vrot.slane %v669_v45, 7 }
  0x1e   : > { %4678 = vmatpush3.bf16.msra.mxu0 %v5145_v16  ;;  %5113 = vmatpush3.bf16.msra.mxu1 %v5145_v16  ;;  %v670_v58 = vpack.c.bf16 %v644_v46, %v643_v44  ;;  %v682_v59 = vrot.slane %v680_v49, 7  ;;  %v551_v44 = vmul.f32 %v4285_v48, %v5327_v5 }
  0x1f   : > { %4679 = vmatprep.subr.bf16.mxu0 %v5146_v37  ;;  %5106 = vmatprep.subr.bf16.mxu1 %v5146_v37  ;;  %v687_v60 = vshrl.u32 %v662_v52, 16  ;;  %v690_v61 = vshll.u32 %v662_v52, 16  ;;  %v860_v62 = vrot.slane %v662_v52, 7  ;;  %v738_v0 = vrot.slane %v736_v55, 7 }
  0x20   : > { %v743_v1 = vshrl.u32 %v670_v58, 16  ;;  %v746_v2 = vshll.u32 %v670_v58, 16  ;;  %v685_v4 = vor.u32 %v683_v50, %v682_v59  ;;  %v5379_v6 = vsel %vm5372_vm3, %v682_v59, %v859_v51  ;;  %v5152_v51 = vld [vmem:[%s6654_s3 + $0xb0] sm:$0xff]  }
  0x21   : > { %v689_v7 = vrot.slane %v687_v60, 7  ;;  %v868_v8 = vrot.slane %v670_v58, 7  ;;  %v959_v11 = vshll.u32 %v5379_v6, 16  ;;  %v741_v12 = vor.u32 %v739_v56, %v738_v0  ;;  %v4432_v56 = vld [vmem:[%s5319_s17 + $0x50] sm:$0xff]  }
  0x22   : > { %4680 = vmatpush3.bf16.msra.mxu0 %v5146_v37  ;;  %5114 = vmatpush3.bf16.msra.mxu1 %v5146_v37  ;;  %v5387_v13 = vsel %vm5372_vm3, %v738_v0, %v867_v57  ;;  %v745_v14 = vrot.slane %v743_v1, 7  ;;  %v5391_v15 = vsel %vm5372_vm3, %v661_v42, %v685_v4  ;;  %v594_v55 = vadd.f32 %v5334_v10, %v551_v44 }
  0x23   : > { %4681 = vmatprep.subr.bf16.mxu0 %v5147_v54  ;;  %5107 = vmatprep.subr.bf16.mxu1 %v5147_v54  ;;  %v1055_v16 = vshll.u32 %v5387_v13, 16  ;;  %v692_v17 = vor.u32 %v690_v61, %v689_v7  ;;  %v5396_v18 = vsel %vm5372_vm3, %v689_v7, %v860_v62  ;;  %v952_v19 = vshrl.u32 %v5391_v15, 16  ;;  %v5151_v61 = vld [vmem:[%s6654_s3 + $0x30] sm:$0xff]  }
  0x24   : > { %v954_v20 = vshll.u32 %v5391_v15, 16  ;;  %v5402_v21 = vsel %vm5372_vm3, %v669_v45, %v741_v12  ;;  %v961_v24 = vrot.slane %v959_v11, 1  ;;  %v971_v32 = vshll.u32 %v5396_v18, 16 }
  0x25   : > { %v1048_v25 = vshrl.u32 %v5402_v21, 16  ;;  %v1050_v26 = vshll.u32 %v5402_v21, 16  ;;  %v5414_v27 = vsel %vm5372_vm3, %v662_v52, %v692_v17  ;;  %v1057_v34 = vrot.slane %v1055_v16, 1  ;;  %v4424_v52 = vld [vmem:[%s5319_s17 + $0x10] sm:$0xff]   ;;  %v4425_v16 = vld [vmem:[%s5319_s17 + $0x18] sm:$0xff]  }
  0x26   : > { %4682 = vmatpush3.bf16.msra.mxu0 %v5147_v54  ;;  %5115 = vmatpush3.bf16.msra.mxu1 %v5147_v54  ;;  %v956_v29 = vrot.slane %v954_v20, 1  ;;  %v964_v30 = vshrl.u32 %v5414_v27, 16  ;;  %v966_v31 = vshll.u32 %v5414_v27, 16  ;;  %v748_v35 = vor.u32 %v746_v2, %v745_v14 }
  0x27   : > { %4683 = vmatprep.subr.bf16.mxu0 %v5148_v9  ;;  %5108 = vmatprep.subr.bf16.mxu1 %v5148_v9  ;;  %v1052_v33 = vrot.slane %v1050_v26, 1  ;;  %v5424_v37 = vsel %vm5372_vm3, %v745_v14, %v868_v8  ;;  %v973_v40 = vrot.slane %v971_v32, 1  ;;  %v4317_v45 = vunpack.c.h.bf16 %v5365_v53  ;;  %v5154_v8 = vld [vmem:[%s6654_s3 + $0xa8] sm:$0xff]  }
  0x28   : > { %v957_v38 = vor.u32 %v956_v29, %v952_v19  ;;  %v968_v39 = vrot.slane %v966_v31, 1  ;;  %v1067_v41 = vshll.u32 %v5424_v37, 16  ;;  %v5429_v43 = vsel %vm5372_vm3, %v670_v58, %v748_v35  ;;  %v5153_v32 = vld [vmem:[%s6654_s3 + $0x28] sm:$0xff]  }
  0x29   : > { %v1053_v42 = vor.u32 %v1052_v33, %v1048_v25  ;;  %v1060_v49 = vshrl.u32 %v5429_v43, 16  ;;  %v1062_v50 = vshll.u32 %v5429_v43, 16  ;;  %v593_v54 = vadd.f32 %v5334_v10, %v550_v23 }
  0x2a   : > { %4684 = vmatpush3.bf16.msra.mxu0 %v5148_v9  ;;  %5116 = vmatpush3.bf16.msra.mxu1 %v5148_v9  ;;  %v962_v46 = vsel %vm950_vm2, %v957_v38, %v961_v24  ;;  %v969_v47 = vor.u32 %v968_v39, %v964_v30  ;;  %v1069_v48 = vrot.slane %v1067_v41, 1  ;;  %v566_v59 = vmul.f32 %v4316_v3, %v5327_v5 }
  0x2b   : > { %4717 = vmatprep.subr.bf16.mxu1 %v5407_v22  ;;  %4765 = vmatprep.subr.bf16.mxu0 %v5150_v28  ;;  %v5444_v36 = vsel %vm950_vm2, %v1053_v42, %v1057_v34  ;;  %v1064_v58 = vrot.slane %v1062_v50, 1  ;;  %v567_v60 = vmul.f32 %v4317_v45, %v5327_v5  ;;  %v629_v62 = vmax.f32 %v593_v54, 0.0 }
  0x2c   : > { %4685 = vmatprep.mubr.bf16.mxu0 %v962_v46  ;;  %4701 = vmatprep.mubr.bf16.mxu1 %v5444_v36  ;;  %v5451_v57 = vsel %vm950_vm2, %v969_v47, %v973_v40  ;;  %v630_v0 = vmax.f32 %v594_v55, 0.0  ;;  %v4288_v1 = vunpack.c.l.bf16 %v4424_v52  ;;  %v4289_v2 = vunpack.c.h.bf16 %v4424_v52  ;;  %v5486_v40 = vld [vmem:[%s5319_s17 + $0x58] sm:$0xff]  }
  0x2d   : > { %4686 = vmatmul.mubr.bf16.vlgmr.msra.gmra.mxu0 %v5451_v57  ;;  %v1065_v4 = vor.u32 %v1064_v58, %v1060_v49  ;;  %v609_v7 = vadd.f32 %v5334_v10, %v566_v59  ;;  %v610_v53 = vadd.f32 %v5334_v10, %v567_v60  ;;  %v4320_v3 = vunpack.c.l.bf16 %v4432_v56 }
  0x2e   : > { %4766 = vmatpush3.bf16.msra.mxu0 %v5150_v28  ;;  %v663_v9 = vpack.c.bf16 %v630_v0, %v629_v62  ;;  %v552_v11 = vmul.f32 %v4288_v1, %v5327_v5  ;;  %v553_v12 = vmul.f32 %v4289_v2, %v5327_v5  ;;  %v4321_v14 = vunpack.c.h.bf16 %v4432_v56 }
  0x2f   : > { %4767 = vmatprep.subr.bf16.mxu0 %v5152_v51  ;;  %v5470_v17 = vsel %vm950_vm2, %v1065_v4, %v1069_v48  ;;  %v645_v19 = vmax.f32 %v609_v7, 0.0  ;;  %v646_v20 = vmax.f32 %v610_v53, 0.0  ;;  %v568_v23 = vmul.f32 %v4320_v3, %v5327_v5 }
  0x30   : > { %4702 = vmatmul.mubr.bf16.vlgmr.msra.gmra.mxu1 %v5470_v17  ;;  %v694_v24 = vshrl.u32 %v663_v9, 16  ;;  %v697_v25 = vshll.u32 %v663_v9, 16  ;;  %v861_v26 = vrot.slane %v663_v9, 7  ;;  %v595_v28 = vadd.f32 %v5334_v10, %v552_v11 }
  0x31   : > { %4718 = vmatpush3.bf16.msra.mxu1 %v5407_v22  ;;  %v671_v29 = vpack.c.bf16 %v646_v20, %v645_v19  ;;  %v596_v30 = vadd.f32 %v5334_v10, %v553_v12  ;;  %v569_v31 = vmul.f32 %v4321_v14, %v5327_v5  ;;  %v4292_v33 = vunpack.c.l.bf16 %v4425_v16  ;;  %v5156_v22 = vld [vmem:[%s6654_s3 + $0xa0] sm:$0xff]  }
  0x32   : > { %4768 = vmatpush3.bf16.msra.mxu0 %v5152_v51  ;;  %4719 = vmatprep.subr.bf16.mxu1 %v5151_v61  ;;  %v696_v34 = vrot.slane %v694_v24, 7  ;;  %v631_v35 = vmax.f32 %v595_v28, 0.0  ;;  %v611_v38 = vadd.f32 %v5334_v10, %v568_v23  ;;  %v4293_v39 = vunpack.c.h.bf16 %v4425_v16  ;;  %v5155_v51 = vld [vmem:[%s6654_s3 + $0x20] sm:$0xff]   ;;  %v5157_v23 = vld [vmem:[%s6654_s3 + $0x18] sm:$0xff]  }
  0x33   : > { %4769 = vmatprep.subr.bf16.mxu0 %v5154_v8  ;;  %v750_v41 = vshrl.u32 %v671_v29, 16  ;;  %v753_v42 = vshll.u32 %v671_v29, 16  ;;  %v869_v44 = vrot.slane %v671_v29, 7  ;;  %v632_v45 = vmax.f32 %v596_v30, 0.0 }
  0x34   : > { %v699_v46 = vor.u32 %v697_v25, %v696_v34  ;;  %v5490_v47 = vsel %vm5372_vm3, %v696_v34, %v861_v26  ;;  %v612_v49 = vadd.f32 %v5334_v10, %v569_v31  ;;  %v647_v50 = vmax.f32 %v611_v38, 0.0 }
  0x35   : > { %4720 = vmatpush3.bf16.msra.mxu1 %v5151_v61  ;;  %v983_v52 = vshll.u32 %v5490_v47, 16  ;;  %v752_v48 = vrot.slane %v750_v41, 7  ;;  %v664_v54 = vpack.c.bf16 %v632_v45, %v631_v35  ;;  %v554_v55 = vmul.f32 %v4292_v33, %v5327_v5  ;;  %v5158_v61 = vld [vmem:[%s6654_s3 + $0x98] sm:$0xff]   ;;  %v4426_v45 = vld [vmem:[%s5319_s17 + $0x20] sm:$0xff]  }
  0x36   : > { %4770 = vmatpush3.bf16.msra.mxu0 %v5154_v8  ;;  %v5500_v56 = vsel %vm5372_vm3, %v663_v9, %v699_v46  ;;  %v648_v58 = vmax.f32 %v612_v49, 0.0  ;;  %4721 = vmatprep.subr.bf16.mxu1 %v5153_v32  ;;  %v555_v59 = vmul.f32 %v4293_v39, %v5327_v5  ;;  %v4324_v60 = vunpack.c.l.bf16 %v5486_v40  ;;  %v5159_v46 = vld [vmem:[%s6654_s3 + $0x10] sm:$0xff]  }
  0x37   : > { %4771 = vmatprep.subr.bf16.mxu0 %v5156_v22  ;;  %v976_v62 = vshrl.u32 %v5500_v56, 16  ;;  %v978_v0 = vshll.u32 %v5500_v56, 16  ;;  %v985_v1 = vrot.slane %v983_v52, 1  ;;  %v755_v2 = vor.u32 %v753_v42, %v752_v48 }
  0x38   : > { %v5511_v4 = vsel %vm5372_vm3, %v752_v48, %v869_v44  ;;  %v701_v7 = vshrl.u32 %v664_v54, 16  ;;  %v704_v53 = vshll.u32 %v664_v54, 16  ;;  %v862_v3 = vrot.slane %v664_v54, 7  ;;  %v5162_v48 = vld [vmem:[%s6654_s3 + $0x88] sm:$0xff]  }
  0x39   : > { %v980_v8 = vrot.slane %v978_v0, 1  ;;  %v5515_v9 = vsel %vm5372_vm3, %v671_v29, %v755_v2  ;;  %v1079_v11 = vshll.u32 %v5511_v4, 16  ;;  %v672_v12 = vpack.c.bf16 %v648_v58, %v647_v50  ;;  %4722 = vmatpush3.bf16.msra.mxu1 %v5153_v32  ;;  %v5160_v29 = vld [vmem:[%s6654_s3 + $0x90] sm:$0xff]  }
  0x3a   : > { %4772 = vmatpush3.bf16.msra.mxu0 %v5156_v22  ;;  %v1072_v14 = vshrl.u32 %v5515_v9, 16  ;;  %v1074_v16 = vshll.u32 %v5515_v9, 16  ;;  %v703_v19 = vrot.slane %v701_v7, 7  ;;  %4723 = vmatprep.subr.bf16.mxu1 %v5155_v51  ;;  %v597_v20 = vadd.f32 %v5334_v10, %v554_v55 }
  0x3b   : > { %4773 = vmatprep.subr.bf16.mxu0 %v5158_v61  ;;  %v981_v24 = vor.u32 %v980_v8, %v976_v62  ;;  %v1081_v25 = vrot.slane %v1079_v11, 1  ;;  %v757_v26 = vshrl.u32 %v672_v12, 16  ;;  %v760_v28 = vshll.u32 %v672_v12, 16 }
  0x3c   : > { %v1076_v30 = vrot.slane %v1074_v16, 1  ;;  %v706_v31 = vor.u32 %v704_v53, %v703_v19  ;;  %v5529_v32 = vsel %vm5372_vm3, %v703_v19, %v862_v3  ;;  %v870_v33 = vrot.slane %v672_v12, 7 }
  0x3d   : > { %v5532_v34 = vsel %vm950_vm2, %v981_v24, %v985_v1  ;;  %v995_v35 = vshll.u32 %v5529_v32, 16  ;;  %v759_v38 = vrot.slane %v757_v26, 7  ;;  %4724 = vmatpush3.bf16.msra.mxu1 %v5155_v51  ;;  %v598_v22 = vadd.f32 %v5334_v10, %v555_v59  ;;  %v5161_v59 = vld [vmem:[%s6654_s3 + $0x8] sm:$0xff]  }
  0x3e   : > { %4774 = vmatpush3.bf16.msra.mxu0 %v5158_v61  ;;  %4689 = vmatprep.mubr.bf16.mxu0 %v5532_v34  ;;  %v1077_v39 = vor.u32 %v1076_v30, %v1072_v14  ;;  %v5539_v41 = vsel %vm5372_vm3, %v664_v54, %v706_v31  ;;  %v633_v42 = vmax.f32 %v597_v20, 0.0  ;;  %v4325_v44 = vunpack.c.h.bf16 %v5486_v40  ;;  %v4434_v14 = vld [vmem:[%s5319_s17 + $0x60] sm:$0xff]   ;;  %v4427_v24 = vld [vmem:[%s5319_s17 + $0x28] sm:$0xff]  }
  0x3f   : > { %4725 = vmatprep.subr.bf16.mxu1 %v5157_v23  ;;  %v988_v49 = vshrl.u32 %v5539_v41, 16  ;;  %v990_v50 = vshll.u32 %v5539_v41, 16  ;;  %v997_v51 = vrot.slane %v995_v35, 1  ;;  %v762_v52 = vor.u32 %v760_v28, %v759_v38  ;;  %4775 = vmatprep.subr.bf16.mxu0 %v5160_v29  ;;  %v5163_v31 = vld [vmem:[%s6654_s3] sm:$0xff]  }
  0x40   : > { %v5552_v54 = vsel %vm950_vm2, %v1077_v39, %v1081_v25  ;;  %v5556_v40 = vsel %vm5372_vm3, %v759_v38, %v870_v33  ;;  %v634_v55 = vmax.f32 %v598_v22, 0.0  ;;  %v570_v58 = vmul.f32 %v4324_v60, %v5327_v5  ;;  %v5164_v25 = vld [vmem:[%s6654_s3 + $0x80] sm:$0xff]   ;;  %v5589_v39 = vld [vmem:[%s6654_s3 + $0x138] sm:$0xff]  }
  0x41   : > { %4705 = vmatprep.mubr.bf16.mxu1 %v5552_v54  ;;  %v992_v61 = vrot.slane %v990_v50, 1  ;;  %v5565_v62 = vsel %vm5372_vm3, %v672_v12, %v762_v52  ;;  %v1091_v0 = vshll.u32 %v5556_v40, 16  ;;  %v571_v1 = vmul.f32 %v4325_v44, %v5327_v5  ;;  %4726 = vmatpush3.bf16.msra.mxu1 %v5157_v23 }
  0x42   : > { %v1084_v2 = vshrl.u32 %v5565_v62, 16  ;;  %v1086_v60 = vshll.u32 %v5565_v62, 16  ;;  %v665_v7 = vpack.c.bf16 %v634_v55, %v633_v42  ;;  %v613_v53 = vadd.f32 %v5334_v10, %v570_v58  ;;  %4727 = vmatprep.subr.bf16.mxu1 %v5159_v46  ;;  %4776 = vmatpush3.bf16.msra.mxu0 %v5160_v29 }
  0x43   : > { %v993_v3 = vor.u32 %v992_v61, %v988_v49  ;;  %v1093_v8 = vrot.slane %v1091_v0, 1  ;;  %v614_v11 = vadd.f32 %v5334_v10, %v571_v1  ;;  %v4296_v12 = vunpack.c.l.bf16 %v4426_v45  ;;  %4777 = vmatprep.subr.bf16.mxu0 %v5162_v48 }
  0x44   : > { %v1088_v16 = vrot.slane %v1086_v60, 1  ;;  %v708_v19 = vshrl.u32 %v665_v7, 16  ;;  %v711_v20 = vshll.u32 %v665_v7, 16  ;;  %v863_v23 = vrot.slane %v665_v7, 7 }
  0x45   : > { %v5579_v26 = vsel %vm950_vm2, %v993_v3, %v997_v51  ;;  %v649_v28 = vmax.f32 %v613_v53, 0.0  ;;  %v650_v29 = vmax.f32 %v614_v11, 0.0  ;;  %v4297_v30 = vunpack.c.h.bf16 %v4426_v45  ;;  %4728 = vmatpush3.bf16.msra.mxu1 %v5159_v46 }
  0x46   : > { %4690 = vmatmul.mubr.bf16.gmra.mxu0 %v5579_v26  ;;  %v1089_v33 = vor.u32 %v1088_v16, %v1084_v2  ;;  %v710_v35 = vrot.slane %v708_v19, 7  ;;  %v556_v38 = vmul.f32 %v4296_v12, %v5327_v5  ;;  %v4328_v22 = vunpack.c.l.bf16 %v4434_v14  ;;  %4729 = vmatprep.subr.bf16.mxu1 %v5161_v59 }
  0x47   : > { %v673_v42 = vpack.c.bf16 %v650_v29, %v649_v28  ;;  %v557_v44 = vmul.f32 %v4297_v30, %v5327_v5  ;;  %v4329_v45 = vunpack.c.h.bf16 %v4434_v14  ;;  %v4300_v46 = vunpack.c.l.bf16 %v4427_v24  ;;  %4778 = vmatpush3.bf16.msra.mxu0 %v5162_v48 }
  0x48   : > { %v5593_v49 = vsel %vm950_vm2, %v1089_v33, %v1093_v8  ;;  %v713_v50 = vor.u32 %v711_v20, %v710_v35  ;;  %v5597_v51 = vsel %vm5372_vm3, %v710_v35, %v863_v23  ;;  %v599_v52 = vadd.f32 %v5334_v10, %v556_v38  ;;  %4779 = vmatprep.subr.bf16.mxu0 %v5164_v25  ;;  %v4435_v35 = vld [vmem:[%s5319_s17 + $0x68] sm:$0xff]   ;;  %v5627_v38 = vld [vmem:[%s5319_s17 + $0x30] sm:$0xff]  }
  0x49   : > { %6667 = vst [vmem:[#allocation2_spill] sm:$0xff] %v5593_v49  ;;  %4706 = vmatmul.mubr.bf16.gmra.mxu1 %v5593_v49  ;;  %v1007_v55 = vshll.u32 %v5597_v51, 16  ;;  %v764_v58 = vshrl.u32 %v673_v42, 16  ;;  %v767_v61 = vshll.u32 %v673_v42, 16  ;;  %v871_v0 = vrot.slane %v673_v42, 7 }
  0x4a   : > { %v5604_v48 = vsel %vm5372_vm3, %v665_v7, %v713_v50  ;;  %v600_v1 = vadd.f32 %v5334_v10, %v557_v44  ;;  %v635_v2 = vmax.f32 %v599_v52, 0.0  ;;  %v572_v60 = vmul.f32 %v4328_v22, %v5327_v5  ;;  %4730 = vmatpush3.bf16.msra.mxu1 %v5161_v59  ;;  %v5613_v7 = vld [vmem:[%s6654_s3 + $0xf8] sm:$0xff]  }
  0x4b   : > { %v1000_v53 = vshrl.u32 %v5604_v48, 16  ;;  %v1002_v3 = vshll.u32 %v5604_v48, 16  ;;  %v1009_v8 = vrot.slane %v1007_v55, 1  ;;  %v766_v11 = vrot.slane %v764_v58, 7  ;;  %4731 = vmatprep.subr.bf16.mxu1 %v5163_v31  ;;  %4780 = vmatpush3.bf16.msra.mxu0 %v5164_v25 }
  0x4c   : > { %v636_v12 = vmax.f32 %v600_v1, 0.0  ;;  %v573_v14 = vmul.f32 %v4329_v45, %v5327_v5  ;;  %v615_v59 = vadd.f32 %v5334_v10, %v572_v60  ;;  %v4301_v16 = vunpack.c.h.bf16 %v4427_v24  ;;  %4861 = vmatprep.subr.bf16.mxu0 %v5589_v39 }
  0x4d   : > { %v1004_v19 = vrot.slane %v1002_v3, 1  ;;  %v769_v20 = vor.u32 %v767_v61, %v766_v11  ;;  %v5620_v23 = vsel %vm5372_vm3, %v766_v11, %v871_v0  ;;  %v558_v25 = vmul.f32 %v4300_v46, %v5327_v5 }
  0x4e   : > { %v1103_v28 = vshll.u32 %v5620_v23, 16  ;;  %v666_v29 = vpack.c.bf16 %v636_v12, %v635_v2  ;;  %v616_v30 = vadd.f32 %v5334_v10, %v573_v14  ;;  %v651_v33 = vmax.f32 %v615_v59, 0.0  ;;  %4732 = vmatpush3.bf16.msra.mxu1 %v5163_v31 }
  0x4f   : > { %v1005_v24 = vor.u32 %v1004_v19, %v1000_v53  ;;  %v5631_v22 = vsel %vm5372_vm3, %v673_v42, %v769_v20  ;;  %v559_v44 = vmul.f32 %v4301_v16, %v5327_v5  ;;  %v601_v45 = vadd.f32 %v5334_v10, %v558_v25  ;;  %4813 = vmatprep.subr.bf16.mxu1 %v5613_v7 }
  0x50   : > { %v1096_v46 = vshrl.u32 %v5631_v22, 16  ;;  %v1098_v50 = vshll.u32 %v5631_v22, 16  ;;  %v1105_v52 = vrot.slane %v1103_v28, 1  ;;  %v715_v55 = vshrl.u32 %v666_v29, 16 }
  0x51   : > { %v5639_v58 = vsel %vm950_vm2, %v1005_v24, %v1009_v8  ;;  %v718_v31 = vshll.u32 %v666_v29, 16  ;;  %v864_v61 = vrot.slane %v666_v29, 7  ;;  %v652_v0 = vmax.f32 %v616_v30, 0.0 }
  0x52   : > { %4693 = vmatprep.mubr.bf16.mxu0 %v5639_v58  ;;  %v1100_v42 = vrot.slane %v1098_v50, 1  ;;  %v717_v1 = vrot.slane %v715_v55, 7  ;;  %v602_v2 = vadd.f32 %v5334_v10, %v559_v44  ;;  %v637_v60 = vmax.f32 %v601_v45, 0.0 }
  0x53   : > { %v674_v53 = vpack.c.bf16 %v652_v0, %v651_v33  ;;  %v4332_v3 = vunpack.c.l.bf16 %v4435_v35  ;;  %v4333_v11 = vunpack.c.h.bf16 %v4435_v35  ;;  %v4304_v12 = vunpack.c.l.bf16 %v5627_v38 }
  0x54   : > { %v1101_v14 = vor.u32 %v1100_v42, %v1096_v46  ;;  %v720_v59 = vor.u32 %v718_v31, %v717_v1  ;;  %v5646_v8 = vsel %vm5372_vm3, %v717_v1, %v864_v61  ;;  %v638_v16 = vmax.f32 %v602_v2, 0.0 }
  0x55   : > { %v1019_v19 = vshll.u32 %v5646_v8, 16  ;;  %v771_v20 = vshrl.u32 %v674_v53, 16  ;;  %v774_v25 = vshll.u32 %v674_v53, 16  ;;  %v872_v28 = vrot.slane %v674_v53, 7 }
  0x56   : > { %v5650_v30 = vsel %vm950_vm2, %v1101_v14, %v1105_v52  ;;  %v5654_v33 = vsel %vm5372_vm3, %v666_v29, %v720_v59  ;;  %v667_v35 = vpack.c.bf16 %v638_v16, %v637_v60  ;;  %v574_v24 = vmul.f32 %v4332_v3, %v5327_v5 }
  0x57   : > { %6668 = vst [vmem:[#allocation3_spill] sm:$0xff] %v5650_v30  ;;  %4709 = vmatprep.mubr.bf16.mxu1 %v5650_v30  ;;  %v1012_v44 = vshrl.u32 %v5654_v33, 16  ;;  %v1014_v45 = vshll.u32 %v5654_v33, 16  ;;  %v1021_v46 = vrot.slane %v1019_v19, 1  ;;  %v773_v50 = vrot.slane %v771_v20, 7 }
  0x58   : > { %v722_v55 = vshrl.u32 %v667_v35, 16  ;;  %v725_v31 = vshll.u32 %v667_v35, 16  ;;  %v865_v61 = vrot.slane %v667_v35, 7  ;;  %v575_v52 = vmul.f32 %v4333_v11, %v5327_v5 }
  0x59   : > { %v1016_v0 = vrot.slane %v1014_v45, 1  ;;  %v776_v42 = vor.u32 %v774_v25, %v773_v50  ;;  %v5663_v29 = vsel %vm5372_vm3, %v773_v50, %v872_v28  ;;  %v617_v1 = vadd.f32 %v5334_v10, %v574_v24 }
  0x5a   : > { %v1115_v2 = vshll.u32 %v5663_v29, 16  ;;  %v724_v60 = vrot.slane %v722_v55, 7  ;;  %v618_v3 = vadd.f32 %v5334_v10, %v575_v52  ;;  %v4305_v14 = vunpack.c.h.bf16 %v5627_v38  ;;  %v5699_v55 = vld [vmem:[%s6656_s5] ss:$0 sm:$0xff] }
  0x5b   : > { %v1017_v59 = vor.u32 %v1016_v0, %v1012_v44  ;;  %v5671_v11 = vsel %vm5372_vm3, %v674_v53, %v776_v42  ;;  %v653_v16 = vmax.f32 %v617_v1, 0.0  ;;  %v560_v19 = vmul.f32 %v4304_v12, %v5327_v5  ;;  %v5686_v53 = vld [vmem:[%s6655_s4] ss:$0 sm:$0xff]  ;;  %v4436_v12 = vld [vmem:[%s5319_s17 + $0x70] sm:$0xff]  }
  0x5c   : > { %v1108_v20 = vshrl.u32 %v5671_v11, 16  ;;  %v1110_v25 = vshll.u32 %v5671_v11, 16  ;;  %v1117_v28 = vrot.slane %v1115_v2, 1  ;;  %v727_v24 = vor.u32 %v725_v31, %v724_v60 }
  0x5d   : > { %v5677_v45 = vsel %vm950_vm2, %v1017_v59, %v1021_v46  ;;  %v5681_v10 = vsel %vm5372_vm3, %v724_v60, %v865_v61  ;;  %v654_v38 = vmax.f32 %v618_v3, 0.0  ;;  %v561_v5 = vmul.f32 %v5686_v53, %v4305_v14 }
  0x5e   : > { %4694 = vmatmul.mubr.bf16.gmra.mxu0 %v5677_v45  ;;  %v1112_v44 = vrot.slane %v1110_v25, 1  ;;  %v5693_v46 = vsel %vm5372_vm3, %v667_v35, %v727_v24  ;;  %v1031_v50 = vshll.u32 %v5681_v10, 16  ;;  %v603_v31 = vadd.f32 %v5699_v55, %v560_v19 }
  0x5f   : > { %v1024_v61 = vshrl.u32 %v5693_v46, 16  ;;  %v1026_v52 = vshll.u32 %v5693_v46, 16  ;;  %v675_v0 = vpack.c.bf16 %v654_v38, %v653_v16  ;;  %v604_v42 = vadd.f32 %v5699_v55, %v561_v5 }
  0x60   : > { %v1113_v1 = vor.u32 %v1112_v44, %v1108_v20  ;;  %v1033_v2 = vrot.slane %v1031_v50, 1  ;;  %v639_v35 = vmax.f32 %v603_v31, 0.0  ;;  %v4336_v60 = vunpack.c.l.bf16 %v4436_v12 }
  0x61   : > { %v1028_v3 = vrot.slane %v1026_v52, 1  ;;  %v778_v14 = vshrl.u32 %v675_v0, 16  ;;  %v781_v59 = vshll.u32 %v675_v0, 16  ;;  %v873_v25 = vrot.slane %v675_v0, 7 }
  0x62   : > { %v5706_v24 = vsel %vm950_vm2, %v1113_v1, %v1117_v28  ;;  %v640_v30 = vmax.f32 %v604_v42, 0.0  ;;  %v4337_v19 = vunpack.c.h.bf16 %v4436_v12  ;;  %v576_v49 = vmul.f32 %v5686_v53, %v4336_v60 }
  0x63   : > { %4710 = vmatmul.mubr.bf16.gmra.mxu1 %v5706_v24  ;;  %v1029_v16 = vor.u32 %v1028_v3, %v1024_v61  ;;  %v780_v38 = vrot.slane %v778_v14, 7 }
  0x64   : > { %v668_v5 = vpack.c.bf16 %v640_v30, %v639_v35  ;;  %v577_v20 = vmul.f32 %v5686_v53, %v4337_v19  ;;  %v619_v44 = vadd.f32 %v5699_v55, %v576_v49 }
  0x65   : > { %v5713_v50 = vsel %vm950_vm2, %v1029_v16, %v1033_v2  ;;  %v783_v31 = vor.u32 %v781_v59, %v780_v38  ;;  %v5717_v28 = vsel %vm5372_vm3, %v780_v38, %v873_v25 }
  0x66   : > { %4697 = vmatprep.mubr.bf16.mxu0 %v5713_v50  ;;  %v1127_v12 = vshll.u32 %v5717_v28, 16  ;;  %v729_v52 = vshrl.u32 %v668_v5, 16  ;;  %v732_v61 = vshll.u32 %v668_v5, 16  ;;  %v866_v42 = vrot.slane %v668_v5, 7 }
  0x67   : > { %v5723_v30 = vsel %vm5372_vm3, %v675_v0, %v783_v31  ;;  %v620_v49 = vadd.f32 %v5699_v55, %v577_v20  ;;  %v655_v1 = vmax.f32 %v619_v44, 0.0 }
  0x68   : > { %v1120_v2 = vshrl.u32 %v5723_v30, 16  ;;  %v1122_v35 = vshll.u32 %v5723_v30, 16  ;;  %v731_v60 = vrot.slane %v729_v52, 7  ;;  %v1129_v59 = vrot.slane %v1127_v12, 1 }
  0x69   : > { %v656_v3 = vmax.f32 %v620_v49, 0.0  ;;  %v1627_v12 = vrot.slane %v5391_v15, 1 }
  0x6a   : > { %v1124_v14 = vrot.slane %v1122_v35, 1  ;;  %v734_v25 = vor.u32 %v732_v61, %v731_v60  ;;  %v5730_v19 = vsel %vm5372_vm3, %v731_v60, %v866_v42  ;;  %v1628_v35 = vrot.slane %v5379_v6, 1 }
  0x6b   : > { %v1043_v16 = vshll.u32 %v5730_v19, 16  ;;  %v676_v0 = vpack.c.bf16 %v656_v3, %v655_v1 }
  0x6c   : > { %v1125_v38 = vor.u32 %v1124_v14, %v1120_v2  ;;  %v5735_v20 = vsel %vm5372_vm3, %v668_v5, %v734_v25 }
  0x6d   : > { %v1036_v44 = vshrl.u32 %v5735_v20, 16  ;;  %v1038_v31 = vshll.u32 %v5735_v20, 16  ;;  %v785_v52 = vshrl.u32 %v676_v0, 16  ;;  %v788_v42 = vshll.u32 %v676_v0, 16 }
  0x6e   : > { %v5741_v61 = vsel %vm950_vm2, %v1125_v38, %v1129_v59  ;;  %v874_v49 = vrot.slane %v676_v0, 7  ;;  %v1045_v2 = vrot.slane %v1043_v16, 1  ;;  %v1629_v59 = vsel %vm1626_vm4, %v1627_v12, %v1628_v35 }
  0x6f   : > { %4713 = vmatprep.mubr.bf16.mxu1 %v5741_v61  ;;  %v1040_v1 = vrot.slane %v1038_v31, 1  ;;  %v787_v5 = vrot.slane %v785_v52, 7  ;;  %v1631_v31 = vrot.slane %v5396_v18, 1  ;;  %v1630_v52 = vrot.slane %v5414_v27, 1  ;;  %v5168_v18 = vld [vmem:[%s6654_s3 + $0x130] sm:$0xff]  }
  0x70   : > { %v1634_v35 = vrot.slane %v5490_v47, 1  ;;  %v1636_v47 = vrot.slane %v5539_v41, 1 }
  0x71   : > { %v1041_v60 = vor.u32 %v1040_v1, %v1036_v44  ;;  %v790_v3 = vor.u32 %v788_v42, %v787_v5  ;;  %v5747_v14 = vsel %vm5372_vm3, %v787_v5, %v874_v49  ;;  %v1633_v49 = vrot.slane %v5500_v56, 1 }
  0x72   : > { %v1139_v25 = vshll.u32 %v5747_v14, 16 }
  0x73   : > { %v5752_v38 = vsel %vm950_vm2, %v1041_v60, %v1045_v2  ;;  %v5756_v6 = vsel %vm5372_vm3, %v676_v0, %v790_v3  ;;  %v5766_v0 = vsel %vm1626_vm4, %v1630_v52, %v1631_v31  ;;  %v5772_v5 = vsel %vm1626_vm4, %v1633_v49, %v1634_v35  ;;  %v5170_v3 = vld [vmem:[%s6654_s3 + $0x128] sm:$0xff]   ;;  %v5173_v35 = vld [vmem:[%s6654_s3 + $0xd8] sm:$0xff]  }
  0x74   : > { %4698 = vmatmul.mubr.bf16.gmra.mxu0 %v5752_v38  ;;  %v1132_v16 = vshrl.u32 %v5756_v6, 16  ;;  %v1134_v44 = vshll.u32 %v5756_v6, 16  ;;  %v1141_v12 = vrot.slane %v1139_v25, 1  ;;  %v1637_v60 = vrot.slane %v5529_v32, 1 }
  0x75   : > { %4781 = vmatprep.mubr.bf16.mxu0 %v1629_v59  ;;  %v1639_v25 = vrot.slane %v5604_v48, 1  ;;  %v1640_v59 = vrot.slane %v5597_v51, 1  ;;  %v5169_v51 = vld [vmem:[%s6654_s3 + $0xe8] sm:$0xff]   ;;  %v1643_v31 = vrot.slane %v5646_v8, 1  ;;  %v1645_v52 = vrot.slane %v5693_v46, 1 }
  0x76   : > { %v1136_v42 = vrot.slane %v1134_v44, 1  ;;  %v1642_v44 = vrot.slane %v5654_v33, 1 }
  0x77   : > { %v5797_v32 = vsel %vm1626_vm4, %v1639_v25, %v1640_v59  ;;  %v5175_v25 = vld [vmem:[%s6654_s3 + $0xd0] sm:$0xff]  }
  0x78   : > { %v1137_v1 = vor.u32 %v1136_v42, %v1132_v16  ;;  %v5172_v16 = vld [vmem:[%s6654_s3 + $0x120] sm:$0xff]   ;;  %v5174_v42 = vld [vmem:[%s6654_s3 + $0x118] sm:$0xff]   ;;  %v5820_v49 = vsel %vm1626_vm4, %v1642_v44, %v1643_v31  ;;  %v1657_v44 = vrot.slane %v5515_v9, 1  ;;  %v1658_v31 = vrot.slane %v5511_v4, 1 }
  0x79   : > { %v5181_v4 = vld [vmem:[%s6654_s3 + $0x178] sm:$0xff]  }
  0x7a   : > { %v5769_v2 = vsel %vm950_vm2, %v1137_v1, %v1141_v12  ;;  %v5171_v12 = vld [vmem:[%s6654_s3 + $0xe0] sm:$0xff]   ;;  %v1648_v1 = vrot.slane %v5735_v20, 1 }
  0x7b   : > { %6669 = vst [vmem:[#allocation4_spill] sm:$0xff] %v5769_v2  ;;  %4714 = vmatmul.mubr.bf16.gmra.mxu1 %v5769_v2 }
  0x7c   : > { %4733 = vmatprep.mubr.bf16.mxu1 %v5391_v15  ;;  %4782 = vmatmul.mubr.bf16.vlgmr.msra.gmra.mxu0 %v5766_v0  ;;  %v5167_v15 = vld [vmem:[%s6654_s3 + $0xf0] sm:$0xff]  }
  0x7d   : > { %4862 = vmatpush3.bf16.msra.mxu0 %v5589_v39  ;;  %4785 = vmatprep.mubr.bf16.mxu0 %v5772_v5  ;;  %v5793_v39 = vsel %vm1626_vm4, %v1636_v47, %v1637_v60  ;;  %v1651_v47 = vrot.slane %v5402_v21, 1  ;;  %v1652_v60 = vrot.slane %v5387_v13, 1  ;;  %v5180_v13 = vld [vmem:[%s6654_s3 + $0x100] sm:$0xff]  }
  0x7e   : > { %4863 = vmatprep.subr.bf16.mxu0 %v5168_v18 }
  0x81   : > { %4864 = vmatpush3.bf16.msra.mxu0 %v5168_v18  ;;  %v1649_v18 = vrot.slane %v5730_v19, 1  ;;  %v5850_v19 = vsel %vm1626_vm4, %v1651_v47, %v1652_v60  ;;  %v1669_v60 = vrot.slane %v5723_v30, 1 }
  0x82   : > { %4865 = vmatprep.subr.bf16.mxu0 %v5170_v3 }
  0x83   : > { %4734 = vmatmul.mubr.bf16.vlgmr.msra.gmra.mxu1 %v5414_v27  ;;  %v5846_v59 = vsel %vm1626_vm4, %v1648_v1, %v1649_v18  ;;  %v1664_v1 = vrot.slane %v5620_v23, 1  ;;  %v1667_v23 = vrot.slane %v5663_v29, 1  ;;  %v1672_v29 = vrot.slane %v5756_v6, 1 }
  0x84   : > { %4814 = vmatpush3.bf16.msra.mxu1 %v5613_v7  ;;  %4737 = vmatprep.mubr.bf16.mxu1 %v5500_v56  ;;  %v1646_v7 = vrot.slane %v5681_v10, 1  ;;  %v5176_v10 = vld [vmem:[%s6654_s3 + $0x110] sm:$0xff]  }
  0x85   : > { %4786 = vmatmul.mubr.bf16.gmra.mxu0 %v5793_v39  ;;  %4815 = vmatprep.subr.bf16.mxu1 %v5167_v15 }
  0x86   : > { %4789 = vmatprep.mubr.bf16.mxu0 %v5797_v32  ;;  %4866 = vmatpush3.bf16.msra.mxu0 %v5170_v3  ;;  %v5824_v8 = vsel %vm1626_vm4, %v1645_v52, %v1646_v7  ;;  %v5178_v3 = vld [vmem:[%s6654_s3 + $0x108] sm:$0xff]   ;;  %v5182_v52 = vld [vmem:[%s6654_s3 + $0x1b8] sm:$0xff]   ;;  %v5179_v7 = vld [vmem:[%s6654_s3 + $0xc0] sm:$0xff]  }
  0x87   : > { %4867 = vmatprep.subr.bf16.mxu0 %v5172_v16 }
  0x88   : > { %4816 = vmatpush3.bf16.msra.mxu1 %v5167_v15  ;;  %v5177_v15 = vld [vmem:[%s6654_s3 + $0xc8] sm:$0xff]  }
  0x89   : > { %4817 = vmatprep.subr.bf16.mxu1 %v5169_v51 }
  0x8a   : > { %4868 = vmatpush3.bf16.msra.mxu0 %v5172_v16  ;;  %v1654_v16 = vrot.slane %v5429_v43, 1 }
  0x8b   : > { %4738 = vmatmul.mubr.bf16.gmra.mxu1 %v5539_v41  ;;  %4869 = vmatprep.subr.bf16.mxu0 %v5174_v42 }
  0x8c   : > { %4741 = vmatprep.mubr.bf16.mxu1 %v5604_v48  ;;  %4818 = vmatpush3.bf16.msra.mxu1 %v5169_v51  ;;  %v1655_v51 = vrot.slane %v5424_v37, 1  ;;  %v5876_v37 = vsel %vm1626_vm4, %v1657_v44, %v1658_v31 }
  0x8d   : > { %4790 = vmatmul.mubr.bf16.gmra.mxu0 %v5820_v49  ;;  %4819 = vmatprep.subr.bf16.mxu1 %v5171_v12 }
  0x8e   : > { %4793 = vmatprep.mubr.bf16.mxu0 %v5824_v8  ;;  %4870 = vmatpush3.bf16.msra.mxu0 %v5174_v42  ;;  %v5872_v42 = vsel %vm1626_vm4, %v1654_v16, %v1655_v51  ;;  %v5184_v16 = vld [vmem:[%s6654_s3 + $0x1b0] sm:$0xff]   ;;  %v4437_v51 = vld [vmem:[%s5319_s17 + $0x78] sm:$0xff]  }
  0x8f   : > { %4871 = vmatprep.subr.bf16.mxu0 %v5176_v10  ;;  %v4340_v44 = vunpack.c.l.bf16 %v4437_v51  ;;  %v4341_v31 = vunpack.c.h.bf16 %v4437_v51  ;;  %v5193_v51 = vld [vmem:[%s6654_s3 + $0x148] sm:$0xff]  }
  0x90   : > { %4820 = vmatpush3.bf16.msra.mxu1 %v5171_v12  ;;  %v1660_v12 = vrot.slane %v5565_v62, 1 }
  0x91   : > { %4821 = vmatprep.subr.bf16.mxu1 %v5173_v35 }
  0x92   : > { %4872 = vmatpush3.bf16.msra.mxu0 %v5176_v10  ;;  %v1661_v10 = vrot.slane %v5556_v40, 1  ;;  %v1666_v40 = vrot.slane %v5671_v11, 1 }
  0x93   : > { %4742 = vmatmul.mubr.bf16.gmra.mxu1 %v5654_v33  ;;  %4873 = vmatprep.subr.bf16.mxu0 %v5178_v3 }
  0x94   : > { %4745 = vmatprep.mubr.bf16.mxu1 %v5693_v46  ;;  %4822 = vmatpush3.bf16.msra.mxu1 %v5173_v35  ;;  %v1663_v35 = vrot.slane %v5631_v22, 1  ;;  %v5889_v18 = vsel %vm1626_vm4, %v1660_v12, %v1661_v10  ;;  %v578_v12 = vmul.f32 %v5686_v53, %v4340_v44  ;;  %v5187_v10 = vld [vmem:[%s6654_s3 + $0x160] sm:$0xff]  }
  0x95   : > { %4794 = vmatmul.mubr.bf16.gmra.mxu0 %v5846_v59  ;;  %4823 = vmatprep.subr.bf16.mxu1 %v5175_v25  ;;  %v4275_v44 = vld [vmem:[%s443_s10] sm:$0xff]  }
  0x96   : > { %4797 = vmatprep.mubr.bf16.mxu0 %v5850_v19  ;;  %4874 = vmatpush3.bf16.msra.mxu0 %v5178_v3  ;;  %v5893_v47 = vsel %vm1626_vm4, %v1663_v35, %v1664_v1  ;;  %v1670_v3 = vrot.slane %v5717_v28, 1  ;;  %v5192_v35 = vld [vmem:[%s6654_s3 + $0x190] sm:$0xff]   ;;  %v621_v1 = vadd.f32 %v5699_v55, %v578_v12  ;;  %v4276_v12 = vunpack.c.l.bf16 %v4275_v44 }
  0x97   : > { %4875 = vmatprep.subr.bf16.mxu0 %v5180_v13 }
  0x98   : > { %4824 = vmatpush3.bf16.msra.mxu1 %v5175_v25  ;;  %v5903_v25 = vsel %vm1626_vm4, %v1666_v40, %v1667_v23  ;;  %v5189_v23 = vld [vmem:[%s6654_s3 + $0x158] sm:$0xff]  }
  0x99   : > { %4825 = vmatprep.subr.bf16.mxu1 %v5177_v15 }
  0x9a   : > { %4876 = vmatpush3.bf16.msra.mxu0 %v5180_v13  ;;  %v5907_v13 = vsel %vm1626_vm4, %v1669_v60, %v1670_v3  ;;  %v5194_v60 = vld [vmem:[%s6654_s3 + $0x188] sm:$0xff]   ;;  %v657_v3 = vmax.f32 %v621_v1, 0.0 }
  0x9b   : > { %4746 = vmatmul.mubr.bf16.gmra.mxu1 %v5735_v20  ;;  %4957 = vmatprep.subr.bf16.mxu0 %v5182_v52 }
  0x9c   : > { %4749 = vmatprep.mubr.bf16.mxu1 %v5402_v21  ;;  %4826 = vmatpush3.bf16.msra.mxu1 %v5177_v15  ;;  %v1673_v15 = vrot.slane %v5747_v14, 1  ;;  %v5186_v14 = vld [vmem:[%s6654_s3 + $0x1a8] sm:$0xff]  }
  0x9d   : > { %4798 = vmatmul.mubr.bf16.gmra.mxu0 %v5872_v42  ;;  %4827 = vmatprep.subr.bf16.mxu1 %v5179_v7 }
  0x9e   : > { %4801 = vmatprep.mubr.bf16.mxu0 %v5876_v37  ;;  %v5915_v28 = vsel %vm1626_vm4, %v1672_v29, %v1673_v15  ;;  %v5191_v15 = vld [vmem:[%s6654_s3 + $0x150] sm:$0xff]  }
  0xa0   : > { %4828 = vmatpush3.bf16.msra.mxu1 %v5179_v7  ;;  %v5190_v7 = vld [vmem:[%s6654_s3 + $0x198] sm:$0xff]  }
  0xa1   : > { %4909 = vmatprep.subr.bf16.mxu1 %v5181_v4 }
  0xa3   : > { %4750 = vmatmul.mubr.bf16.gmra.mxu1 %v5429_v43 }
  0xa4   : > { %4753 = vmatprep.mubr.bf16.mxu1 %v5515_v9 }
  0xa5   : > { %4802 = vmatmul.mubr.bf16.gmra.mxu0 %v5889_v18 }
  0xa6   : > { %4805 = vmatprep.mubr.bf16.mxu0 %v5893_v47 }
  0xab   : > { %4754 = vmatmul.mubr.bf16.gmra.mxu1 %v5565_v62 }
  0xac   : > { %4757 = vmatprep.mubr.bf16.mxu1 %v5631_v22 }
  0xad   : > { %4806 = vmatmul.mubr.bf16.gmra.mxu0 %v5903_v25 }
  0xae   : > { %4809 = vmatprep.mubr.bf16.mxu0 %v5907_v13 }
  0xb3   : > { %4758 = vmatmul.mubr.bf16.gmra.mxu1 %v5671_v11 }
  0xb4   : > { %4761 = vmatprep.mubr.bf16.mxu1 %v5723_v30 }
  0xb5   : > { %4810 = vmatmul.mubr.bf16.gmra.mxu0 %v5915_v28 }
  0xb6   : > { %4877 = vmatprep.mubr.bf16.mxu0 %v5451_v57  ;;  %v5183_v57 = vld [vmem:[%s6654_s3 + $0x170] sm:$0xff]  }
  0xbb   : > { %4762 = vmatmul.mubr.bf16.gmra.mxu1 %v5756_v6 }
  0xbc   : > { %4829 = vmatprep.mubr.bf16.mxu1 %v5414_v27  ;;  %v5188_v27 = vld [vmem:[%s6654_s3 + $0x1a0] sm:$0xff]  }
  0xbd   : > { %4878 = vmatmul.mubr.bf16.vlgmr.msra.gmra.mxu0 %v5532_v34 }
  0xbe   : > { %4958 = vmatpush3.bf16.msra.mxu0 %v5182_v52  ;;  %4881 = vmatprep.mubr.bf16.mxu0 %v5579_v26  ;;  %v5185_v52 = vld [vmem:[%s6654_s3 + $0x168] sm:$0xff]  }
  0xbf   : > { %4959 = vmatprep.subr.bf16.mxu0 %v5184_v16 }
  0xc2   : > { %4960 = vmatpush3.bf16.msra.mxu0 %v5184_v16 }
  0xc3   : > { %4830 = vmatmul.mubr.bf16.vlgmr.msra.gmra.mxu1 %v5500_v56  ;;  %4961 = vmatprep.subr.bf16.mxu0 %v5186_v14 }
  0xc4   : > { %4910 = vmatpush3.bf16.msra.mxu1 %v5181_v4  ;;  %4833 = vmatprep.mubr.bf16.mxu1 %v5539_v41  ;;  %v579_v4 = vmul.f32 %v5686_v53, %v4341_v31  ;;  %v5195_v31 = vld [vmem:[%s6654_s3 + $0x140] sm:$0xff]  }
  0xc5   : > { %4882 = vmatmul.mubr.bf16.gmra.mxu0 %v5639_v58  ;;  %4911 = vmatprep.subr.bf16.mxu1 %v5183_v57 }
  0xc6   : > { %4885 = vmatprep.mubr.bf16.mxu0 %v5677_v45  ;;  %4962 = vmatpush3.bf16.msra.mxu0 %v5186_v14  ;;  %v622_v40 = vadd.f32 %v5699_v55, %v579_v4  ;;  %v5196_v14 = vld [vmem:[%s6654_s3 + $0x180] sm:$0xff]   ;;  %v4277_v4 = vunpack.c.h.bf16 %v4275_v44 }
  0xc7   : > { %4963 = vmatprep.subr.bf16.mxu0 %v5188_v27 }
  0xc8   : > { %4912 = vmatpush3.bf16.msra.mxu1 %v5183_v57  ;;  %v658_v29 = vmax.f32 %v622_v40, 0.0  ;;  %v580_v40 = vmul.f32 %v5686_v53, %v4276_v12 }
  0xc9   : > { %4913 = vmatprep.subr.bf16.mxu1 %v5185_v52 }
  0xca   : > { %4964 = vmatpush3.bf16.msra.mxu0 %v5188_v27  ;;  %v677_v16 = vpack.c.bf16 %v658_v29, %v657_v3  ;;  %v5198_v27 = vld [vmem:[%s6654_s3 + $0x238] sm:$0xff]   ;;  %v623_v29 = vadd.f32 %v5699_v55, %v580_v40 }
  0xcb   : > { %4834 = vmatmul.mubr.bf16.gmra.mxu1 %v5604_v48  ;;  %4965 = vmatprep.subr.bf16.mxu0 %v5190_v7 }
  0xcc   : > { %4837 = vmatprep.mubr.bf16.mxu1 %v5654_v33  ;;  %4914 = vmatpush3.bf16.msra.mxu1 %v5185_v52  ;;  %v792_v57 = vshrl.u32 %v677_v16, 16  ;;  %v875_v3 = vrot.slane %v677_v16, 7 }
  0xcd   : > { %4886 = vmatmul.mubr.bf16.gmra.mxu0 %v5713_v50  ;;  %4915 = vmatprep.subr.bf16.mxu1 %v5187_v10 }
  0xce   : > { %4889 = vmatprep.mubr.bf16.mxu0 %v5752_v38  ;;  %4966 = vmatpush3.bf16.msra.mxu0 %v5190_v7  ;;  %v794_v52 = vrot.slane %v792_v57, 7  ;;  %v795_v7 = vshll.u32 %v677_v16, 16  ;;  %v659_v57 = vmax.f32 %v623_v29, 0.0  ;;  %v5200_v29 = vld [vmem:[%s6654_s3 + $0x230] sm:$0xff]  }
  0xcf   : > { %4967 = vmatprep.subr.bf16.mxu0 %v5192_v35 }
  0xd0   : > { %4916 = vmatpush3.bf16.msra.mxu1 %v5187_v10  ;;  %v5197_v10 = vld [vmem:[%s6654_s3 + $0x1f8] sm:$0xff]   ;;  %v797_v1 = vor.u32 %v795_v7, %v794_v52 }
  0xd1   : > { %4917 = vmatprep.subr.bf16.mxu1 %v5189_v23 }
  0xd2   : > { %4968 = vmatpush3.bf16.msra.mxu0 %v5192_v35  ;;  %v6670_v35 = vld [vmem:[#allocation2_spill] sm:$0xff] }
  0xd3   : > { %4838 = vmatmul.mubr.bf16.gmra.mxu1 %v5693_v46  ;;  %4969 = vmatprep.subr.bf16.mxu0 %v5194_v60 }
  0xd4   : > { %4841 = vmatprep.mubr.bf16.mxu1 %v5735_v20  ;;  %4918 = vmatpush3.bf16.msra.mxu1 %v5189_v23  ;;  %v581_v23 = vmul.f32 %v5686_v53, %v4277_v4 }
  0xd5   : > { %4890 = vmatmul.mubr.bf16.gmra.mxu0 %v5444_v36  ;;  %4919 = vmatprep.subr.bf16.mxu1 %v5191_v15 }
  0xd6   : > { %4893 = vmatprep.mubr.bf16.mxu0 %v5470_v17  ;;  %4970 = vmatpush3.bf16.msra.mxu0 %v5194_v60  ;;  %v6003_v60 = vsel %vm5372_vm3, %v677_v16, %v797_v1 }
  0xd7   : > { %4971 = vmatprep.subr.bf16.mxu0 %v5196_v14  ;;  %v2210_v53 = vshll.u32 %v6003_v60, 16  ;;  %v2208_v16 = vshrl.u32 %v6003_v60, 16 }
  0xd8   : > { %4920 = vmatpush3.bf16.msra.mxu1 %v5191_v15  ;;  %v624_v15 = vadd.f32 %v5699_v55, %v581_v23 }
  0xd9   : > { %4921 = vmatprep.subr.bf16.mxu1 %v5193_v51 }
  0xda   : > { %4972 = vmatpush3.bf16.msra.mxu0 %v5196_v14  ;;  %v6671_v14 = vld [vmem:[#allocation3_spill] sm:$0xff]  ;;  %v660_v44 = vmax.f32 %v624_v15, 0.0 }
  0xdb   : > { %4842 = vmatmul.mubr.bf16.gmra.mxu1 %v5402_v21  ;;  %5053 = vmatprep.subr.bf16.mxu0 %v5198_v27  ;;  %v5202_v15 = vld [vmem:[%s6654_s3 + $0x228] sm:$0xff]  }
  0xdc   : > { %4845 = vmatprep.mubr.bf16.mxu1 %v5429_v43  ;;  %4922 = vmatpush3.bf16.msra.mxu1 %v5193_v51  ;;  %v6013_v51 = vsel %vm5372_vm3, %v794_v52, %v875_v3  ;;  %v6018_v55 = vpack.c.bf16 %v660_v44, %v659_v57  ;;  %v5205_v44 = vld [vmem:[%s6654_s3 + $0x1d8] sm:$0xff]  }
  0xdd   : > { %4894 = vmatmul.mubr.bf16.gmra.mxu0 %v5552_v54  ;;  %4923 = vmatprep.subr.bf16.mxu1 %v5195_v31  ;;  %v2215_v7 = vshll.u32 %v6013_v51, 16 }
  0xde   : > { %4897 = vmatprep.mubr.bf16.mxu0 %v6670_v35  ;;  %v799_v4 = vshrl.u32 %v6018_v55, 16  ;;  %v876_v23 = vrot.slane %v6018_v55, 7 }
  0xdf   : > { %v2217_v52 = vrot.slane %v2215_v7, 1 }
  0xe0   : > { %4924 = vmatpush3.bf16.msra.mxu1 %v5195_v31  ;;  %v2212_v31 = vrot.slane %v2210_v53, 1  ;;  %v6028_v40 = vrot.slane %v799_v4, 7  ;;  %v5209_v4 = vld [vmem:[%s6654_s3 + $0x1c8] sm:$0xff]  }
  0xe1   : > { %5005 = vmatprep.subr.bf16.mxu1 %v5197_v10 }
  0xe2   : > { %v2213_v12 = vor.u32 %v2212_v31, %v2208_v16  ;;  %v6036_v3 = vsel %vm5372_vm3, %v6028_v40, %v876_v23  ;;  %v5210_v31 = vld [vmem:[%s6654_s3 + $0x208] sm:$0xff]  }
  0xe3   : > { %4846 = vmatmul.mubr.bf16.gmra.mxu1 %v5515_v9 }
  0xe4   : > { %4849 = vmatprep.mubr.bf16.mxu1 %v5565_v62  ;;  %v6025_v1 = vsel %vm950_vm2, %v2213_v12, %v2217_v52  ;;  %v5212_v12 = vld [vmem:[%s6654_s3 + $0x200] sm:$0xff]  }
  0xe5   : > { %4898 = vmatmul.mubr.bf16.gmra.mxu0 %v6671_v14  ;;  %6672 = vst [vmem:[#allocation2_spill] sm:$0xff] %v6025_v1 }
  0xe6   : > { %4901 = vmatprep.mubr.bf16.mxu0 %v5706_v24 }
  0xeb   : > { %4850 = vmatmul.mubr.bf16.gmra.mxu1 %v5631_v22 }
  0xec   : > { %4853 = vmatprep.mubr.bf16.mxu1 %v5671_v11 }
  0xed   : > { %4902 = vmatmul.mubr.bf16.gmra.mxu0 %v5741_v61 }
  0xee   : > { %4905 = vmatprep.mubr.bf16.mxu0 %v5769_v2 }
  0xf0   : > { %v6073_v53 = vpop.f32.mrf.mxu1 }
  0xf2   : > { %v6086_v16 = vpop.f32.mrf.mxu1 }
  0xf3   : > { %4854 = vmatmul.mubr.bf16.gmra.mxu1 %v5723_v30 }
  0xf4   : > { %4857 = vmatprep.mubr.bf16.mxu1 %v5756_v6 }
  0xf5   : > { %4906 = vmatmul.mubr.bf16.gmra.mxu0 %v6025_v1 }
  0xf6   : > { %4973 = vmatprep.mubr.bf16.mxu0 %v5500_v56  ;;  %v5199_v56 = vld [vmem:[%s6654_s3 + $0x1f0] sm:$0xff]  }
  0xfb   : > { %4858 = vmatmul.mubr.bf16.gmra.mxu1 %v6003_v60 }
  0xfc   : > { %4925 = vmatprep.mubr.bf16.mxu1 %v5766_v0  ;;  %v5201_v0 = vld [vmem:[%s6654_s3 + $0x1e8] sm:$0xff]  }
  0xfd   : > { %4974 = vmatmul.mubr.bf16.vlgmr.msra.gmra.mxu0 %v5539_v41  ;;  %v5204_v41 = vld [vmem:[%s6654_s3 + $0x220] sm:$0xff]  }
  0xfe   : > { %5054 = vmatpush3.bf16.msra.mxu0 %v5198_v27  ;;  %4977 = vmatprep.mubr.bf16.mxu0 %v5604_v48  ;;  %v6057_v48 = vpop.f32.mrf.mxu0  ;;  %v5206_v27 = vld [vmem:[%s6654_s3 + $0x218] sm:$0xff]  }
  0xff   : > { %5055 = vmatprep.subr.bf16.mxu0 %v5200_v29 }
 0x102   : > { %5056 = vmatpush3.bf16.msra.mxu0 %v5200_v29 }
 0x103   : > { %4926 = vmatmul.mubr.bf16.vlgmr.msra.gmra.mxu1 %v5772_v5  ;;  %5057 = vmatprep.subr.bf16.mxu0 %v5202_v15 }
 0x104   : > { %5006 = vmatpush3.bf16.msra.mxu1 %v5197_v10  ;;  %4929 = vmatprep.mubr.bf16.mxu1 %v5793_v39  ;;  %v6067_v10 = vpop.f32.mrf.mxu0 }
 0x105   : > { %4978 = vmatmul.mubr.bf16.gmra.mxu0 %v5654_v33  ;;  %5007 = vmatprep.subr.bf16.mxu1 %v5199_v56  ;;  %v5203_v33 = vld [vmem:[%s6654_s3 + $0x1e0] sm:$0xff]  }
 0x106   : > { %4981 = vmatprep.mubr.bf16.mxu0 %v5693_v46  ;;  %5058 = vmatpush3.bf16.msra.mxu0 %v5202_v15  ;;  %v5208_v46 = vld [vmem:[%s6654_s3 + $0x210] sm:$0xff]   ;;  %v6079_v57 = vpop.f32.mrf.mxu0  ;;  %v5211_v15 = vld [vmem:[%s6654_s3 + $0x1c0] sm:$0xff]  }
 0x107   : > { %5059 = vmatprep.subr.bf16.mxu0 %v5204_v41 }
 0x108   : > { %5008 = vmatpush3.bf16.msra.mxu1 %v5199_v56  ;;  %v6091_v7 = vpop.f32.mrf.mxu0 }
 0x109   : > { %5009 = vmatprep.subr.bf16.mxu1 %v5201_v0 }
 0x10a   : > { %5060 = vmatpush3.bf16.msra.mxu0 %v5204_v41  ;;  %v6103_v52 = vpop.f32.mrf.mxu0 }
 0x10b   : > { %4930 = vmatmul.mubr.bf16.gmra.mxu1 %v5797_v32  ;;  %5061 = vmatprep.subr.bf16.mxu0 %v5206_v27 }
 0x10c   : > { %4933 = vmatprep.mubr.bf16.mxu1 %v5820_v49  ;;  %5010 = vmatpush3.bf16.msra.mxu1 %v5201_v0  ;;  %v6112_v29 = vpop.f32.mrf.mxu0 }
 0x10d   : > { %4982 = vmatmul.mubr.bf16.gmra.mxu0 %v5735_v20  ;;  %5011 = vmatprep.subr.bf16.mxu1 %v5203_v33  ;;  %v5207_v20 = vld [vmem:[%s6654_s3 + $0x1d0] sm:$0xff]  }
 0x10e   : > { %4985 = vmatprep.mubr.bf16.mxu0 %v5402_v21  ;;  %5062 = vmatpush3.bf16.msra.mxu0 %v5206_v27  ;;  %v6097_v21 = vpop.f32.mrf.mxu1 }
 0x10f   : > { %5063 = vmatprep.subr.bf16.mxu0 %v5208_v46 }
 0x110   : > { %5012 = vmatpush3.bf16.msra.mxu1 %v5203_v33  ;;  %v6110_v23 = vpop.f32.mrf.mxu1  ;;  %v802_v33 = vshll.u32 %v6018_v55, 16 }
 0x111   : > { %5013 = vmatprep.subr.bf16.mxu1 %v5205_v44 }
 0x112   : > { %5064 = vmatpush3.bf16.msra.mxu0 %v5208_v46 }
 0x113   : > { %4934 = vmatmul.mubr.bf16.gmra.mxu1 %v5824_v8  ;;  %5065 = vmatprep.subr.bf16.mxu0 %v5210_v31 }
 0x114   : > { %4937 = vmatprep.mubr.bf16.mxu1 %v5846_v59  ;;  %5014 = vmatpush3.bf16.msra.mxu1 %v5205_v44 }
 0x115   : > { %4986 = vmatmul.mubr.bf16.gmra.mxu0 %v5429_v43  ;;  %5015 = vmatprep.subr.bf16.mxu1 %v5207_v20  ;;  %v6118_v43 = vpop.f32.mrf.mxu1 }
 0x116   : > { %4989 = vmatprep.mubr.bf16.mxu0 %v5515_v9  ;;  %5066 = vmatpush3.bf16.msra.mxu0 %v5210_v31  ;;  %v6121_v9 = vpop.f32.mrf.mxu0 }
 0x117   : > { %5067 = vmatprep.subr.bf16.mxu0 %v5212_v12  ;;  %v6125_v56 = vpop.f32.mrf.mxu1 }
 0x118   : > { %5016 = vmatpush3.bf16.msra.mxu1 %v5207_v20  ;;  %v6127_v41 = vpop.f32.mrf.mxu0 }
 0x119   : > { %5017 = vmatprep.subr.bf16.mxu1 %v5209_v4  ;;  %v6130_v0 = vpop.f32.mrf.mxu1 }
 0x11a   : > { %5068 = vmatpush3.bf16.msra.mxu0 %v5212_v12 }
 0x11b   : > { %4938 = vmatmul.mubr.bf16.gmra.mxu1 %v5850_v19 }
 0x11c   : > { %4941 = vmatprep.mubr.bf16.mxu1 %v5872_v42  ;;  %5018 = vmatpush3.bf16.msra.mxu1 %v5209_v4  ;;  %v2480_v4 = vrot.slane %v6003_v60, 1 }
 0x11d   : > { %4990 = vmatmul.mubr.bf16.gmra.mxu0 %v5565_v62  ;;  %5019 = vmatprep.subr.bf16.mxu1 %v5211_v15  ;;  %v6137_v62 = vpop.f32.mrf.mxu1 }
 0x11e   : > { %4993 = vmatprep.mubr.bf16.mxu0 %v5631_v22  ;;  %v6133_v27 = vpop.f32.mrf.mxu0  ;;  %6673 = vst [vmem:[#allocation3_spill] sm:$0xff] %v6137_v62 }
 0x120   : > { %5020 = vmatpush3.bf16.msra.mxu1 %v5211_v15  ;;  %v6139_v22 = vpop.f32.mrf.mxu0 }
 0x122   : > { %v6146_v44 = vpop.f32.mrf.mxu0 }
 0x123   : > { %4942 = vmatmul.mubr.bf16.gmra.mxu1 %v5876_v37  ;;  %v6143_v46 = vpop.f32.mrf.mxu1 }
 0x124   : > { %4945 = vmatprep.mubr.bf16.mxu1 %v5889_v18  ;;  %6674 = vst [vmem:[#allocation5_spill] sm:$0xff] %v6143_v46  ;;  %v6153_v31 = vpop.f32.mrf.mxu0 }
 0x125   : > { %4994 = vmatmul.mubr.bf16.gmra.mxu0 %v5671_v11  ;;  %v804_v11 = vor.u32 %v802_v33, %v6028_v40  ;;  %v2481_v40 = vrot.slane %v6013_v51, 1 }
 0x126   : > { %4997 = vmatprep.mubr.bf16.mxu0 %v5723_v30  ;;  %v6151_v30 = vpop.f32.mrf.mxu1 }
 0x127   : > { %6675 = vst [vmem:[#allocation6_spill] sm:$0xff] %v6151_v30  ;;  %v6158_v20 = vsel %vm5372_vm3, %v6018_v55, %v804_v11  ;;  %v6175_v55 = vsel %vm1626_vm4, %v2480_v4, %v2481_v40 }
 0x128   : > { %v6161_v12 = vpop.f32.mrf.mxu1 }
 0x129   : > { %6676 = vst [vmem:[#allocation7_spill] sm:$0xff] %v6161_v12 }
 0x12a   : > { %v6172_v63 = vpop.f32.mrf.mxu1 }
 0x12b   : > { %4946 = vmatmul.mubr.bf16.gmra.mxu1 %v5893_v47  ;;  %6677 = vst [vmem:[#allocation8_spill] sm:$0xff] %v6172_v63 }
 0x12c   : > { %4949 = vmatprep.mubr.bf16.mxu1 %v5903_v25 }
 0x12d   : > { %4998 = vmatmul.mubr.bf16.gmra.mxu0 %v5756_v6 }
 0x12e   : > { %5001 = vmatprep.mubr.bf16.mxu0 %v6003_v60 }
 0x133   : > { %4950 = vmatmul.mubr.bf16.gmra.mxu1 %v5907_v13 }
 0x134   : > { %4953 = vmatprep.mubr.bf16.mxu1 %v5915_v28  ;;  %v6164_v6 = vpop.f32.mrf.mxu0 }
 0x135   : > { %5002 = vmatmul.mubr.bf16.gmra.mxu0 %v6158_v20 }
 0x136   : > { %v6169_v15 = vpop.f32.mrf.mxu0  ;;  %5069 = vmatprep.mubr.bf16.mxu0 %v5772_v5 }
 0x138   : > { %v6177_v33 = vpop.f32.mrf.mxu0 }
 0x13a   : > { %v6179_v11 = vpop.f32.mrf.mxu0 }
 0x13b   : > { %v6181_v12 = vpop.f32.mrf.mxu1  ;;  %4954 = vmatmul.mubr.bf16.gmra.mxu1 %v6175_v55 }
 0x13c   : > { %6678 = vst [vmem:[#allocation9_spill] sm:$0xff] %v6181_v12  ;;  %5021 = vmatprep.mubr.bf16.mxu1 %v5532_v34  ;;  %v4783_v60 = vpop.f32.mrf.mxu0 }
 0x13d   : > { %v6185_v51 = vpop.f32.mrf.mxu1  ;;  %5070 = vmatmul.mubr.bf16.vlgmr.msra.gmra.mxu0 %v5793_v39 }
 0x13e   : > { %6679 = vst [vmem:[#allocation10_spill] sm:$0xff] %v6185_v51  ;;  %v1790_v5 = vpop.f32.mrf.mxu0  ;;  %5073 = vmatprep.mubr.bf16.mxu0 %v5797_v32 }
 0x13f   : > { %v6189_v4 = vpop.f32.mrf.mxu1 }
 0x140   : > { %6680 = vst [vmem:[#allocation11_spill] sm:$0xff] %v6189_v4  ;;  %v4784_v40 = vpop.f32.mrf.mxu0 }
 0x141   : > { %v6191_v63 = vpop.f32.mrf.mxu1 }
 0x142   : > { %6681 = vst [vmem:[#allocation12_spill] sm:$0xff] %v6191_v63  ;;  %v1793_v30 = vpop.f32.mrf.mxu0 }
 0x143   : > { %v4735_v1 = vpop.f32.mrf.mxu1  ;;  %5022 = vmatmul.mubr.bf16.vlgmr.msra.gmra.mxu1 %v5579_v26 }
 0x144   : > { %v1476_v12 = vadd.f32 %v4735_v1, %v6057_v48  ;;  %5025 = vmatprep.mubr.bf16.mxu1 %v5639_v58 }
 0x145   : > { %v1467_v34 = vpop.f32.mrf.mxu1  ;;  %v4787_v51 = vpop.f32.mrf.mxu0  ;;  %5074 = vmatmul.mubr.bf16.gmra.mxu0 %v5820_v49 }
 0x146   : > { %v6197_v39 = vadd.f32 %v4783_v60, %v1476_v12  ;;  %v1468_v32 = vadd.f32 %v1467_v34, %v6067_v10  ;;  %5077 = vmatprep.mubr.bf16.mxu0 %v5824_v8 }
 0x147   : > { %v4736_v4 = vpop.f32.mrf.mxu1  ;;  %v1806_v63 = vpop.f32.mrf.mxu0 }
 0x148   : > { %v6201_v46 = vadd.f32 %v1790_v5, %v1468_v32  ;;  %v1479_v26 = vadd.f32 %v4736_v4, %v6079_v57 }
 0x149   : > { %v1470_v2 = vpop.f32.mrf.mxu1  ;;  %v4788_v1 = vpop.f32.mrf.mxu0 }
 0x14a   : > { %v6204_v48 = vadd.f32 %v4784_v40, %v1479_v26  ;;  %v1471_v58 = vadd.f32 %v1470_v2, %v6091_v7 }
 0x14b   : > { %v4739_v62 = vpop.f32.mrf.mxu1  ;;  %5026 = vmatmul.mubr.bf16.gmra.mxu1 %v5677_v45  ;;  %v1809_v49 = vpop.f32.mrf.mxu0 }
 0x14c   : > { %v6208_v12 = vadd.f32 %v1793_v30, %v1471_v58  ;;  %v1492_v8 = vadd.f32 %v4739_v62, %v6103_v52  ;;  %5029 = vmatprep.mubr.bf16.mxu1 %v5713_v50 }
 0x14d   : > { %v1483_v10 = vpop.f32.mrf.mxu1  ;;  %v4791_v60 = vpop.f32.mrf.mxu0  ;;  %5078 = vmatmul.mubr.bf16.gmra.mxu0 %v5846_v59 }
 0x14e   : > { %v6213_v57 = vadd.f32 %v4787_v51, %v1492_v8  ;;  %v1484_v5 = vadd.f32 %v1483_v10, %v6112_v29  ;;  %5081 = vmatprep.mubr.bf16.mxu0 %v5850_v19 }
 0x14f   : > { %v4740_v2 = vpop.f32.mrf.mxu1  ;;  %v1822_v7 = vpop.f32.mrf.mxu0 }
 0x150   : > { %v6217_v45 = vadd.f32 %v1806_v63, %v1484_v5  ;;  %v1495_v30 = vadd.f32 %v4740_v2, %v6121_v9 }
 0x151   : > { %v1486_v4 = vpop.f32.mrf.mxu1  ;;  %v4792_v52 = vpop.f32.mrf.mxu0 }
 0x152   : > { %v6220_v62 = vadd.f32 %v4788_v1, %v1495_v30  ;;  %v1487_v50 = vadd.f32 %v1486_v4, %v6127_v41 }
 0x153   : > { %v4743_v40 = vpop.f32.mrf.mxu1  ;;  %5030 = vmatmul.mubr.bf16.gmra.mxu1 %v5752_v38  ;;  %v1825_v59 = vpop.f32.mrf.mxu0 }
 0x154   : > { %v6224_v51 = vadd.f32 %v1809_v49, %v1487_v50  ;;  %v1508_v19 = vadd.f32 %v4743_v40, %v6133_v27  ;;  %5033 = vmatprep.mubr.bf16.mxu1 %v5444_v36 }
 0x155   : > { %v1499_v29 = vpop.f32.mrf.mxu1  ;;  %v4795_v63 = vpop.f32.mrf.mxu0  ;;  %5082 = vmatmul.mubr.bf16.gmra.mxu0 %v5872_v42 }
 0x156   : > { %v6229_v9 = vadd.f32 %v4791_v60, %v1508_v19  ;;  %v1500_v34 = vadd.f32 %v1499_v29, %v6139_v22  ;;  %5085 = vmatprep.mubr.bf16.mxu0 %v5876_v37 }
 0x157   : > { %v4744_v41 = vpop.f32.mrf.mxu1  ;;  %v1838_v32 = vpop.f32.mrf.mxu0 }
 0x158   : > { %v6233_v38 = vadd.f32 %v1822_v7, %v1500_v34  ;;  %v1511_v26 = vadd.f32 %v4744_v41, %v6146_v44 }
 0x159   : > { %v1502_v1 = vpop.f32.mrf.mxu1  ;;  %v4796_v27 = vpop.f32.mrf.mxu0 }
 0x15a   : > { %v6236_v58 = vadd.f32 %v4792_v52, %v1511_v26  ;;  %v1503_v36 = vadd.f32 %v1502_v1, %v6153_v31  ;;  %v3273_v26 = vrot.slane %v6158_v20, 1 }
 0x15b   : > { %v4747_v49 = vpop.f32.mrf.mxu1  ;;  %5034 = vmatmul.mubr.bf16.gmra.mxu1 %v5470_v17  ;;  %v1841_v42 = vpop.f32.mrf.mxu0 }
 0x15c   : > { %v6240_v8 = vadd.f32 %v1825_v59, %v1503_v36  ;;  %v1524_v37 = vadd.f32 %v4747_v49, %v6164_v6  ;;  %5037 = vmatprep.mubr.bf16.mxu1 %v5552_v54 }
 0x15d   : > { %v1515_v22 = vpop.f32.mrf.mxu1  ;;  %v4799_v10 = vpop.f32.mrf.mxu0  ;;  %5086 = vmatmul.mubr.bf16.gmra.mxu0 %v5889_v18 }
 0x15e   : > { %v6245_v44 = vadd.f32 %v4795_v63, %v1524_v37  ;;  %v1516_v60 = vadd.f32 %v1515_v22, %v6169_v15  ;;  %5089 = vmatprep.mubr.bf16.mxu0 %v5893_v47 }
 0x15f   : > { %v4748_v31 = vpop.f32.mrf.mxu1  ;;  %v1854_v5 = vpop.f32.mrf.mxu0 }
 0x160   : > { %v6249_v17 = vadd.f32 %v1838_v32, %v1516_v60  ;;  %v1527_v2 = vadd.f32 %v4748_v31, %v6177_v33 }
 0x161   : > { %v1518_v7 = vpop.f32.mrf.mxu1  ;;  %v4800_v6 = vpop.f32.mrf.mxu0 }
 0x162   : > { %v6252_v30 = vadd.f32 %v4796_v27, %v1527_v2  ;;  %v1519_v54 = vadd.f32 %v1518_v7, %v6179_v11  ;;  %v3001_v27 = vshrl.u32 %v6158_v20, 16  ;;  %v6684_v7 = vld [vmem:[#allocation5_spill] sm:$0xff] }
 0x163   : > { %v4751_v4 = vpop.f32.mrf.mxu1  ;;  %5038 = vmatmul.mubr.bf16.gmra.mxu1 %v6670_v35  ;;  %v1857_v18 = vpop.f32.mrf.mxu0 }
 0x164   : > { %v6256_v52 = vadd.f32 %v1841_v42, %v1519_v54  ;;  %v1540_v47 = vadd.f32 %v4751_v4, %v6073_v53  ;;  %5041 = vmatprep.mubr.bf16.mxu1 %v6671_v14  ;;  %v6685_v54 = vld [vmem:[#allocation2_spill] sm:$0xff] }
 0x165   : > { %v1531_v15 = vpop.f32.mrf.mxu1  ;;  %v4803_v50 = vpop.f32.mrf.mxu0  ;;  %5090 = vmatmul.mubr.bf16.gmra.mxu0 %v5903_v25 }
 0x166   : > { %v6261_v33 = vadd.f32 %v4799_v10, %v1540_v47  ;;  %v1532_v40 = vadd.f32 %v1531_v15, %v6086_v16  ;;  %5093 = vmatprep.mubr.bf16.mxu0 %v5907_v13  ;;  %v3003_v16 = vshll.u32 %v6158_v20, 16  ;;  %v6686_v15 = vld [vmem:[#allocation6_spill] sm:$0xff] }
 0x167   : > { %v4752_v11 = vpop.f32.mrf.mxu1  ;;  %v1870_v59 = vpop.f32.mrf.mxu0 }
 0x168   : > { %v6265_v35 = vadd.f32 %v1854_v5, %v1532_v40  ;;  %v1543_v19 = vadd.f32 %v4752_v11, %v6097_v21  ;;  %v3005_v49 = vrot.slane %v3003_v16, 1  ;;  %v6683_v5 = vld [vmem:[#allocation4_spill] sm:$0xff] }
 0x169   : > { %v1534_v29 = vpop.f32.mrf.mxu1  ;;  %v4804_v53 = vpop.f32.mrf.mxu0  ;;  %v6688_v16 = vld [vmem:[#allocation8_spill] sm:$0xff] }
 0x16a   : > { %v6268_v63 = vadd.f32 %v4800_v6, %v1543_v19  ;;  %v1535_v14 = vadd.f32 %v1534_v29, %v6110_v23  ;;  %v6687_v19 = vld [vmem:[#allocation7_spill] sm:$0xff] }
 0x16b   : > { %v4755_v34 = vpop.f32.mrf.mxu1  ;;  %5042 = vmatmul.mubr.bf16.gmra.mxu1 %v5706_v24  ;;  %v1873_v25 = vpop.f32.mrf.mxu0  ;;  %v3274_v24 = vrot.slane %v6036_v3, 1 }
 0x16c   : > { %v6273_v41 = vadd.f32 %v1857_v18, %v1535_v14  ;;  %v1556_v13 = vadd.f32 %v4755_v34, %v6118_v43  ;;  %5045 = vmatprep.mubr.bf16.mxu1 %v5741_v61 }
 0x16d   : > { %v1547_v32 = vpop.f32.mrf.mxu1  ;;  %v4807_v21 = vpop.f32.mrf.mxu0  ;;  %5094 = vmatmul.mubr.bf16.gmra.mxu0 %v5915_v28  ;;  %v3008_v28 = vshll.u32 %v6036_v3, 16 }
 0x16e   : > { %v6279_v1 = vadd.f32 %v4803_v50, %v1556_v13  ;;  %v1548_v23 = vadd.f32 %v1547_v32, %v6125_v56  ;;  %5097 = vmatprep.mubr.bf16.mxu0 %v6175_v55  ;;  %v6682_v56 = vld [vmem:[#allocation3_spill] sm:$0xff]  ;;  %v3275_v55 = vsel %vm1626_vm4, %v3273_v26, %v3274_v24 }
 0x16f   : > { %v4756_v36 = vpop.f32.mrf.mxu1  ;;  %v1886_v43 = vpop.f32.mrf.mxu0  ;;  %v3010_v3 = vrot.slane %v3008_v28, 1 }
 0x170   : > { %v6285_v61 = vadd.f32 %v1870_v59, %v1548_v23  ;;  %v1559_v42 = vadd.f32 %v4756_v36, %v6130_v0  ;;  %v3006_v0 = vor.u32 %v3005_v49, %v3001_v27  ;;  %v6689_v23 = vld [vmem:[#allocation9_spill] sm:$0xff]  ;;  %v6690_v49 = vld [vmem:[#allocation10_spill] sm:$0xff] }
 0x171   : > { %v1550_v37 = vpop.f32.mrf.mxu1  ;;  %v4808_v22 = vpop.f32.mrf.mxu0 }
 0x172   : > { %v6289_v10 = vadd.f32 %v4804_v53, %v1559_v42  ;;  %v1551_v60 = vadd.f32 %v1550_v37, %v6682_v56  ;;  %v3011_v53 = vsel %vm950_vm2, %v3006_v0, %v3010_v3 }
 0x173   : > { %v4759_v31 = vpop.f32.mrf.mxu1  ;;  %5046 = vmatmul.mubr.bf16.gmra.mxu1 %v6683_v5  ;;  %v1889_v20 = vpop.f32.mrf.mxu0 }
 0x174   : > { %v6294_v2 = vadd.f32 %v1873_v25, %v1551_v60  ;;  %v1572_v6 = vadd.f32 %v4759_v31, %v6684_v7  ;;  %5049 = vmatprep.mubr.bf16.mxu1 %v6685_v54 }
 0x175   : > { %v1563_v4 = vpop.f32.mrf.mxu1  ;;  %v4811_v18 = vpop.f32.mrf.mxu0  ;;  %5098 = vmatmul.mubr.bf16.gmra.mxu0 %v3275_v55 }
 0x176   : > { %v6298_v47 = vadd.f32 %v4807_v21, %v1572_v6  ;;  %v1564_v50 = vadd.f32 %v1563_v4, %v6686_v15 }
 0x177   : > { %v4760_v40 = vpop.f32.mrf.mxu1  ;;  %v1902_v11 = vpop.f32.mrf.mxu0 }
 0x178   : > { %v6301_v59 = vadd.f32 %v1886_v43, %v1564_v50  ;;  %v1575_v29 = vadd.f32 %v4760_v40, %v6687_v19 }
 0x179   : > { %v1566_v14 = vpop.f32.mrf.mxu1  ;;  %v4812_v34 = vpop.f32.mrf.mxu0 }
 0x17a   : > { %v6305_v25 = vadd.f32 %v4808_v22, %v1575_v29  ;;  %v1567_v13 = vadd.f32 %v1566_v14, %v6688_v16  ;;  %v6691_v22 = vld [vmem:[#allocation11_spill] sm:$0xff] }
 0x17b   : > { %v4763_v32 = vpop.f32.mrf.mxu1  ;;  %5050 = vmatmul.mubr.bf16.gmra.mxu1 %v3011_v53  ;;  %v1905_v21 = vpop.f32.mrf.mxu0 }
 0x17c   : > { %v6308_v26 = vadd.f32 %v1889_v20, %v1567_v13  ;;  %v1588_v24 = vadd.f32 %v4763_v32, %v6689_v23  ;;  %v6692_v20 = vld [vmem:[#allocation12_spill] sm:$0xff] }
 0x17d   : > { %v1579_v27 = vpop.f32.mrf.mxu1  ;;  %v4879_v36 = vpop.f32.mrf.mxu0 }
 0x17e   : > { %v6311_v43 = vadd.f32 %v4811_v18, %v1588_v24  ;;  %v1580_v42 = vadd.f32 %v1579_v27, %v6690_v49 }
 0x17f   : > { %v4764_v28 = vpop.f32.mrf.mxu1  ;;  %v2319_v37 = vpop.f32.mrf.mxu0 }
 0x180   : > { %v6314_v56 = vadd.f32 %v1902_v11, %v1580_v42  ;;  %v1591_v60 = vadd.f32 %v4764_v28, %v6691_v22 }
 0x181   : > { %v1582_v55 = vpop.f32.mrf.mxu1  ;;  %v4880_v31 = vpop.f32.mrf.mxu0 }
 0x182   : > { %v6317_v5 = vadd.f32 %v4812_v34, %v1591_v60  ;;  %v1583_v7 = vadd.f32 %v1582_v55, %v6692_v20 }
 0x183   : > { %v4831_v6 = vpop.f32.mrf.mxu1  ;;  %v2322_v54 = vpop.f32.mrf.mxu0 }
 0x184   : > { %v6320_v0 = vadd.f32 %v1905_v21, %v1583_v7  ;;  %v2177_v3 = vadd.f32 %v4831_v6, %v6197_v39 }
 0x185   : > { %v2048_v4 = vpop.f32.mrf.mxu1  ;;  %v4883_v18 = vpop.f32.mrf.mxu0 }
 0x186   : > { %v6323_v15 = vadd.f32 %v4879_v36, %v2177_v3  ;;  %v2175_v50 = vadd.f32 %v2048_v4, %v6201_v46 }
 0x187   : > { %v4832_v40 = vpop.f32.mrf.mxu1  ;;  %v2335_v11 = vpop.f32.mrf.mxu0 }
 0x188   : > { %v6326_v19 = vadd.f32 %v2319_v37, %v2175_v50  ;;  %v2178_v29 = vadd.f32 %v4832_v40, %v6204_v48 }
 0x189   : > { %v2051_v53 = vpop.f32.mrf.mxu1  ;;  %v4884_v14 = vpop.f32.mrf.mxu0 }
 0x18a   : > { %v6329_v34 = vadd.f32 %v4880_v31, %v2178_v29  ;;  %v2176_v16 = vadd.f32 %v2051_v53, %v6208_v12 }
 0x18b   : > { %v4835_v13 = vpop.f32.mrf.mxu1  ;;  %v2338_v39 = vpop.f32.mrf.mxu0 }
 0x18c   : > { %v6332_v32 = vadd.f32 %v2322_v54, %v2176_v16  ;;  %v2181_v21 = vadd.f32 %v4835_v13, %v6213_v57 }
 0x18d   : > { %v2064_v23 = vpop.f32.mrf.mxu1  ;;  %v4887_v46 = vpop.f32.mrf.mxu0 }
 0x18e   : > { %v6335_v24 = vadd.f32 %v4883_v18, %v2181_v21  ;;  %v2179_v27 = vadd.f32 %v2064_v23, %v6217_v45 }
 0x18f   : > { %v4836_v36 = vpop.f32.mrf.mxu1  ;;  %v2351_v48 = vpop.f32.mrf.mxu0 }
 0x190   : > { %v6338_v49 = vadd.f32 %v2335_v11, %v2179_v27  ;;  %v2182_v42 = vadd.f32 %v4836_v36, %v6220_v62 }
 0x191   : > { %v2067_v28 = vpop.f32.mrf.mxu1  ;;  %v4888_v12 = vpop.f32.mrf.mxu0 }
 0x192   : > { %v6341_v37 = vadd.f32 %v4884_v14, %v2182_v42  ;;  %v2180_v22 = vadd.f32 %v2067_v28, %v6224_v51 }
 0x193   : > { %v4839_v60 = vpop.f32.mrf.mxu1  ;;  %v2354_v57 = vpop.f32.mrf.mxu0 }
 0x194   : > { %v6344_v55 = vadd.f32 %v2338_v39, %v2180_v22  ;;  %v2185_v31 = vadd.f32 %v4839_v60, %v6229_v9 }
 0x195   : > { %v2080_v20 = vpop.f32.mrf.mxu1  ;;  %v4891_v45 = vpop.f32.mrf.mxu0 }
 0x196   : > { %v6347_v7 = vadd.f32 %v4887_v46, %v2185_v31  ;;  %v2183_v6 = vadd.f32 %v2080_v20, %v6233_v38 }
 0x197   : > { %v4840_v54 = vpop.f32.mrf.mxu1  ;;  %v2367_v62 = vpop.f32.mrf.mxu0 }
 0x198   : > { %v6350_v3 = vadd.f32 %v2351_v48, %v2183_v6  ;;  %v2186_v4 = vadd.f32 %v4840_v54, %v6236_v58 }
 0x199   : > { %v2083_v18 = vpop.f32.mrf.mxu1  ;;  %v4892_v51 = vpop.f32.mrf.mxu0 }
 0x19a   : > { %v6353_v50 = vadd.f32 %v4888_v12, %v2186_v4  ;;  %v2184_v40 = vadd.f32 %v2083_v18, %v6240_v8 }
 0x19b   : > { %v4843_v11 = vpop.f32.mrf.mxu1  ;;  %v2370_v9 = vpop.f32.mrf.mxu0 }
 0x19c   : > { %v6356_v29 = vadd.f32 %v2354_v57, %v2184_v40  ;;  %v2189_v53 = vadd.f32 %v4843_v11, %v6245_v44 }
 0x19d   : > { %v2096_v14 = vpop.f32.mrf.mxu1  ;;  %v4895_v38 = vpop.f32.mrf.mxu0 }
 0x19e   : > { %v6359_v16 = vadd.f32 %v4891_v45, %v2189_v53  ;;  %v2187_v13 = vadd.f32 %v2096_v14, %v6249_v17 }
 0x19f   : > { %v4844_v39 = vpop.f32.mrf.mxu1  ;;  %v2383_v58 = vpop.f32.mrf.mxu0 }
 0x1a0   : > { %v6362_v21 = vadd.f32 %v2367_v62, %v2187_v13  ;;  %v2190_v23 = vadd.f32 %v4844_v39, %v6252_v30 }
 0x1a1   : > { %v2099_v46 = vpop.f32.mrf.mxu1  ;;  %v4896_v8 = vpop.f32.mrf.mxu0 }
 0x1a2   : > { %v6365_v27 = vadd.f32 %v4892_v51, %v2190_v23  ;;  %v2188_v36 = vadd.f32 %v2099_v46, %v6256_v52 }
 0x1a3   : > { %v4847_v48 = vpop.f32.mrf.mxu1  ;;  %v2386_v44 = vpop.f32.mrf.mxu0 }
 0x1a4   : > { %v6368_v42 = vadd.f32 %v2370_v9, %v2188_v36  ;;  %v2193_v28 = vadd.f32 %v4847_v48, %v6261_v33 }
 0x1a5   : > { %v2112_v12 = vpop.f32.mrf.mxu1  ;;  %v4899_v17 = vpop.f32.mrf.mxu0 }
 0x1a6   : > { %v6371_v22 = vadd.f32 %v4895_v38, %v2193_v28  ;;  %v2191_v60 = vadd.f32 %v2112_v12, %v6265_v35 }
 0x1a7   : > { %v4848_v57 = vpop.f32.mrf.mxu1  ;;  %v2399_v30 = vpop.f32.mrf.mxu0 }
 0x1a8   : > { %v6374_v31 = vadd.f32 %v2383_v58, %v2191_v60  ;;  %v2194_v20 = vadd.f32 %v4848_v57, %v6268_v63 }
 0x1a9   : > { %v2115_v45 = vpop.f32.mrf.mxu1  ;;  %v4900_v52 = vpop.f32.mrf.mxu0 }
 0x1aa   : > { %v6377_v6 = vadd.f32 %v4896_v8, %v2194_v20  ;;  %v2192_v54 = vadd.f32 %v2115_v45, %v6273_v41 }
 0x1ab   : > { %v4851_v62 = vpop.f32.mrf.mxu1  ;;  %v2402_v33 = vpop.f32.mrf.mxu0 }
 0x1ac   : > { %v6380_v4 = vadd.f32 %v2386_v44, %v2192_v54  ;;  %v2197_v18 = vadd.f32 %v4851_v62, %v6279_v1 }
 0x1ad   : > { %v2128_v51 = vpop.f32.mrf.mxu1  ;;  %v4903_v35 = vpop.f32.mrf.mxu0 }
 0x1ae   : > { %v6383_v40 = vadd.f32 %v4899_v17, %v2197_v18  ;;  %v2195_v11 = vadd.f32 %v2128_v51, %v6285_v61 }
 0x1af   : > { %v4852_v9 = vpop.f32.mrf.mxu1  ;;  %v2415_v63 = vpop.f32.mrf.mxu0 }
 0x1b0   : > { %v6386_v53 = vadd.f32 %v2399_v30, %v2195_v11  ;;  %v2198_v14 = vadd.f32 %v4852_v9, %v6289_v10 }
 0x1b1   : > { %v2131_v38 = vpop.f32.mrf.mxu1  ;;  %v4904_v41 = vpop.f32.mrf.mxu0 }
 0x1b2   : > { %6693 = vst [vmem:[#allocation3_spill] sm:$0xff] %v6386_v53  ;;  %v6389_v13 = vadd.f32 %v4900_v52, %v2198_v14  ;;  %v2196_v39 = vadd.f32 %v2131_v38, %v6294_v2 }
 0x1b3   : > { %v4855_v58 = vpop.f32.mrf.mxu1  ;;  %v2418_v1 = vpop.f32.mrf.mxu0 }
 0x1b4   : > { %6694 = vst [vmem:[#allocation4_spill] sm:$0xff] %v6389_v13  ;;  %v6392_v23 = vadd.f32 %v2402_v33, %v2196_v39  ;;  %v2201_v46 = vadd.f32 %v4855_v58, %v6298_v47 }
 0x1b5   : > { %v2144_v8 = vpop.f32.mrf.mxu1  ;;  %v4907_v61 = vpop.f32.mrf.mxu0 }
 0x1b6   : > { %6695 = vst [vmem:[#allocation5_spill] sm:$0xff] %v6392_v23  ;;  %v6395_v36 = vadd.f32 %v4903_v35, %v2201_v46  ;;  %v2199_v48 = vadd.f32 %v2144_v8, %v6301_v59 }
 0x1b7   : > { %v4856_v44 = vpop.f32.mrf.mxu1  ;;  %v2431_v10 = vpop.f32.mrf.mxu0 }
 0x1b8   : > { %v6398_v28 = vadd.f32 %v2415_v63, %v2199_v48  ;;  %v2202_v12 = vadd.f32 %v4856_v44, %v6305_v25 }
 0x1b9   : > { %v2147_v17 = vpop.f32.mrf.mxu1  ;;  %v4908_v2 = vpop.f32.mrf.mxu0 }
 0x1ba   : > { %6696 = vst [vmem:[#allocation2_spill] sm:$0xff] %v6398_v28  ;;  %v6401_v60 = vadd.f32 %v4904_v41, %v2202_v12  ;;  %v2200_v57 = vadd.f32 %v2147_v17, %v6308_v26 }
 0x1bb   : > { %v4859_v30 = vpop.f32.mrf.mxu1  ;;  %v2434_v47 = vpop.f32.mrf.mxu0 }
 0x1bc   : > { %6697 = vst [vmem:[#allocation6_spill] sm:$0xff] %v6401_v60  ;;  %v6404_v20 = vadd.f32 %v2418_v1, %v2200_v57  ;;  %v2205_v45 = vadd.f32 %v4859_v30, %v6311_v43 }
 0x1bd   : > { %v2160_v52 = vpop.f32.mrf.mxu1  ;;  %v4975_v59 = vpop.f32.mrf.mxu0 }
 0x1be   : > { %6698 = vst [vmem:[#allocation7_spill] sm:$0xff] %v6404_v20  ;;  %v6407_v54 = vadd.f32 %v4907_v61, %v2205_v45  ;;  %v2203_v62 = vadd.f32 %v2160_v52, %v6314_v56 }
 0x1bf   : > { %v4860_v33 = vpop.f32.mrf.mxu1  ;;  %v2841_v25 = vpop.f32.mrf.mxu0 }
 0x1c0   : > { %v6410_v18 = vadd.f32 %v2431_v10, %v2203_v62  ;;  %v2206_v51 = vadd.f32 %v4860_v33, %v6317_v5 }
 0x1c1   : > { %v2163_v35 = vpop.f32.mrf.mxu1  ;;  %v6413_v26 = vpop.f32.mrf.mxu0 }
 0x1c2   : > { %6699 = vst [vmem:[#allocation8_spill] sm:$0xff] %v6410_v18  ;;  %v6415_v11 = vadd.f32 %v4908_v2, %v2206_v51  ;;  %v2204_v9 = vadd.f32 %v2163_v35, %v6320_v0 }
 0x1c3   : > { %v4927_v43 = vpop.f32.mrf.mxu1  ;;  %v6418_v63 = vpop.f32.mrf.mxu0 }
 0x1c4   : > { %6700 = vst [vmem:[#allocation9_spill] sm:$0xff] %v6415_v11  ;;  %v6420_v14 = vadd.f32 %v2434_v47, %v2204_v9  ;;  %v2712_v56 = vadd.f32 %v4927_v43, %v6323_v15 }
 0x1c5   : > { %v2583_v38 = vpop.f32.mrf.mxu1  ;;  %v4979_v41 = vpop.f32.mrf.mxu0 }
 0x1c6   : > { %6701 = vst [vmem:[#allocation10_spill] sm:$0xff] %v6420_v14  ;;  %v6423_v39 = vadd.f32 %v4975_v59, %v2712_v56  ;;  %v2710_v5 = vadd.f32 %v2583_v38, %v6326_v19 }
 0x1c7   : > { %v6426_v58 = vpop.f32.mrf.mxu1  ;;  %v6428_v1 = vpop.f32.mrf.mxu0 }
 0x1c8   : > { %v6430_v46 = vadd.f32 %v2841_v25, %v2710_v5 }
 0x1c9   : > { %v6432_v0 = vpop.f32.mrf.mxu1  ;;  %v6434_v8 = vpop.f32.mrf.mxu0 }
 0x1cb   : > { %v4931_v61 = vpop.f32.mrf.mxu1  ;;  %v6436_v48 = vpop.f32.mrf.mxu0 }
 0x1cc   : > { %v2716_v15 = vadd.f32 %v4931_v61, %v6335_v24 }
 0x1cd   : > { %v6439_v44 = vpop.f32.mrf.mxu1  ;;  %v4983_v10 = vpop.f32.mrf.mxu0 }
 0x1ce   : > { %v6441_v12 = vadd.f32 %v4979_v41, %v2716_v15 }
 0x1cf   : > { %v6443_v19 = vpop.f32.mrf.mxu1  ;;  %v6445_v17 = vpop.f32.mrf.mxu0 }
 0x1d1   : > { %v6447_v2 = vpop.f32.mrf.mxu1  ;;  %v6449_v57 = vpop.f32.mrf.mxu0 }
 0x1d3   : > { %v4935_v30 = vpop.f32.mrf.mxu1  ;;  %v6451_v47 = vpop.f32.mrf.mxu0 }
 0x1d4   : > { %v2720_v45 = vadd.f32 %v4935_v30, %v6347_v7 }
 0x1d5   : > { %v6454_v52 = vpop.f32.mrf.mxu1  ;;  %v4987_v24 = vpop.f32.mrf.mxu0 }
 0x1d6   : > { %v6456_v59 = vadd.f32 %v4983_v10, %v2720_v45 }
 0x1d7   : > { %v6458_v62 = vpop.f32.mrf.mxu1  ;;  %v6460_v33 = vpop.f32.mrf.mxu0 }
 0x1d9   : > { %v6462_v25 = vpop.f32.mrf.mxu1  ;;  %v6464_v51 = vpop.f32.mrf.mxu0 }
 0x1db   : > { %v4939_v35 = vpop.f32.mrf.mxu1  ;;  %v6466_v9 = vpop.f32.mrf.mxu0 }
 0x1dc   : > { %v2724_v43 = vadd.f32 %v4939_v35, %v6359_v16 }
 0x1dd   : > { %v6469_v56 = vpop.f32.mrf.mxu1  ;;  %v4991_v7 = vpop.f32.mrf.mxu0 }
 0x1de   : > { %v6471_v38 = vadd.f32 %v4987_v24, %v2724_v43 }
 0x1df   : > { %v6473_v41 = vpop.f32.mrf.mxu1  ;;  %v6475_v5 = vpop.f32.mrf.mxu0 }
 0x1e1   : > { %v6477_v61 = vpop.f32.mrf.mxu1  ;;  %v6479_v15 = vpop.f32.mrf.mxu0 }
 0x1e3   : > { %v4943_v10 = vpop.f32.mrf.mxu1  ;;  %v6481_v30 = vpop.f32.mrf.mxu0 }
 0x1e4   : > { %6702 = vst [vmem:[#allocation11_spill] sm:$0xff] %v6481_v30  ;;  %v2728_v45 = vadd.f32 %v4943_v10, %v6371_v22 }
 0x1e5   : > { %v6484_v14 = vpop.f32.mrf.mxu1  ;;  %v4995_v16 = vpop.f32.mrf.mxu0 }
 0x1e6   : > { %v6486_v35 = vadd.f32 %v4991_v7, %v2728_v45 }
 0x1e7   : > { %v6488_v24 = vpop.f32.mrf.mxu1  ;;  %v6490_v43 = vpop.f32.mrf.mxu0 }
 0x1e8   : > { %6703 = vst [vmem:[#allocation12_spill] sm:$0xff] %v6486_v35  ;;  %6704 = vst [vmem:[#allocation13_spill] sm:$0xff] %v6490_v43 }
 0x1e9   : > { %v6492_v11 = vpop.f32.mrf.mxu1  ;;  %v6494_v18 = vpop.f32.mrf.mxu0 }
 0x1ea   : > { %6705 = vst [vmem:[#allocation14_spill] sm:$0xff] %v6494_v18 }
 0x1eb   : > { %v4947_v20 = vpop.f32.mrf.mxu1  ;;  %v6496_v60 = vpop.f32.mrf.mxu0 }
 0x1ec   : > { %6706 = vst [vmem:[#allocation15_spill] sm:$0xff] %v6496_v60  ;;  %v2732_v28 = vadd.f32 %v4947_v20, %v6383_v40 }
 0x1ed   : > { %v6499_v23 = vpop.f32.mrf.mxu1  ;;  %v4999_v22 = vpop.f32.mrf.mxu0 }
 0x1ee   : > { %6707 = vst [vmem:[#allocation16_spill] sm:$0xff] %v6499_v23  ;;  %v6501_v10 = vadd.f32 %v4995_v16, %v2732_v28 }
 0x1ef   : > { %v6503_v7 = vpop.f32.mrf.mxu1  ;;  %v6505_v45 = vpop.f32.mrf.mxu0 }
 0x1f0   : > { %6708 = vst [vmem:[#allocation17_spill] sm:$0xff] %v6501_v10  ;;  %6709 = vst [vmem:[#allocation18_spill] sm:$0xff] %v6503_v7 }
 0x1f1   : > { %6710 = vst [vmem:[#allocation19_spill] sm:$0xff] %v6505_v45  ;;  %v6507_v13 = vpop.f32.mrf.mxu1  ;;  %v6509_v43 = vpop.f32.mrf.mxu0 }
 0x1f2   : > { %6711 = vst [vmem:[#allocation20_spill] sm:$0xff] %v6507_v13  ;;  %6712 = vst [vmem:[#allocation21_spill] sm:$0xff] %v6509_v43 }
 0x1f3   : > { %v4951_v53 = vpop.f32.mrf.mxu1  ;;  %v6511_v18 = vpop.f32.mrf.mxu0 }
 0x1f4   : > { %6713 = vst [vmem:[#allocation22_spill] sm:$0xff] %v6511_v18  ;;  %v2736_v60 = vadd.f32 %v4951_v53, %v6395_v36 }
 0x1f5   : > { %v6514_v30 = vpop.f32.mrf.mxu1  ;;  %v5003_v40 = vpop.f32.mrf.mxu0 }
 0x1f6   : > { %6714 = vst [vmem:[#allocation23_spill] sm:$0xff] %v6514_v30  ;;  %v6516_v20 = vadd.f32 %v4999_v22, %v2736_v60 }
 0x1f7   : > { %v6518_v28 = vpop.f32.mrf.mxu1  ;;  %v6520_v16 = vpop.f32.mrf.mxu0 }
 0x1f8   : > { %6715 = vst [vmem:[#allocation24_spill] sm:$0xff] %v6516_v20  ;;  %6716 = vst [vmem:[#allocation25_spill] sm:$0xff] %v6518_v28 }
 0x1f9   : > { %6717 = vst [vmem:[#allocation26_spill] sm:$0xff] %v6520_v16  ;;  %v6522_v10 = vpop.f32.mrf.mxu1  ;;  %v6524_v45 = vpop.f32.mrf.mxu0 }
 0x1fa   : > { %6718 = vst [vmem:[#allocation27_spill] sm:$0xff] %v6522_v10  ;;  %6719 = vst [vmem:[#allocation28_spill] sm:$0xff] %v6524_v45  ;;  %v2713_v10 = vadd.f32 %v6426_v58, %v6329_v34  ;;  %v2714_v34 = vadd.f32 %v6439_v44, %v6338_v49 }
 0x1fb   : > { %v4955_v13 = vpop.f32.mrf.mxu1  ;;  %v6526_v43 = vpop.f32.mrf.mxu0 }
 0x1fc   : > { %6720 = vst [vmem:[#allocation29_spill] sm:$0xff] %v6526_v43  ;;  %v2740_v18 = vadd.f32 %v4955_v13, %v6407_v54  ;;  %v2711_v43 = vadd.f32 %v6432_v0, %v6332_v32  ;;  %v2717_v32 = vadd.f32 %v6443_v19, %v6341_v37  ;;  %v2972_v37 = vadd.f32 %v6428_v1, %v2714_v34 }
 0x1fd   : > { %v6529_v7 = vpop.f32.mrf.mxu1  ;;  %v5071_v53 = vpop.f32.mrf.mxu0 }
 0x1fe   : > { %6721 = vst [vmem:[#allocation30_spill] sm:$0xff] %v6529_v7  ;;  %v6531_v36 = vadd.f32 %v5003_v40, %v2740_v18  ;;  %v2971_v18 = vadd.f32 %v6413_v26, %v2713_v10  ;;  %v2969_v7 = vadd.f32 %v6418_v63, %v2711_v43  ;;  %v2715_v63 = vadd.f32 %v6447_v2, %v6344_v55 }
 0x1ff   : > { %v6533_v60 = vpop.f32.mrf.mxu1  ;;  %v3376_v22 = vpop.f32.mrf.mxu0  ;;  %v2975_v19 = vadd.f32 %v6434_v8, %v2717_v32  ;;  %v2718_v2 = vadd.f32 %v6454_v52, %v6350_v3 }
 0x200   : > { %6722 = vst [vmem:[#allocation31_spill] sm:$0xff] %v6531_v36  ;;  %6723 = vst [vmem:[#allocation32_spill] sm:$0xff] %v6533_v60  ;;  %v2973_v55 = vadd.f32 %v6436_v48, %v2715_v63 }
 0x201   : > { %v6535_v20 = vpop.f32.mrf.mxu1  ;;  %v5072_v16 = vpop.f32.mrf.mxu0  ;;  %v2976_v63 = vadd.f32 %v6445_v17, %v2718_v2 }
 0x202   : > { %6724 = vst [vmem:[#allocation33_spill] sm:$0xff] %v6535_v20 }
 0x203   : > { %v5023_v45 = vpop.f32.mrf.mxu1  ;;  %v3379_v28 = vpop.f32.mrf.mxu0 }
 0x204   : > { %v3241_v40 = vadd.f32 %v5023_v45, %v6423_v39 }
 0x205   : > { %v3112_v13 = vpop.f32.mrf.mxu1  ;;  %v5075_v54 = vpop.f32.mrf.mxu0 }
 0x206   : > { %v3239_v36 = vadd.f32 %v3112_v13, %v6430_v46  ;;  %v3505_v23 = vadd.f32 %v5071_v53, %v3241_v40 }
 0x207   : > { %v5024_v60 = vpop.f32.mrf.mxu1  ;;  %v3392_v20 = vpop.f32.mrf.mxu0 }
 0x208   : > { %v3242_v30 = vadd.f32 %v5024_v60, %v2971_v18  ;;  %v3503_v35 = vadd.f32 %v3376_v22, %v3239_v36  ;;  %v3734_v22 = vmul.f32 %v3505_v23, %v3505_v23  ;;  %v2721_v18 = vadd.f32 %v6458_v62, %v6353_v50 }
 0x209   : > { %v3115_v58 = vpop.f32.mrf.mxu1  ;;  %v5076_v0 = vpop.f32.mrf.mxu0 }
 0x20a   : > { %v3506_v26 = vadd.f32 %v5072_v16, %v3242_v30  ;;  %v3240_v10 = vadd.f32 %v3115_v58, %v2969_v7  ;;  %v3732_v45 = vmul.f32 %v3503_v35, %v3503_v35 }
 0x20b   : > { %v5027_v39 = vpop.f32.mrf.mxu1  ;;  %v3395_v49 = vpop.f32.mrf.mxu0 }
 0x20c   : > { %v4350_v46 = vpack.c.bf16 %v3506_v26, %v3505_v23  ;;  %v3504_v44 = vadd.f32 %v3379_v28, %v3240_v10  ;;  %v3245_v30 = vadd.f32 %v5027_v39, %v6441_v12  ;;  %v3735_v40 = vmul.f32 %v3506_v26, %v3506_v26 }
 0x20d   : > { %v3128_v43 = vpop.f32.mrf.mxu1  ;;  %v5079_v7 = vpop.f32.mrf.mxu0 }
 0x20e   : > { %4438 = vst [vmem:[%s6553_s12 + $0x8] sm:$0xff] %v4350_v46   ;;  %v4345_v16 = vpack.c.bf16 %v3504_v44, %v3503_v35  ;;  %v3695_v53 = vadd.f32 %v3504_v44, %v3503_v35  ;;  %v3733_v36 = vmul.f32 %v3504_v44, %v3504_v44  ;;  %v3243_v28 = vadd.f32 %v3128_v43, %v2972_v37 }
 0x20f   : > { %v5028_v60 = vpop.f32.mrf.mxu1  ;;  %v3408_v1 = vpop.f32.mrf.mxu0  ;;  %v3509_v34 = vadd.f32 %v5075_v54, %v3245_v30 }
 0x210   : > { %4346 = vst [vmem:[%s6553_s12] sm:$0xff] %v4345_v16   ;;  %v3696_v8 = vadd.f32 %v3695_v53, %v3505_v23  ;;  %v3764_v13 = vadd.f32 %v3733_v36, %v3732_v45  ;;  %v3246_v12 = vadd.f32 %v5028_v60, %v2975_v19  ;;  %v3507_v35 = vadd.f32 %v3392_v20, %v3243_v28 }
 0x211   : > { %v3131_v32 = vpop.f32.mrf.mxu1  ;;  %v5080_v58 = vpop.f32.mrf.mxu0  ;;  %v2719_v23 = vadd.f32 %v6462_v25, %v6356_v29  ;;  %v2725_v36 = vadd.f32 %v6473_v41, %v6365_v27  ;;  %v2723_v27 = vadd.f32 %v6477_v61, %v6368_v42 }
 0x212   : > { %v3765_v48 = vadd.f32 %v3764_v13, %v3734_v22  ;;  %v3697_v10 = vadd.f32 %v3696_v8, %v3506_v26  ;;  %v3510_v3 = vadd.f32 %v5076_v0, %v3246_v12  ;;  %v3244_v52 = vadd.f32 %v3131_v32, %v2973_v55 }
 0x213   : > { %v5031_v39 = vpop.f32.mrf.mxu1  ;;  %v3411_v46 = vpop.f32.mrf.mxu0  ;;  %v3736_v37 = vmul.f32 %v3507_v35, %v3507_v35  ;;  %v2979_v26 = vadd.f32 %v6449_v57, %v2721_v18  ;;  %v2977_v53 = vadd.f32 %v6451_v47, %v2719_v23  ;;  %v3738_v57 = vmul.f32 %v3509_v34, %v3509_v34 }
 0x214   : > { %v3698_v44 = vadd.f32 %v3697_v10, %v3507_v35  ;;  %v3766_v50 = vadd.f32 %v3765_v48, %v3735_v40  ;;  %v4360_v62 = vpack.c.bf16 %v3510_v3, %v3509_v34  ;;  %v3508_v54 = vadd.f32 %v3395_v49, %v3244_v52 }
 0x215   : > { %v3144_v20 = vpop.f32.mrf.mxu1  ;;  %v5083_v19 = vpop.f32.mrf.mxu0  ;;  %v3249_v0 = vadd.f32 %v5031_v39, %v6456_v59  ;;  %v2722_v49 = vadd.f32 %v6469_v56, %v6362_v21  ;;  %v3739_v18 = vmul.f32 %v3510_v3, %v3510_v3  ;;  %v2981_v61 = vadd.f32 %v6466_v9, %v2723_v27 }
 0x216   : > { %v3767_v30 = vadd.f32 %v3766_v50, %v3736_v37  ;;  %4440 = vst [vmem:[%s6553_s12 + $0x18] sm:$0xff] %v4360_v62   ;;  %v3247_v17 = vadd.f32 %v3144_v20, %v2976_v63  ;;  %v4355_v43 = vpack.c.bf16 %v3508_v54, %v3507_v35  ;;  %v3699_v45 = vadd.f32 %v3698_v44, %v3508_v54 }
 0x217   : > { %v3737_v29 = vmul.f32 %v3508_v54, %v3508_v54  ;;  %v5032_v25 = vpop.f32.mrf.mxu1  ;;  %v3424_v16 = vpop.f32.mrf.mxu0  ;;  %v3513_v8 = vadd.f32 %v5079_v7, %v3249_v0  ;;  %v2980_v56 = vadd.f32 %v6460_v33, %v2722_v49 }
 0x218   : > { %v3250_v55 = vadd.f32 %v5032_v25, %v2979_v26  ;;  %4439 = vst [vmem:[%s6553_s12 + $0x10] sm:$0xff] %v4355_v43   ;;  %v3700_v2 = vadd.f32 %v3699_v45, %v3509_v34  ;;  %v3511_v59 = vadd.f32 %v3408_v1, %v3247_v17  ;;  %v2983_v1 = vadd.f32 %v6464_v51, %v2725_v36 }
 0x219   : > { %v3768_v28 = vadd.f32 %v3767_v30, %v3737_v29  ;;  %v3147_v60 = vpop.f32.mrf.mxu1  ;;  %v5084_v22 = vpop.f32.mrf.mxu0  ;;  %v2726_v51 = vadd.f32 %v6484_v14, %v6374_v31  ;;  %v3742_v50 = vmul.f32 %v3513_v8, %v3513_v8 }
 0x21a   : > { %v3514_v13 = vadd.f32 %v5080_v58, %v3250_v55  ;;  %v3248_v12 = vadd.f32 %v3147_v60, %v2977_v53  ;;  %v3701_v40 = vadd.f32 %v3700_v2, %v3510_v3  ;;  %v3740_v48 = vmul.f32 %v3511_v59, %v3511_v59 }
 0x21b   : > { %v3769_v47 = vadd.f32 %v3768_v28, %v3738_v57  ;;  %v5035_v35 = vpop.f32.mrf.mxu1  ;;  %v3427_v21 = vpop.f32.mrf.mxu0  ;;  %v2984_v14 = vadd.f32 %v6475_v5, %v2726_v51  ;;  %v6725_v28 = vld [vmem:[#allocation12_spill] sm:$0xff] }
 0x21c   : > { %v4370_v41 = vpack.c.bf16 %v3514_v13, %v3513_v8  ;;  %v3512_v34 = vadd.f32 %v3411_v46, %v3248_v12  ;;  %v3702_v32 = vadd.f32 %v3701_v40, %v3511_v59  ;;  %v3253_v63 = vadd.f32 %v5035_v35, %v6471_v38  ;;  %v6727_v12 = vld [vmem:[#allocation3_spill] sm:$0xff]  ;;  %v6730_v40 = vld [vmem:[#allocation18_spill] sm:$0xff]  ;;  %v6733_v51 = vld [vmem:[#allocation20_spill] sm:$0xff] }
 0x21d   : > { %v3770_v7 = vadd.f32 %v3769_v47, %v3739_v18  ;;  %v3160_v58 = vpop.f32.mrf.mxu1  ;;  %v5087_v10 = vpop.f32.mrf.mxu0  ;;  %v2729_v46 = vadd.f32 %v6488_v24, %v6377_v6  ;;  %v3743_v43 = vmul.f32 %v3514_v13, %v3514_v13  ;;  %v2727_v6 = vadd.f32 %v6492_v11, %v6380_v4  ;;  %v6726_v11 = vld [vmem:[#allocation11_spill] sm:$0xff]  ;;  %v6729_v47 = vld [vmem:[#allocation4_spill] sm:$0xff] }
 0x21e   : > { %4442 = vst [vmem:[%s6553_s12 + $0x28] sm:$0xff] %v4370_v41   ;;  %v4365_v52 = vpack.c.bf16 %v3512_v34, %v3511_v59  ;;  %v3741_v3 = vmul.f32 %v3512_v34, %v3512_v34  ;;  %v3251_v23 = vadd.f32 %v3160_v58, %v2980_v56  ;;  %v3703_v39 = vadd.f32 %v3702_v32, %v3512_v34 }
 0x21f   : > { %v3771_v33 = vadd.f32 %v3770_v7, %v3740_v48  ;;  %v5036_v44 = vpop.f32.mrf.mxu1  ;;  %v3440_v42 = vpop.f32.mrf.mxu0  ;;  %v3517_v30 = vadd.f32 %v5083_v19, %v3253_v63  ;;  %v2733_v35 = vadd.f32 %v6730_v40, %v6729_v47 }
 0x220   : > { %4441 = vst [vmem:[%s6553_s12 + $0x20] sm:$0xff] %v4365_v52   ;;  %v3254_v37 = vadd.f32 %v5036_v44, %v2983_v1  ;;  %v3704_v62 = vadd.f32 %v3703_v39, %v3513_v8  ;;  %v3515_v20 = vadd.f32 %v3424_v16, %v3251_v23  ;;  %v2987_v16 = vadd.f32 %v6479_v15, %v2729_v46  ;;  %v6728_v15 = vld [vmem:[#allocation16_spill] sm:$0xff]  ;;  %v6731_v39 = vld [vmem:[#allocation13_spill] sm:$0xff] }
 0x221   : > { %v3772_v54 = vadd.f32 %v3771_v33, %v3741_v3  ;;  %v3163_v38 = vpop.f32.mrf.mxu1  ;;  %v5088_v26 = vpop.f32.mrf.mxu0  ;;  %v2730_v18 = vadd.f32 %v6728_v15, %v6727_v12  ;;  %v3746_v56 = vmul.f32 %v3517_v30, %v3517_v30 }
 0x222   : > { %v3518_v0 = vadd.f32 %v5084_v22, %v3254_v37  ;;  %v3252_v17 = vadd.f32 %v3163_v38, %v2981_v61  ;;  %v3705_v45 = vadd.f32 %v3704_v62, %v3514_v13  ;;  %v3744_v49 = vmul.f32 %v3515_v20, %v3515_v20  ;;  %v6732_v61 = vld [vmem:[#allocation5_spill] sm:$0xff]  ;;  %v6734_v62 = vld [vmem:[#allocation14_spill] sm:$0xff] }
 0x223   : > { %v3773_v9 = vadd.f32 %v3772_v54, %v3742_v50  ;;  %v5039_v29 = vpop.f32.mrf.mxu1  ;;  %v3443_v31 = vpop.f32.mrf.mxu0  ;;  %v2985_v13 = vadd.f32 %v6726_v11, %v2727_v6  ;;  %v2988_v44 = vadd.f32 %v6731_v39, %v2730_v18  ;;  %v2731_v46 = vadd.f32 %v6733_v51, %v6732_v61 }
 0x224   : > { %v4380_v24 = vpack.c.bf16 %v3518_v0, %v3517_v30  ;;  %v3516_v25 = vadd.f32 %v3427_v21, %v3252_v17  ;;  %v3706_v53 = vadd.f32 %v3705_v45, %v3515_v20  ;;  %v3257_v59 = vadd.f32 %v5039_v29, %v6725_v28  ;;  %v6735_v17 = vld [vmem:[#allocation17_spill] sm:$0xff] }
 0x225   : > { %v3774_v19 = vadd.f32 %v3773_v9, %v3743_v43  ;;  %v3176_v36 = vpop.f32.mrf.mxu1  ;;  %v5091_v55 = vpop.f32.mrf.mxu0  ;;  %v3747_v52 = vmul.f32 %v3518_v0, %v3518_v0 }
 0x226   : > { %4444 = vst [vmem:[%s6553_s12 + $0x38] sm:$0xff] %v4380_v24   ;;  %v4375_v57 = vpack.c.bf16 %v3516_v25, %v3515_v20  ;;  %v3745_v2 = vmul.f32 %v3516_v25, %v3516_v25  ;;  %v3255_v60 = vadd.f32 %v3176_v36, %v2984_v14  ;;  %v3707_v22 = vadd.f32 %v3706_v53, %v3516_v25  ;;  %v6736_v24 = vld [vmem:[#allocation15_spill] sm:$0xff]  ;;  %v6737_v25 = vld [vmem:[#allocation2_spill] sm:$0xff] }
 0x227   : > { %v3775_v5 = vadd.f32 %v3774_v19, %v3744_v49  ;;  %v5040_v8 = vpop.f32.mrf.mxu1  ;;  %v3456_v4 = vpop.f32.mrf.mxu0  ;;  %v3521_v48 = vadd.f32 %v5087_v10, %v3257_v59  ;;  %v6739_v49 = vld [vmem:[#allocation6_spill] sm:$0xff]  ;;  %v6740_v19 = vld [vmem:[#allocation25_spill] sm:$0xff] }
 0x228   : > { %4443 = vst [vmem:[%s6553_s12 + $0x30] sm:$0xff] %v4375_v57   ;;  %v3258_v21 = vadd.f32 %v5040_v8, %v2987_v16  ;;  %v3708_v27 = vadd.f32 %v3707_v22, %v3517_v30  ;;  %v3519_v34 = vadd.f32 %v3440_v42, %v3255_v60  ;;  %v2991_v42 = vadd.f32 %v6734_v62, %v2733_v35  ;;  %v6738_v16 = vld [vmem:[#allocation23_spill] sm:$0xff]  ;;  %v6748_v62 = vld [vmem:[#allocation30_spill] sm:$0xff] }
 0x229   : > { %v3776_v41 = vadd.f32 %v3775_v5, %v3745_v2  ;;  %v3179_v1 = vpop.f32.mrf.mxu1  ;;  %v5092_v32 = vpop.f32.mrf.mxu0  ;;  %v2734_v53 = vadd.f32 %v6738_v16, %v6737_v25  ;;  %v2737_v36 = vadd.f32 %v6740_v19, %v6739_v49  ;;  %v3750_v2 = vmul.f32 %v3521_v48, %v3521_v48  ;;  %v6741_v35 = vld [vmem:[#allocation19_spill] sm:$0xff]  ;;  %v6751_v49 = vld [vmem:[#allocation26_spill] sm:$0xff] }
 0x22a   : > { %v3522_v7 = vadd.f32 %v5088_v26, %v3258_v21  ;;  %v3256_v58 = vadd.f32 %v3179_v1, %v2985_v13  ;;  %v3709_v63 = vadd.f32 %v3708_v27, %v3518_v0  ;;  %v3748_v20 = vmul.f32 %v3519_v34, %v3519_v34  ;;  %v6743_v27 = vld [vmem:[#allocation27_spill] sm:$0xff] }
 0x22b   : > { %v3777_v3 = vadd.f32 %v3776_v41, %v3746_v56  ;;  %v5043_v23 = vpop.f32.mrf.mxu1  ;;  %v3459_v33 = vpop.f32.mrf.mxu0  ;;  %v2992_v21 = vadd.f32 %v6741_v35, %v2734_v53  ;;  %v6742_v56 = vld [vmem:[#allocation7_spill] sm:$0xff] }
 0x22c   : > { %v4390_v37 = vpack.c.bf16 %v3522_v7, %v3521_v48  ;;  %v3520_v50 = vadd.f32 %v3443_v31, %v3256_v58  ;;  %v3710_v54 = vadd.f32 %v3709_v63, %v3519_v34  ;;  %v3261_v43 = vadd.f32 %v5043_v23, %v6735_v17 }
 0x22d   : > { %v3778_v10 = vadd.f32 %v3777_v3, %v3747_v52  ;;  %v3192_v38 = vpop.f32.mrf.mxu1  ;;  %v5095_v26 = vpop.f32.mrf.mxu0  ;;  %v2989_v31 = vadd.f32 %v6736_v24, %v2731_v46  ;;  %v3751_v12 = vmul.f32 %v3522_v7, %v3522_v7  ;;  %v2735_v41 = vadd.f32 %v6743_v27, %v6742_v56  ;;  %v6756_v27 = vld [vmem:[#allocation29_spill] sm:$0xff] }
 0x22e   : > { %4446 = vst [vmem:[%s6553_s12 + $0x48] sm:$0xff] %v4390_v37   ;;  %v4385_v30 = vpack.c.bf16 %v3520_v50, %v3519_v34  ;;  %v3749_v0 = vmul.f32 %v3520_v50, %v3520_v50  ;;  %v3259_v9 = vadd.f32 %v3192_v38, %v2988_v44  ;;  %v3711_v29 = vadd.f32 %v3710_v54, %v3520_v50  ;;  %v6746_v37 = vld [vmem:[#allocation22_spill] sm:$0xff]  ;;  %v6749_v54 = vld [vmem:[#allocation9_spill] sm:$0xff] }
 0x22f   : > { %v3779_v45 = vadd.f32 %v3778_v10, %v3748_v20  ;;  %v5044_v14 = vpop.f32.mrf.mxu1  ;;  %v3472_v6 = vpop.f32.mrf.mxu0  ;;  %v3525_v8 = vadd.f32 %v5091_v55, %v3261_v43  ;;  %v2993_v50 = vadd.f32 %v6746_v37, %v2735_v41  ;;  %v6750_v20 = vld [vmem:[#allocation32_spill] sm:$0xff] }
 0x230   : > { %4445 = vst [vmem:[%s6553_s12 + $0x40] sm:$0xff] %v4385_v30   ;;  %v3262_v57 = vadd.f32 %v5044_v14, %v2991_v42  ;;  %v3712_v28 = vadd.f32 %v3711_v29, %v3521_v48  ;;  %v3523_v60 = vadd.f32 %v3456_v4, %v3259_v9  ;;  %v6744_v48 = vld [vmem:[#allocation21_spill] sm:$0xff]  ;;  %v2741_v10 = vadd.f32 %v6750_v20, %v6749_v54 }
 0x231   : > { %v3780_v59 = vadd.f32 %v3779_v45, %v3749_v0  ;;  %v3195_v5 = vpop.f32.mrf.mxu1  ;;  %v5096_v22 = vpop.f32.mrf.mxu0  ;;  %v2995_v4 = vadd.f32 %v6744_v48, %v2737_v36  ;;  %v3754_v30 = vmul.f32 %v3525_v8, %v3525_v8  ;;  %v6752_v36 = vld [vmem:[#allocation10_spill] sm:$0xff] }
 0x232   : > { %v3526_v11 = vadd.f32 %v5092_v32, %v3262_v57  ;;  %v3260_v13 = vadd.f32 %v3195_v5, %v2989_v31  ;;  %v3713_v18 = vadd.f32 %v3712_v28, %v3522_v7  ;;  %v3752_v55 = vmul.f32 %v3523_v60, %v3523_v60  ;;  %v6745_v7 = vld [vmem:[#allocation24_spill] sm:$0xff]  ;;  %v6753_v57 = vld [vmem:[#allocation33_spill] sm:$0xff] }
 0x233   : > { %v3781_v15 = vadd.f32 %v3780_v59, %v3750_v2  ;;  %v5047_v47 = vpop.f32.mrf.mxu1  ;;  %v3475_v40 = vpop.f32.mrf.mxu0  ;;  %v2739_v2 = vadd.f32 %v6753_v57, %v6752_v36 }
 0x234   : > { %v4400_v34 = vpack.c.bf16 %v3526_v11, %v3525_v8  ;;  %v3524_v1 = vadd.f32 %v3459_v33, %v3260_v13  ;;  %v3714_v58 = vadd.f32 %v3713_v18, %v3523_v60  ;;  %v3265_v23 = vadd.f32 %v5047_v47, %v6745_v7  ;;  %v6747_v33 = vld [vmem:[#allocation8_spill] sm:$0xff] }
 0x235   : > { %v3782_v32 = vadd.f32 %v3781_v15, %v3751_v12  ;;  %v3208_v52 = vpop.f32.mrf.mxu1  ;;  %v5099_v46 = vpop.f32.mrf.mxu0  ;;  %v2738_v42 = vadd.f32 %v6748_v62, %v6747_v33  ;;  %v3755_v24 = vmul.f32 %v3526_v11, %v3526_v11  ;;  %v2997_v41 = vadd.f32 %v6756_v27, %v2739_v2 }
 0x236   : > { %4448 = vst [vmem:[%s6553_s12 + $0x58] sm:$0xff] %v4400_v34   ;;  %v4395_v3 = vpack.c.bf16 %v3524_v1, %v3523_v60  ;;  %v3753_v63 = vmul.f32 %v3524_v1, %v3524_v1  ;;  %v3263_v39 = vadd.f32 %v3208_v52, %v2992_v21  ;;  %v3715_v61 = vadd.f32 %v3714_v58, %v3524_v1  ;;  %v6754_v60 = vld [vmem:[#allocation28_spill] sm:$0xff] }
 0x237   : > { %v3783_v44 = vadd.f32 %v3782_v32, %v3752_v55  ;;  %v5048_v51 = vpop.f32.mrf.mxu1  ;;  %v3529_v45 = vadd.f32 %v5095_v26, %v3265_v23  ;;  %v3488_v53 = vpop.f32.mrf.mxu0  ;;  %v2996_v19 = vadd.f32 %v6751_v49, %v2738_v42 }
 0x238   : > { %4447 = vst [vmem:[%s6553_s12 + $0x50] sm:$0xff] %v4395_v3   ;;  %v3266_v38 = vadd.f32 %v5048_v51, %v2995_v4  ;;  %v3716_v0 = vadd.f32 %v3715_v61, %v3525_v8  ;;  %v3527_v43 = vadd.f32 %v3472_v6, %v3263_v39  ;;  %v2999_v6 = vadd.f32 %v6754_v60, %v2741_v10 }
 0x239   : > { %v3784_v17 = vadd.f32 %v3783_v44, %v3753_v63  ;;  %v3211_v9 = vpop.f32.mrf.mxu1  ;;  %v5100_v56 = vpop.f32.mrf.mxu0  ;;  %v3758_v34 = vmul.f32 %v3529_v45, %v3529_v45 }
 0x23a   : > { %v3530_v29 = vadd.f32 %v5096_v22, %v3266_v38  ;;  %v3264_v14 = vadd.f32 %v3211_v9, %v2993_v50  ;;  %v3717_v25 = vadd.f32 %v3716_v0, %v3526_v11  ;;  %v3756_v26 = vmul.f32 %v3527_v43, %v3527_v43  ;;  %v6755_v11 = vld [vmem:[#allocation31_spill] sm:$0xff] }
 0x23b   : > { %v3785_v31 = vadd.f32 %v3784_v17, %v3754_v30  ;;  %v5051_v16 = vpop.f32.mrf.mxu1  ;;  %v3491_v23 = vpop.f32.mrf.mxu0 }
 0x23c   : > { %v4410_v28 = vpack.c.bf16 %v3530_v29, %v3529_v45  ;;  %v3528_v59 = vadd.f32 %v3475_v40, %v3264_v14  ;;  %v3718_v5 = vadd.f32 %v3717_v25, %v3527_v43  ;;  %v3269_v15 = vadd.f32 %v5051_v16, %v6755_v11 }
 0x23d   : > { %v3786_v22 = vadd.f32 %v3785_v31, %v3755_v24  ;;  %v3224_v8 = vpop.f32.mrf.mxu1  ;;  %v3759_v3 = vmul.f32 %v3530_v29, %v3530_v29 }
 0x23e   : > { %4450 = vst [vmem:[%s6553_s12 + $0x68] sm:$0xff] %v4410_v28   ;;  %v4405_v13 = vpack.c.bf16 %v3528_v59, %v3527_v43  ;;  %v3757_v12 = vmul.f32 %v3528_v59, %v3528_v59  ;;  %v3267_v18 = vadd.f32 %v3224_v8, %v2996_v19  ;;  %v3719_v35 = vadd.f32 %v3718_v5, %v3528_v59 }
 0x23f   : > { %v3787_v47 = vadd.f32 %v3786_v22, %v3756_v26  ;;  %v5052_v21 = vpop.f32.mrf.mxu1  ;;  %v3533_v55 = vadd.f32 %v5099_v46, %v3269_v15 }
 0x240   : > { %4449 = vst [vmem:[%s6553_s12 + $0x60] sm:$0xff] %v4405_v13   ;;  %v3270_v40 = vadd.f32 %v5052_v21, %v2999_v6  ;;  %v3720_v1 = vadd.f32 %v3719_v35, %v3529_v45  ;;  %v3531_v4 = vadd.f32 %v3488_v53, %v3267_v18 }
 0x241   : > { %v3788_v48 = vadd.f32 %v3787_v47, %v3757_v12  ;;  %v3227_v58 = vpop.f32.mrf.mxu1  ;;  %v3762_v54 = vmul.f32 %v3533_v55, %v3533_v55 }
 0x242   : > { %v3534_v32 = vadd.f32 %v5100_v56, %v3270_v40  ;;  %v3268_v52 = vadd.f32 %v3227_v58, %v2997_v41  ;;  %v3721_v7 = vadd.f32 %v3720_v1, %v3530_v29  ;;  %v3760_v51 = vmul.f32 %v3531_v4, %v3531_v4 }
 0x243   : > { %v3789_v63 = vadd.f32 %v3788_v48, %v3758_v34 }
 0x244   : > { %v4420_v39 = vpack.c.bf16 %v3534_v32, %v3533_v55  ;;  %v3532_v44 = vadd.f32 %v3491_v23, %v3268_v52  ;;  %v3722_v61 = vadd.f32 %v3721_v7, %v3531_v4  ;;  %v3763_v10 = vmul.f32 %v3534_v32, %v3534_v32 }
 0x245   : > { %v3790_v37 = vadd.f32 %v3789_v63, %v3759_v3 }
 0x246   : > { %4452 = vst [vmem:[%s6553_s12 + $0x78] sm:$0xff] %v4420_v39   ;;  %v4415_v50 = vpack.c.bf16 %v3532_v44, %v3531_v4  ;;  %v3761_v33 = vmul.f32 %v3532_v44, %v3532_v44  ;;  %v3723_v42 = vadd.f32 %v3722_v61, %v3532_v44 }
 0x247   : > { %v3791_v62 = vadd.f32 %v3790_v37, %v3760_v51 }
 0x248   : > { %4451 = vst [vmem:[%s6553_s12 + $0x70] sm:$0xff] %v4415_v50   ;;  %v3724_v46 = vadd.f32 %v3723_v42, %v3533_v55 }
 0x249   : > { %v3792_v20 = vadd.f32 %v3791_v62, %v3761_v33 }
 0x24a   : > { %v3725_v38 = vadd.f32 %v3724_v46, %v3534_v32 }
 0x24b   : > { %v3793_v30 = vadd.f32 %v3792_v20, %v3762_v54 }
 0x24c   : > { %v3726_v0 = vrot.slane %v3725_v38, 4 }
 0x24d   : > { %v3794_v17 = vadd.f32 %v3793_v30, %v3763_v10 }
 0x24e   : > { %v3727_v43 = vadd.f32 %v3726_v0, %v3725_v38 }
 0x24f   : > { %v3795_v9 = vrot.slane %v3794_v17, 4 }
 0x250   : > { %v3728_v45 = vrot.slane %v3727_v43, 2 }
 0x251   : > { %v3796_v29 = vadd.f32 %v3795_v9, %v3794_v17 }
 0x252   : > { %v3729_v14 = vadd.f32 %v3728_v45, %v3727_v43 }
 0x253   : > { %v3797_v24 = vrot.slane %v3796_v29, 2 }
 0x254   : > { %v3730_v31 = vrot.slane %v3729_v14, 1 }
 0x255   : > { %v3798_v25 = vadd.f32 %v3797_v24, %v3796_v29 }
 0x256   : > { %v3731_v53 = vadd.f32 %v3730_v31, %v3729_v14 }
 0x257   : > { %v3799_v16 = vrot.slane %v3798_v25, 1 }
 0x259   : > { %v3800_v49 = vadd.f32 %v3799_v16, %v3798_v25 }
 0x25b   : > { %v3802_v19 = vsel %vm895_vm0, %v3731_v53, %v3800_v49 }
 0x25c   : > { %3803 = vst [vmem:[%s465_s15] sm:$0x3] %v3802_v19 }
 0x25d PF: > { %s18_s26 = sadd.s32 1, %s5237_s26   ;;  %s6757_s24 = smov %s5233_s25 }
 0x25e   : > { %p15_p5 = scmp.ge.s32.totalorder %s18_s26, 4   ;;  %s6758_s25 = smov %s6760_s27 }
 0x260   :  { %17 = sbr.rel (!%p15_p5) target bundleno = 2 (0x2), region = 100 }

</bundles_post_ra>
